<compile_context>
chip_gen: v5e
topology: v5e:2x2
jax: 0.10.0
libtpu: 0.0.40
codegen_flags: <defaults>
</compile_context>

<pallas_src>
import functools

import jax
import jax.numpy as jnp
import numpy as np
from jax import lax
from jax.experimental import pallas as pl
from jax.experimental.pallas import tpu as pltpu


def _yolo_loss_kernel(pred_ref, tb_ref, obj_ref, tc_ref, out_ref,
                      acc_reg, acc_con, acc_noobj, acc_cls, *,
                      S, l_coord, l_noobj, inner_tiles, tile_r, n_cells, n_cls):
    """One grid step processes a (C, tile_r, 128) channel-planar tile.

    pred_ref: (30, tile_r, 128)  channels = [b1(x,y,w,h,c), b2(x,y,w,h,c), 20 cls]
    tb_ref:   (4,  tile_r, 128)  target box  [tx, ty, tw, th]
    obj_ref:  (1,  tile_r, 128)  object mask as float
    tc_ref:   (20, tile_r, 128)  target class scores
    out_ref:  (8, 128)           per-core partials; row 0 lanes 0..4 =
                                 [total, reg, contain, noobj, cls]
    acc_*:    (8, 128) VMEM accumulators (cross-lane reduce only at the end)
    """
    p = pl.program_id(0)          # parallel (megacore) axis
    i = pl.program_id(1)          # sequential tile axis
    last = pl.num_programs(1) - 1

    @pl.when(i == 0)
    def _init():
        acc_reg[...] = jnp.zeros_like(acc_reg)
        acc_con[...] = jnp.zeros_like(acc_con)
        acc_noobj[...] = jnp.zeros_like(acc_noobj)
        acc_cls[...] = jnp.zeros_like(acc_cls)

    # Unclamped global tile index (the BlockSpec index_map clamps; masking
    # below makes any redundant / partial tile contribute exactly zero).
    base_row = (p * inner_tiles + i) * tile_r

    rows = lax.broadcasted_iota(jnp.int32, (8, 128), 0)
    lanes = lax.broadcasted_iota(jnp.int32, (8, 128), 1)

    inv_s = 1.0 / S
    inv_ss = 1.0 / (S * S)

    # Statically unrolled loop over 8x128 chunks keeps every live value at
    # exactly one vreg, so the whole working set fits in the register file.
    for cidx in range(tile_r // 8):
        r0 = cidx * 8

        def ch(ref, k, _r0=r0):
            return ref[k, pl.ds(_r0, 8), :]          # (8, 128)

        # flat cell index + validity (kills padded & out-of-bounds lanes)
        m_idx = (base_row + r0 + rows) * 128 + lanes
        valid = m_idx < n_cells
        m_f = m_idx.astype(jnp.float32)

        # cell-in-image, gy (row), gx (col) — exact f32 floor trick, no s32 div
        cell = m_f - (S * S) * jnp.floor((m_f + 0.5) * inv_ss)
        gy = jnp.floor((cell + 0.5) * inv_s)
        gx = cell - gy * S

        b1x, b1y, b1w, b1h, b1c = (ch(pred_ref, k) for k in range(5))
        b2x, b2y, b2w, b2h, b2c = (ch(pred_ref, k) for k in range(5, 10))
        tx, ty, tw, th = (ch(tb_ref, k) for k in range(4))
        obj = ch(obj_ref, 0)

        obj_b = jnp.logical_and(obj > 0.5, valid)
        noobj_b = jnp.logical_and(obj <= 0.5, valid)

        # ---- classification loss (reduced over the 20-class axis here) ----
        cls_sq = jnp.zeros((8, 128), jnp.float32)
        for k in range(n_cls):
            d = ch(pred_ref, 10 + k) - ch(tc_ref, k)
            cls_sq = cls_sq + d * d
        acc_cls[...] += jnp.where(obj_b, cls_sq, 0.0)

        # ---- no-object confidence loss (both predictors) -------------------
        acc_noobj[...] += jnp.where(noobj_b, b1c * b1c + b2c * b2c, 0.0)

        # ---- image-relative boxes & per-cell IoU with the target -----------
        t_cx = (gx + tx) * inv_s
        t_cy = (gy + ty) * inv_s
        t_x1 = t_cx - tw * 0.5
        t_x2 = t_cx + tw * 0.5
        t_y1 = t_cy - th * 0.5
        t_y2 = t_cy + th * 0.5
        t_area = (t_x2 - t_x1) * (t_y2 - t_y1)

        def iou(bx, by, bw, bh):
            p_cx = (gx + bx) * inv_s
            p_cy = (gy + by) * inv_s
            p_x1 = p_cx - bw * 0.5
            p_x2 = p_cx + bw * 0.5
            p_y1 = p_cy - bh * 0.5
            p_y2 = p_cy + bh * 0.5
            iw = jnp.maximum(jnp.minimum(p_x2, t_x2) - jnp.maximum(p_x1, t_x1), 0.0)
            ih = jnp.maximum(jnp.minimum(p_y2, t_y2) - jnp.maximum(p_y1, t_y1), 0.0)
            inter = iw * ih
            p_area = (p_x2 - p_x1) * (p_y2 - p_y1)
            # eps avoids 0/0 on empty / invalid cells (they are masked anyway)
            return inter / (p_area + t_area - inter + 1e-9)

        iou1 = iou(b1x, b1y, b1w, b1h)
        iou2 = iou(b2x, b2y, b2w, b2h)
        use2 = iou2 > iou1                 # strict '>' == torch.max tie-break
        best_iou = jnp.maximum(iou1, iou2)

        rx = jnp.where(use2, b2x, b1x)
        ry = jnp.where(use2, b2y, b1y)
        rw = jnp.where(use2, b2w, b1w)
        rh = jnp.where(use2, b2h, b1h)
        rc = jnp.where(use2, b2c, b1c)

        # ---- box regression loss (x, y, sqrt(w), sqrt(h)) -------------------
        xy_sq = (rx - tx) ** 2 + (ry - ty) ** 2
        wh_sq = ((jnp.sqrt(jnp.maximum(rw, 1e-6)) - jnp.sqrt(jnp.maximum(tw, 1e-6))) ** 2 +
                 (jnp.sqrt(jnp.maximum(rh, 1e-6)) - jnp.sqrt(jnp.maximum(th, 1e-6))) ** 2)
        acc_reg[...] += jnp.where(obj_b, xy_sq + wh_sq, 0.0)

        # ---- object-present confidence loss ---------------------------------
        acc_con[...] += jnp.where(obj_b, (rc - best_iou) ** 2, 0.0)

    # ---- finalize: one cross-lane reduction + one lane-dense store ----------
    @pl.when(i == last)
    def _finalize():
        reg = l_coord * jnp.sum(acc_reg[...])
        con = jnp.sum(acc_con[...])
        noobj = l_noobj * jnp.sum(acc_noobj[...])
        cls = jnp.sum(acc_cls[...])
        total = reg + con + noobj + cls
        lane = lax.broadcasted_iota(jnp.int32, (8, 128), 1)
        srow = lax.broadcasted_iota(jnp.int32, (8, 128), 0)
        vals = (jnp.where(lane == 0, total, 0.0) +
                jnp.where(lane == 1, reg, 0.0) +
                jnp.where(lane == 2, con, 0.0) +
                jnp.where(lane == 3, noobj, 0.0) +
                jnp.where(lane == 4, cls, 0.0))
        out_ref[...] = jnp.where(srow == 0, vals, 0.0)


def yolo_loss_pallas(pred_tensor, target_boxes, target_cls, has_object_map,
                     *, S, B=2, l_coord=5.0, l_noobj=0.5, tile_m=16384):
    """Pallas TPU implementation of YoloLoss.forward.

    pred_tensor:    (N, S, S, 5*B + 20) float32
    target_boxes:   (N, S, S, 4)        float32
    target_cls:     (N, S, S, 20)       float32
    has_object_map: (N, S, S)           bool / numeric mask
    """
    assert B == 2, "forward() hard-codes two predictors per cell"
    N, S1, S2, C = pred_tensor.shape
    assert S1 == S and S2 == S and C == 5 * B + 20
    n_cls = C - 5 * B
    M = N * S * S
    # in-kernel gx/gy recovery uses exact f32 integer arithmetic, valid here:
    assert M < (1 << 23), "cell count too large for f32-exact index recovery"

    f32 = jnp.float32
    m_blocks = -(-M // 128)
    m_blocks = -(-m_blocks // 8) * 8          # multiple of 8 sublane rows
    m_pad = m_blocks * 128                     # <= 1023 cells of zero padding

    # rows-of-128 per grid tile (multiple of 8, capped for VMEM headroom)
    want_r = min(512, max(8, (int(tile_m) // 128 // 8) * 8))
    if m_blocks <= want_r:
        tile_r, num_tiles = m_blocks, 1        # single tile, no grid loop
    else:
        tile_r = want_r
        num_tiles = -(-m_blocks // tile_r)
    n_par = 2 if num_tiles >= 2 else 1         # megacore split; no-op on 1-TC chips
    inner = -(-num_tiles // n_par)

    def planar(x, ch):
        x = x.reshape(M, ch).astype(f32).T     # (ch, M) channel-planar
        if m_pad != M:
            x = jnp.pad(x, ((0, 0), (0, m_pad - M)))
        return x.reshape(ch, m_blocks, 128)

    pred_p = planar(pred_tensor, C)
    tb_p = planar(target_boxes, 4)
    obj_p = planar(has_object_map.astype(f32), 1)
    tc_p = planar(target_cls, n_cls)

    def in_map(p, i):
        # clamp so a redundant trailing tile (odd num_tiles split 2-way) never
        # indexes outside the array; the kernel's validity mask zeroes it out.
        t = jnp.minimum(p * inner + i, num_tiles - 1)
        return (0, t, 0)

    kernel = functools.partial(
        _yolo_loss_kernel, S=float(S), l_coord=float(l_coord),
        l_noobj=float(l_noobj), inner_tiles=inner, tile_r=tile_r,
        n_cells=M, n_cls=n_cls)

    out = pl.pallas_call(
        kernel,
        out_shape=jax.ShapeDtypeStruct((n_par * 8, 128), f32),
        grid=(n_par, inner),
        in_specs=[
            pl.BlockSpec((C, tile_r, 128), in_map),
            pl.BlockSpec((4, tile_r, 128), in_map),
            pl.BlockSpec((1, tile_r, 128), in_map),
            pl.BlockSpec((n_cls, tile_r, 128), in_map),
        ],
        out_specs=pl.BlockSpec((8, 128), lambda p, i: (p, 0)),
        scratch_shapes=[
            pltpu.VMEM((8, 128), f32),      # reg
            pltpu.VMEM((8, 128), f32),      # contain
            pltpu.VMEM((8, 128), f32),      # noobj
            pltpu.VMEM((8, 128), f32),      # cls
        ],
        compiler_params=pltpu.CompilerParams(
            dimension_semantics=("parallel", "arbitrary"),
            vmem_limit_bytes=32 * 1024 * 1024),
    )(pred_p, tb_p, obj_p, tc_p)

    sums = jnp.sum(out, axis=0)               # fold per-core rows (tiny XLA op)
    total, reg, con, noobj, cls = (sums[k] for k in range(5))
    return {
        "total_loss": total,
        "reg_loss": reg,
        "containing_obj_loss": con,
        "no_obj_loss": noobj,
        "cls_loss": cls,
    }


def yolo_loss_ref(pred_tensor, target_boxes, target_cls, has_object_map,
                  *, S, l_coord=5.0, l_noobj=0.5):
    """Pure-jnp reference (same masked-sum formulation) for correctness check."""
    N, _, _, C = pred_tensor.shape
    M = N * S * S
    pred = pred_tensor.reshape(M, C).astype(jnp.float32)
    tb = target_boxes.reshape(M, 4).astype(jnp.float32)
    tc = target_cls.reshape(M, 20).astype(jnp.float32)
    obj = has_object_map.reshape(M, 1)

    ii, jj = jnp.meshgrid(jnp.arange(S, dtype=jnp.float32),
                          jnp.arange(S, dtype=jnp.float32), indexing="ij")
    gxy = jnp.tile(jnp.stack([jj, ii], axis=-1)[None], (N, 1, 1, 1)).reshape(M, 2)

    b1, b2, cls_pred = pred[:, 0:5], pred[:, 5:10], pred[:, 10:30]
    cls_loss = jnp.sum(jnp.where(obj, (cls_pred - tc) ** 2, 0.0))
    noobj_loss = l_noobj * jnp.sum(
        jnp.where(obj, 0.0, b1[:, 4:5] ** 2 + b2[:, 4:5] ** 2))

    t_xy = (gxy + tb[:, 0:2]) / S
    t_lt, t_rb = t_xy - tb[:, 2:4] / 2, t_xy + tb[:, 2:4] / 2
    t_area = (t_rb[:, 0:1] - t_lt[:, 0:1]) * (t_rb[:, 1:2] - t_lt[:, 1:2])

    def iou(b):
        p_xy = (gxy + b[:, 0:2]) / S
        p_lt, p_rb = p_xy - b[:, 2:4] / 2, p_xy + b[:, 2:4] / 2
        wh = jnp.maximum(jnp.minimum(p_rb, t_rb) - jnp.maximum(p_lt, t_lt), 0.0)
        inter = wh[:, 0:1] * wh[:, 1:2]
        p_area = (p_rb[:, 0:1] - p_lt[:, 0:1]) * (p_rb[:, 1:2] - p_lt[:, 1:2])
        return inter / (p_area + t_area - inter)

    i1, i2 = iou(b1), iou(b2)
    use2 = i2 > i1
    best_iou = jnp.maximum(i1, i2)
    resp = jnp.where(use2, b2[:, 0:4], b1[:, 0:4])
    resp_conf = jnp.where(use2, b2[:, 4:5], b1[:, 4:5])

    reg_loss = l_coord * jnp.sum(jnp.where(
        obj,
        (resp[:, 0:2] - tb[:, 0:2]) ** 2 +
        (jnp.sqrt(jnp.maximum(resp[:, 2:4], 1e-6)) -
         jnp.sqrt(jnp.maximum(tb[:, 2:4], 1e-6))) ** 2,
        0.0))
    contain_loss = jnp.sum(jnp.where(obj, (resp_conf - best_iou) ** 2, 0.0))
    total = reg_loss + contain_loss + noobj_loss + cls_loss
    return {"total_loss": total, "reg_loss": reg_loss,
            "containing_obj_loss": contain_loss,
            "no_obj_loss": noobj_loss, "cls_loss": cls_loss}


if __name__ == "__main__":
    # Module "parameters" (from __init__), set deterministically in-script.
    S, B, L_COORD, L_NOOBJ = 7, 2, 5.0, 0.5
    N = 60   # M = 2940 cells -> 24 row-blocks of 128 (exercises padding & masking)

    key = jax.random.PRNGKey(0)
    k1, k2, k3, k4 = jax.random.split(key, 4)
    pred_tensor = jax.random.uniform(k1, (N, S, S, 5 * B + 20), dtype=jnp.float32)
    target_boxes = jax.random.uniform(k2, (N, S, S, 4), dtype=jnp.float32)
    target_cls = jax.random.uniform(k3, (N, S, S, 20), dtype=jnp.float32)
    has_object_map = jax.random.bernoulli(k4, p=0.4, shape=(N, S, S))

    ref = yolo_loss_ref(pred_tensor, target_boxes, target_cls, has_object_map,
                        S=S, l_coord=L_COORD, l_noobj=L_NOOBJ)

    # (a) default config: single big tile, grid (1, 1)
    # (b) 2 tiles of 16 row-blocks: 2-way parallel split, partial last block
    # (c) 3 tiles of 8 row-blocks: 2-way split with a clamped redundant tile
    results = []
    for tm in (16384, 2048, 1024):
        out = yolo_loss_pallas(pred_tensor, target_boxes, target_cls,
                               has_object_map, S=S, B=B, l_coord=L_COORD,
                               l_noobj=L_NOOBJ, tile_m=tm)
        jax.block_until_ready(out)
        results.append(out)

    for out in results:
        for k in out:
            np.testing.assert_allclose(np.asarray(out[k]), np.asarray(ref[k]),
                                       rtol=1e-4, atol=1e-4)

    print("KERNEL_OK")
</pallas_src>

<mosaic_0001>
module attributes {stable_mosaic.version = 11 : i64} {
  func.func @_yolo_loss_kernel(%arg0: i32, %arg1: i32, %arg2: memref<30x24x128xf32, #tpu.memory_space<vmem>>, %arg3: memref<4x24x128xf32, #tpu.memory_space<vmem>>, %arg4: memref<1x24x128xf32, #tpu.memory_space<vmem>>, %arg5: memref<20x24x128xf32, #tpu.memory_space<vmem>>, %arg6: memref<8x128xf32, #tpu.memory_space<vmem>>, %arg7: memref<8x128xf32, #tpu.memory_space<vmem>>, %arg8: memref<8x128xf32, #tpu.memory_space<vmem>>, %arg9: memref<8x128xf32, #tpu.memory_space<vmem>>, %arg10: memref<8x128xf32, #tpu.memory_space<vmem>>) attributes {dimension_semantics = [#tpu.dimension_semantics<parallel>, #tpu.dimension_semantics<arbitrary>], iteration_bounds = array<i64: 1, 1>, scalar_prefetch = 0 : i64, scratch_operands = 4 : i64, tpu.core_type = #tpu.core_type<tc>, window_params = [{transform_indices = @transform_0, window_bounds = array<i64: 30, 24, 128>}, {transform_indices = @transform_1, window_bounds = array<i64: 4, 24, 128>}, {transform_indices = @transform_2, window_bounds = array<i64: 1, 24, 128>}, {transform_indices = @transform_3, window_bounds = array<i64: 20, 24, 128>}, {transform_indices = @transform_4, window_bounds = array<i64: 8, 128>}]} {
    %c0_i32 = arith.constant 0 : i32
    %0 = arith.cmpi eq, %arg1, %c0_i32 : i32
    %1 = arith.extui %0 : i1 to i32
    %c0_i32_0 = arith.constant 0 : i32
    %2 = arith.cmpi ne, %1, %c0_i32_0 : i32
    scf.if %2 {
      %cst_643 = arith.constant 0.000000e+00 : f32
      %1067 = vector.broadcast %cst_643 : f32 to vector<8x128xf32>
      %c0_644 = arith.constant 0 : index
      %c0_645 = arith.constant 0 : index
      %1068 = vector.load %arg7[%c0_644, %c0_645] : memref<8x128xf32, #tpu.memory_space<vmem>>, vector<8x128xf32>
      tpu.vector_store %arg7[%c0_644, %c0_645], %1067 {strides = array<i32>} : memref<8x128xf32, #tpu.memory_space<vmem>>, vector<8x128xf32>,
      %cst_646 = arith.constant 0.000000e+00 : f32
      %1069 = vector.broadcast %cst_646 : f32 to vector<8x128xf32>
      %c0_647 = arith.constant 0 : index
      %c0_648 = arith.constant 0 : index
      %1070 = vector.load %arg8[%c0_647, %c0_648] : memref<8x128xf32, #tpu.memory_space<vmem>>, vector<8x128xf32>
      tpu.vector_store %arg8[%c0_647, %c0_648], %1069 {strides = array<i32>} : memref<8x128xf32, #tpu.memory_space<vmem>>, vector<8x128xf32>,
      %cst_649 = arith.constant 0.000000e+00 : f32
      %1071 = vector.broadcast %cst_649 : f32 to vector<8x128xf32>
      %c0_650 = arith.constant 0 : index
      %c0_651 = arith.constant 0 : index
      %1072 = vector.load %arg9[%c0_650, %c0_651] : memref<8x128xf32, #tpu.memory_space<vmem>>, vector<8x128xf32>
      tpu.vector_store %arg9[%c0_650, %c0_651], %1071 {strides = array<i32>} : memref<8x128xf32, #tpu.memory_space<vmem>>, vector<8x128xf32>,
      %cst_652 = arith.constant 0.000000e+00 : f32
      %1073 = vector.broadcast %cst_652 : f32 to vector<8x128xf32>
      %c0_653 = arith.constant 0 : index
      %c0_654 = arith.constant 0 : index
      %1074 = vector.load %arg10[%c0_653, %c0_654] : memref<8x128xf32, #tpu.memory_space<vmem>>, vector<8x128xf32>
      tpu.vector_store %arg10[%c0_653, %c0_654], %1073 {strides = array<i32>} : memref<8x128xf32, #tpu.memory_space<vmem>>, vector<8x128xf32>,
    } else {
    }
    %c1_i32 = arith.constant 1 : i32
    %3 = arith.muli %arg0, %c1_i32 : i32
    %4 = arith.addi %3, %arg1 : i32
    %c24_i32 = arith.constant 24 : i32
    %5 = arith.muli %4, %c24_i32 : i32
    %6 = tpu.iota {dimensions = array<i32: 0>} : vector<8x128xi32>
    %7 = tpu.iota {dimensions = array<i32: 1>} : vector<8x128xi32>
    %c0_i32_1 = arith.constant 0 : i32
    %8 = arith.addi %5, %c0_i32_1 : i32
    %9 = vector.broadcast %8 : i32 to vector<8x128xi32>
    %10 = arith.addi %9, %6 : vector<8x128xi32>
    %c128_i32 = arith.constant 128 : i32
    %11 = vector.broadcast %c128_i32 : i32 to vector<8x128xi32>
    %12 = arith.muli %10, %11 : vector<8x128xi32>
    %13 = arith.addi %12, %7 : vector<8x128xi32>
    %c2940_i32 = arith.constant 2940 : i32
    %14 = vector.broadcast %c2940_i32 : i32 to vector<8x128xi32>
    %15 = arith.cmpi slt, %13, %14 : vector<8x128xi32>
    %16 = arith.sitofp %13 : vector<8x128xi32> to vector<8x128xf32>
    %cst = arith.constant 5.000000e-01 : f32
    %17 = vector.broadcast %cst : f32 to vector<8x128xf32>
    %18 = arith.addf %16, %17 : vector<8x128xf32>
    %cst_2 = arith.constant 0.0204081628 : f32
    %19 = vector.broadcast %cst_2 : f32 to vector<8x128xf32>
    %20 = arith.mulf %18, %19 : vector<8x128xf32>
    %21 = math.floor %20 : vector<8x128xf32>
    %cst_3 = arith.constant 4.900000e+01 : f32
    %22 = vector.broadcast %cst_3 : f32 to vector<8x128xf32>
    %23 = arith.mulf %22, %21 : vector<8x128xf32>
    %24 = arith.subf %16, %23 : vector<8x128xf32>
    %cst_4 = arith.constant 5.000000e-01 : f32
    %25 = vector.broadcast %cst_4 : f32 to vector<8x128xf32>
    %26 = arith.addf %24, %25 : vector<8x128xf32>
    %cst_5 = arith.constant 0.142857149 : f32
    %27 = vector.broadcast %cst_5 : f32 to vector<8x128xf32>
    %28 = arith.mulf %26, %27 : vector<8x128xf32>
    %29 = math.floor %28 : vector<8x128xf32>
    %cst_6 = arith.constant 7.000000e+00 : f32
    %30 = vector.broadcast %cst_6 : f32 to vector<8x128xf32>
    %31 = arith.mulf %29, %30 : vector<8x128xf32>
    %32 = arith.subf %24, %31 : vector<8x128xf32>
    %c0 = arith.constant 0 : index
    %c0_7 = arith.constant 0 : index
    %c0_8 = arith.constant 0 : index
    %33 = vector.load %arg2[%c0, %c0_7, %c0_8] : memref<30x24x128xf32, #tpu.memory_space<vmem>>, vector<1x8x128xf32>
    %34 = vector.shape_cast %33 : vector<1x8x128xf32> to vector<8x128xf32>
    %c1 = arith.constant 1 : index
    %c0_9 = arith.constant 0 : index
    %c0_10 = arith.constant 0 : index
    %35 = vector.load %arg2[%c1, %c0_9, %c0_10] : memref<30x24x128xf32, #tpu.memory_space<vmem>>, vector<1x8x128xf32>
    %36 = vector.shape_cast %35 : vector<1x8x128xf32> to vector<8x128xf32>
    %c2 = arith.constant 2 : index
    %c0_11 = arith.constant 0 : index
    %c0_12 = arith.constant 0 : index
    %37 = vector.load %arg2[%c2, %c0_11, %c0_12] : memref<30x24x128xf32, #tpu.memory_space<vmem>>, vector<1x8x128xf32>
    %38 = vector.shape_cast %37 : vector<1x8x128xf32> to vector<8x128xf32>
    %c3 = arith.constant 3 : index
    %c0_13 = arith.constant 0 : index
    %c0_14 = arith.constant 0 : index
    %39 = vector.load %arg2[%c3, %c0_13, %c0_14] : memref<30x24x128xf32, #tpu.memory_space<vmem>>, vector<1x8x128xf32>
    %40 = vector.shape_cast %39 : vector<1x8x128xf32> to vector<8x128xf32>
    %c4 = arith.constant 4 : index
    %c0_15 = arith.constant 0 : index
    %c0_16 = arith.constant 0 : index
    %41 = vector.load %arg2[%c4, %c0_15, %c0_16] : memref<30x24x128xf32, #tpu.memory_space<vmem>>, vector<1x8x128xf32>
    %42 = vector.shape_cast %41 : vector<1x8x128xf32> to vector<8x128xf32>
    %c5 = arith.constant 5 : index
    %c0_17 = arith.constant 0 : index
    %c0_18 = arith.constant 0 : index
    %43 = vector.load %arg2[%c5, %c0_17, %c0_18] : memref<30x24x128xf32, #tpu.memory_space<vmem>>, vector<1x8x128xf32>
    %44 = vector.shape_cast %43 : vector<1x8x128xf32> to vector<8x128xf32>
    %c6 = arith.constant 6 : index
    %c0_19 = arith.constant 0 : index
    %c0_20 = arith.constant 0 : index
    %45 = vector.load %arg2[%c6, %c0_19, %c0_20] : memref<30x24x128xf32, #tpu.memory_space<vmem>>, vector<1x8x128xf32>
    %46 = vector.shape_cast %45 : vector<1x8x128xf32> to vector<8x128xf32>
    %c7 = arith.constant 7 : index
    %c0_21 = arith.constant 0 : index
    %c0_22 = arith.constant 0 : index
    %47 = vector.load %arg2[%c7, %c0_21, %c0_22] : memref<30x24x128xf32, #tpu.memory_space<vmem>>, vector<1x8x128xf32>
    %48 = vector.shape_cast %47 : vector<1x8x128xf32> to vector<8x128xf32>
    %c8 = arith.constant 8 : index
    %c0_23 = arith.constant 0 : index
    %c0_24 = arith.constant 0 : index
    %49 = vector.load %arg2[%c8, %c0_23, %c0_24] : memref<30x24x128xf32, #tpu.memory_space<vmem>>, vector<1x8x128xf32>
    %50 = vector.shape_cast %49 : vector<1x8x128xf32> to vector<8x128xf32>
    %c9 = arith.constant 9 : index
    %c0_25 = arith.constant 0 : index
    %c0_26 = arith.constant 0 : index
    %51 = vector.load %arg2[%c9, %c0_25, %c0_26] : memref<30x24x128xf32, #tpu.memory_space<vmem>>, vector<1x8x128xf32>
    %52 = vector.shape_cast %51 : vector<1x8x128xf32> to vector<8x128xf32>
    %c0_27 = arith.constant 0 : index
    %c0_28 = arith.constant 0 : index
    %c0_29 = arith.constant 0 : index
    %53 = vector.load %arg3[%c0_27, %c0_28, %c0_29] : memref<4x24x128xf32, #tpu.memory_space<vmem>>, vector<1x8x128xf32>
    %54 = vector.shape_cast %53 : vector<1x8x128xf32> to vector<8x128xf32>
    %c1_30 = arith.constant 1 : index
    %c0_31 = arith.constant 0 : index
    %c0_32 = arith.constant 0 : index
    %55 = vector.load %arg3[%c1_30, %c0_31, %c0_32] : memref<4x24x128xf32, #tpu.memory_space<vmem>>, vector<1x8x128xf32>
    %56 = vector.shape_cast %55 : vector<1x8x128xf32> to vector<8x128xf32>
    %c2_33 = arith.constant 2 : index
    %c0_34 = arith.constant 0 : index
    %c0_35 = arith.constant 0 : index
    %57 = vector.load %arg3[%c2_33, %c0_34, %c0_35] : memref<4x24x128xf32, #tpu.memory_space<vmem>>, vector<1x8x128xf32>
    %58 = vector.shape_cast %57 : vector<1x8x128xf32> to vector<8x128xf32>
    %c3_36 = arith.constant 3 : index
    %c0_37 = arith.constant 0 : index
    %c0_38 = arith.constant 0 : index
    %59 = vector.load %arg3[%c3_36, %c0_37, %c0_38] : memref<4x24x128xf32, #tpu.memory_space<vmem>>, vector<1x8x128xf32>
    %60 = vector.shape_cast %59 : vector<1x8x128xf32> to vector<8x128xf32>
    %c0_39 = arith.constant 0 : index
    %c0_40 = arith.constant 0 : index
    %c0_41 = arith.constant 0 : index
    %61 = vector.load %arg4[%c0_39, %c0_40, %c0_41] : memref<1x24x128xf32, #tpu.memory_space<vmem>>, vector<1x8x128xf32>
    %62 = vector.shape_cast %61 : vector<1x8x128xf32> to vector<8x128xf32>
    %cst_42 = arith.constant 5.000000e-01 : f32
    %63 = vector.broadcast %cst_42 : f32 to vector<8x128xf32>
    %64 = arith.cmpf ogt, %62, %63 : vector<8x128xf32>
    %65 = arith.andi %64, %15 : vector<8x128xi1>
    %cst_43 = arith.constant 5.000000e-01 : f32
    %66 = vector.broadcast %cst_43 : f32 to vector<8x128xf32>
    %67 = arith.cmpf ole, %62, %66 : vector<8x128xf32>
    %68 = arith.andi %67, %15 : vector<8x128xi1>
    %cst_44 = arith.constant 0.000000e+00 : f32
    %69 = vector.broadcast %cst_44 : f32 to vector<8x128xf32>
    %c10 = arith.constant 10 : index
    %c0_45 = arith.constant 0 : index
    %c0_46 = arith.constant 0 : index
    %70 = vector.load %arg2[%c10, %c0_45, %c0_46] : memref<30x24x128xf32, #tpu.memory_space<vmem>>, vector<1x8x128xf32>
    %71 = vector.shape_cast %70 : vector<1x8x128xf32> to vector<8x128xf32>
    %c0_47 = arith.constant 0 : index
    %c0_48 = arith.constant 0 : index
    %c0_49 = arith.constant 0 : index
    %72 = vector.load %arg5[%c0_47, %c0_48, %c0_49] : memref<20x24x128xf32, #tpu.memory_space<vmem>>, vector<1x8x128xf32>
    %73 = vector.shape_cast %72 : vector<1x8x128xf32> to vector<8x128xf32>
    %74 = arith.subf %71, %73 : vector<8x128xf32>
    %75 = arith.mulf %74, %74 : vector<8x128xf32>
    %76 = arith.addf %69, %75 : vector<8x128xf32>
    %c11 = arith.constant 11 : index
    %c0_50 = arith.constant 0 : index
    %c0_51 = arith.constant 0 : index
    %77 = vector.load %arg2[%c11, %c0_50, %c0_51] : memref<30x24x128xf32, #tpu.memory_space<vmem>>, vector<1x8x128xf32>
    %78 = vector.shape_cast %77 : vector<1x8x128xf32> to vector<8x128xf32>
    %c1_52 = arith.constant 1 : index
    %c0_53 = arith.constant 0 : index
    %c0_54 = arith.constant 0 : index
    %79 = vector.load %arg5[%c1_52, %c0_53, %c0_54] : memref<20x24x128xf32, #tpu.memory_space<vmem>>, vector<1x8x128xf32>
    %80 = vector.shape_cast %79 : vector<1x8x128xf32> to vector<8x128xf32>
    %81 = arith.subf %78, %80 : vector<8x128xf32>
    %82 = arith.mulf %81, %81 : vector<8x128xf32>
    %83 = arith.addf %76, %82 : vector<8x128xf32>
    %c12 = arith.constant 12 : index
    %c0_55 = arith.constant 0 : index
    %c0_56 = arith.constant 0 : index
    %84 = vector.load %arg2[%c12, %c0_55, %c0_56] : memref<30x24x128xf32, #tpu.memory_space<vmem>>, vector<1x8x128xf32>
    %85 = vector.shape_cast %84 : vector<1x8x128xf32> to vector<8x128xf32>
    %c2_57 = arith.constant 2 : index
    %c0_58 = arith.constant 0 : index
    %c0_59 = arith.constant 0 : index
    %86 = vector.load %arg5[%c2_57, %c0_58, %c0_59] : memref<20x24x128xf32, #tpu.memory_space<vmem>>, vector<1x8x128xf32>
    %87 = vector.shape_cast %86 : vector<1x8x128xf32> to vector<8x128xf32>
    %88 = arith.subf %85, %87 : vector<8x128xf32>
    %89 = arith.mulf %88, %88 : vector<8x128xf32>
    %90 = arith.addf %83, %89 : vector<8x128xf32>
    %c13 = arith.constant 13 : index
    %c0_60 = arith.constant 0 : index
    %c0_61 = arith.constant 0 : index
    %91 = vector.load %arg2[%c13, %c0_60, %c0_61] : memref<30x24x128xf32, #tpu.memory_space<vmem>>, vector<1x8x128xf32>
    %92 = vector.shape_cast %91 : vector<1x8x128xf32> to vector<8x128xf32>
    %c3_62 = arith.constant 3 : index
    %c0_63 = arith.constant 0 : index
    %c0_64 = arith.constant 0 : index
    %93 = vector.load %arg5[%c3_62, %c0_63, %c0_64] : memref<20x24x128xf32, #tpu.memory_space<vmem>>, vector<1x8x128xf32>
    %94 = vector.shape_cast %93 : vector<1x8x128xf32> to vector<8x128xf32>
    %95 = arith.subf %92, %94 : vector<8x128xf32>
    %96 = arith.mulf %95, %95 : vector<8x128xf32>
    %97 = arith.addf %90, %96 : vector<8x128xf32>
    %c14 = arith.constant 14 : index
    %c0_65 = arith.constant 0 : index
    %c0_66 = arith.constant 0 : index
    %98 = vector.load %arg2[%c14, %c0_65, %c0_66] : memref<30x24x128xf32, #tpu.memory_space<vmem>>, vector<1x8x128xf32>
    %99 = vector.shape_cast %98 : vector<1x8x128xf32> to vector<8x128xf32>
    %c4_67 = arith.constant 4 : index
    %c0_68 = arith.constant 0 : index
    %c0_69 = arith.constant 0 : index
    %100 = vector.load %arg5[%c4_67, %c0_68, %c0_69] : memref<20x24x128xf32, #tpu.memory_space<vmem>>, vector<1x8x128xf32>
    %101 = vector.shape_cast %100 : vector<1x8x128xf32> to vector<8x128xf32>
    %102 = arith.subf %99, %101 : vector<8x128xf32>
    %103 = arith.mulf %102, %102 : vector<8x128xf32>
    %104 = arith.addf %97, %103 : vector<8x128xf32>
    %c15 = arith.constant 15 : index
    %c0_70 = arith.constant 0 : index
    %c0_71 = arith.constant 0 : index
    %105 = vector.load %arg2[%c15, %c0_70, %c0_71] : memref<30x24x128xf32, #tpu.memory_space<vmem>>, vector<1x8x128xf32>
    %106 = vector.shape_cast %105 : vector<1x8x128xf32> to vector<8x128xf32>
    %c5_72 = arith.constant 5 : index
    %c0_73 = arith.constant 0 : index
    %c0_74 = arith.constant 0 : index
    %107 = vector.load %arg5[%c5_72, %c0_73, %c0_74] : memref<20x24x128xf32, #tpu.memory_space<vmem>>, vector<1x8x128xf32>
    %108 = vector.shape_cast %107 : vector<1x8x128xf32> to vector<8x128xf32>
    %109 = arith.subf %106, %108 : vector<8x128xf32>
    %110 = arith.mulf %109, %109 : vector<8x128xf32>
    %111 = arith.addf %104, %110 : vector<8x128xf32>
    %c16 = arith.constant 16 : index
    %c0_75 = arith.constant 0 : index
    %c0_76 = arith.constant 0 : index
    %112 = vector.load %arg2[%c16, %c0_75, %c0_76] : memref<30x24x128xf32, #tpu.memory_space<vmem>>, vector<1x8x128xf32>
    %113 = vector.shape_cast %112 : vector<1x8x128xf32> to vector<8x128xf32>
    %c6_77 = arith.constant 6 : index
    %c0_78 = arith.constant 0 : index
    %c0_79 = arith.constant 0 : index
    %114 = vector.load %arg5[%c6_77, %c0_78, %c0_79] : memref<20x24x128xf32, #tpu.memory_space<vmem>>, vector<1x8x128xf32>
    %115 = vector.shape_cast %114 : vector<1x8x128xf32> to vector<8x128xf32>
    %116 = arith.subf %113, %115 : vector<8x128xf32>
    %117 = arith.mulf %116, %116 : vector<8x128xf32>
    %118 = arith.addf %111, %117 : vector<8x128xf32>
    %c17 = arith.constant 17 : index
    %c0_80 = arith.constant 0 : index
    %c0_81 = arith.constant 0 : index
    %119 = vector.load %arg2[%c17, %c0_80, %c0_81] : memref<30x24x128xf32, #tpu.memory_space<vmem>>, vector<1x8x128xf32>
    %120 = vector.shape_cast %119 : vector<1x8x128xf32> to vector<8x128xf32>
    %c7_82 = arith.constant 7 : index
    %c0_83 = arith.constant 0 : index
    %c0_84 = arith.constant 0 : index
    %121 = vector.load %arg5[%c7_82, %c0_83, %c0_84] : memref<20x24x128xf32, #tpu.memory_space<vmem>>, vector<1x8x128xf32>
    %122 = vector.shape_cast %121 : vector<1x8x128xf32> to vector<8x128xf32>
    %123 = arith.subf %120, %122 : vector<8x128xf32>
    %124 = arith.mulf %123, %123 : vector<8x128xf32>
    %125 = arith.addf %118, %124 : vector<8x128xf32>
    %c18 = arith.constant 18 : index
    %c0_85 = arith.constant 0 : index
    %c0_86 = arith.constant 0 : index
    %126 = vector.load %arg2[%c18, %c0_85, %c0_86] : memref<30x24x128xf32, #tpu.memory_space<vmem>>, vector<1x8x128xf32>
    %127 = vector.shape_cast %126 : vector<1x8x128xf32> to vector<8x128xf32>
    %c8_87 = arith.constant 8 : index
    %c0_88 = arith.constant 0 : index
    %c0_89 = arith.constant 0 : index
    %128 = vector.load %arg5[%c8_87, %c0_88, %c0_89] : memref<20x24x128xf32, #tpu.memory_space<vmem>>, vector<1x8x128xf32>
    %129 = vector.shape_cast %128 : vector<1x8x128xf32> to vector<8x128xf32>
    %130 = arith.subf %127, %129 : vector<8x128xf32>
    %131 = arith.mulf %130, %130 : vector<8x128xf32>
    %132 = arith.addf %125, %131 : vector<8x128xf32>
    %c19 = arith.constant 19 : index
    %c0_90 = arith.constant 0 : index
    %c0_91 = arith.constant 0 : index
    %133 = vector.load %arg2[%c19, %c0_90, %c0_91] : memref<30x24x128xf32, #tpu.memory_space<vmem>>, vector<1x8x128xf32>
    %134 = vector.shape_cast %133 : vector<1x8x128xf32> to vector<8x128xf32>
    %c9_92 = arith.constant 9 : index
    %c0_93 = arith.constant 0 : index
    %c0_94 = arith.constant 0 : index
    %135 = vector.load %arg5[%c9_92, %c0_93, %c0_94] : memref<20x24x128xf32, #tpu.memory_space<vmem>>, vector<1x8x128xf32>
    %136 = vector.shape_cast %135 : vector<1x8x128xf32> to vector<8x128xf32>
    %137 = arith.subf %134, %136 : vector<8x128xf32>
    %138 = arith.mulf %137, %137 : vector<8x128xf32>
    %139 = arith.addf %132, %138 : vector<8x128xf32>
    %c20 = arith.constant 20 : index
    %c0_95 = arith.constant 0 : index
    %c0_96 = arith.constant 0 : index
    %140 = vector.load %arg2[%c20, %c0_95, %c0_96] : memref<30x24x128xf32, #tpu.memory_space<vmem>>, vector<1x8x128xf32>
    %141 = vector.shape_cast %140 : vector<1x8x128xf32> to vector<8x128xf32>
    %c10_97 = arith.constant 10 : index
    %c0_98 = arith.constant 0 : index
    %c0_99 = arith.constant 0 : index
    %142 = vector.load %arg5[%c10_97, %c0_98, %c0_99] : memref<20x24x128xf32, #tpu.memory_space<vmem>>, vector<1x8x128xf32>
    %143 = vector.shape_cast %142 : vector<1x8x128xf32> to vector<8x128xf32>
    %144 = arith.subf %141, %143 : vector<8x128xf32>
    %145 = arith.mulf %144, %144 : vector<8x128xf32>
    %146 = arith.addf %139, %145 : vector<8x128xf32>
    %c21 = arith.constant 21 : index
    %c0_100 = arith.constant 0 : index
    %c0_101 = arith.constant 0 : index
    %147 = vector.load %arg2[%c21, %c0_100, %c0_101] : memref<30x24x128xf32, #tpu.memory_space<vmem>>, vector<1x8x128xf32>
    %148 = vector.shape_cast %147 : vector<1x8x128xf32> to vector<8x128xf32>
    %c11_102 = arith.constant 11 : index
    %c0_103 = arith.constant 0 : index
    %c0_104 = arith.constant 0 : index
    %149 = vector.load %arg5[%c11_102, %c0_103, %c0_104] : memref<20x24x128xf32, #tpu.memory_space<vmem>>, vector<1x8x128xf32>
    %150 = vector.shape_cast %149 : vector<1x8x128xf32> to vector<8x128xf32>
    %151 = arith.subf %148, %150 : vector<8x128xf32>
    %152 = arith.mulf %151, %151 : vector<8x128xf32>
    %153 = arith.addf %146, %152 : vector<8x128xf32>
    %c22 = arith.constant 22 : index
    %c0_105 = arith.constant 0 : index
    %c0_106 = arith.constant 0 : index
    %154 = vector.load %arg2[%c22, %c0_105, %c0_106] : memref<30x24x128xf32, #tpu.memory_space<vmem>>, vector<1x8x128xf32>
    %155 = vector.shape_cast %154 : vector<1x8x128xf32> to vector<8x128xf32>
    %c12_107 = arith.constant 12 : index
    %c0_108 = arith.constant 0 : index
    %c0_109 = arith.constant 0 : index
    %156 = vector.load %arg5[%c12_107, %c0_108, %c0_109] : memref<20x24x128xf32, #tpu.memory_space<vmem>>, vector<1x8x128xf32>
    %157 = vector.shape_cast %156 : vector<1x8x128xf32> to vector<8x128xf32>
    %158 = arith.subf %155, %157 : vector<8x128xf32>
    %159 = arith.mulf %158, %158 : vector<8x128xf32>
    %160 = arith.addf %153, %159 : vector<8x128xf32>
    %c23 = arith.constant 23 : index
    %c0_110 = arith.constant 0 : index
    %c0_111 = arith.constant 0 : index
    %161 = vector.load %arg2[%c23, %c0_110, %c0_111] : memref<30x24x128xf32, #tpu.memory_space<vmem>>, vector<1x8x128xf32>
    %162 = vector.shape_cast %161 : vector<1x8x128xf32> to vector<8x128xf32>
    %c13_112 = arith.constant 13 : index
    %c0_113 = arith.constant 0 : index
    %c0_114 = arith.constant 0 : index
    %163 = vector.load %arg5[%c13_112, %c0_113, %c0_114] : memref<20x24x128xf32, #tpu.memory_space<vmem>>, vector<1x8x128xf32>
    %164 = vector.shape_cast %163 : vector<1x8x128xf32> to vector<8x128xf32>
    %165 = arith.subf %162, %164 : vector<8x128xf32>
    %166 = arith.mulf %165, %165 : vector<8x128xf32>
    %167 = arith.addf %160, %166 : vector<8x128xf32>
    %c24 = arith.constant 24 : index
    %c0_115 = arith.constant 0 : index
    %c0_116 = arith.constant 0 : index
    %168 = vector.load %arg2[%c24, %c0_115, %c0_116] : memref<30x24x128xf32, #tpu.memory_space<vmem>>, vector<1x8x128xf32>
    %169 = vector.shape_cast %168 : vector<1x8x128xf32> to vector<8x128xf32>
    %c14_117 = arith.constant 14 : index
    %c0_118 = arith.constant 0 : index
    %c0_119 = arith.constant 0 : index
    %170 = vector.load %arg5[%c14_117, %c0_118, %c0_119] : memref<20x24x128xf32, #tpu.memory_space<vmem>>, vector<1x8x128xf32>
    %171 = vector.shape_cast %170 : vector<1x8x128xf32> to vector<8x128xf32>
    %172 = arith.subf %169, %171 : vector<8x128xf32>
    %173 = arith.mulf %172, %172 : vector<8x128xf32>
    %174 = arith.addf %167, %173 : vector<8x128xf32>
    %c25 = arith.constant 25 : index
    %c0_120 = arith.constant 0 : index
    %c0_121 = arith.constant 0 : index
    %175 = vector.load %arg2[%c25, %c0_120, %c0_121] : memref<30x24x128xf32, #tpu.memory_space<vmem>>, vector<1x8x128xf32>
    %176 = vector.shape_cast %175 : vector<1x8x128xf32> to vector<8x128xf32>
    %c15_122 = arith.constant 15 : index
    %c0_123 = arith.constant 0 : index
    %c0_124 = arith.constant 0 : index
    %177 = vector.load %arg5[%c15_122, %c0_123, %c0_124] : memref<20x24x128xf32, #tpu.memory_space<vmem>>, vector<1x8x128xf32>
    %178 = vector.shape_cast %177 : vector<1x8x128xf32> to vector<8x128xf32>
    %179 = arith.subf %176, %178 : vector<8x128xf32>
    %180 = arith.mulf %179, %179 : vector<8x128xf32>
    %181 = arith.addf %174, %180 : vector<8x128xf32>
    %c26 = arith.constant 26 : index
    %c0_125 = arith.constant 0 : index
    %c0_126 = arith.constant 0 : index
    %182 = vector.load %arg2[%c26, %c0_125, %c0_126] : memref<30x24x128xf32, #tpu.memory_space<vmem>>, vector<1x8x128xf32>
    %183 = vector.shape_cast %182 : vector<1x8x128xf32> to vector<8x128xf32>
    %c16_127 = arith.constant 16 : index
    %c0_128 = arith.constant 0 : index
    %c0_129 = arith.constant 0 : index
    %184 = vector.load %arg5[%c16_127, %c0_128, %c0_129] : memref<20x24x128xf32, #tpu.memory_space<vmem>>, vector<1x8x128xf32>
    %185 = vector.shape_cast %184 : vector<1x8x128xf32> to vector<8x128xf32>
    %186 = arith.subf %183, %185 : vector<8x128xf32>
    %187 = arith.mulf %186, %186 : vector<8x128xf32>
    %188 = arith.addf %181, %187 : vector<8x128xf32>
    %c27 = arith.constant 27 : index
    %c0_130 = arith.constant 0 : index
    %c0_131 = arith.constant 0 : index
    %189 = vector.load %arg2[%c27, %c0_130, %c0_131] : memref<30x24x128xf32, #tpu.memory_space<vmem>>, vector<1x8x128xf32>
    %190 = vector.shape_cast %189 : vector<1x8x128xf32> to vector<8x128xf32>
    %c17_132 = arith.constant 17 : index
    %c0_133 = arith.constant 0 : index
    %c0_134 = arith.constant 0 : index
    %191 = vector.load %arg5[%c17_132, %c0_133, %c0_134] : memref<20x24x128xf32, #tpu.memory_space<vmem>>, vector<1x8x128xf32>
    %192 = vector.shape_cast %191 : vector<1x8x128xf32> to vector<8x128xf32>
    %193 = arith.subf %190, %192 : vector<8x128xf32>
    %194 = arith.mulf %193, %193 : vector<8x128xf32>
    %195 = arith.addf %188, %194 : vector<8x128xf32>
    %c28 = arith.constant 28 : index
    %c0_135 = arith.constant 0 : index
    %c0_136 = arith.constant 0 : index
    %196 = vector.load %arg2[%c28, %c0_135, %c0_136] : memref<30x24x128xf32, #tpu.memory_space<vmem>>, vector<1x8x128xf32>
    %197 = vector.shape_cast %196 : vector<1x8x128xf32> to vector<8x128xf32>
    %c18_137 = arith.constant 18 : index
    %c0_138 = arith.constant 0 : index
    %c0_139 = arith.constant 0 : index
    %198 = vector.load %arg5[%c18_137, %c0_138, %c0_139] : memref<20x24x128xf32, #tpu.memory_space<vmem>>, vector<1x8x128xf32>
    %199 = vector.shape_cast %198 : vector<1x8x128xf32> to vector<8x128xf32>
    %200 = arith.subf %197, %199 : vector<8x128xf32>
    %201 = arith.mulf %200, %200 : vector<8x128xf32>
    %202 = arith.addf %195, %201 : vector<8x128xf32>
    %c29 = arith.constant 29 : index
    %c0_140 = arith.constant 0 : index
    %c0_141 = arith.constant 0 : index
    %203 = vector.load %arg2[%c29, %c0_140, %c0_141] : memref<30x24x128xf32, #tpu.memory_space<vmem>>, vector<1x8x128xf32>
    %204 = vector.shape_cast %203 : vector<1x8x128xf32> to vector<8x128xf32>
    %c19_142 = arith.constant 19 : index
    %c0_143 = arith.constant 0 : index
    %c0_144 = arith.constant 0 : index
    %205 = vector.load %arg5[%c19_142, %c0_143, %c0_144] : memref<20x24x128xf32, #tpu.memory_space<vmem>>, vector<1x8x128xf32>
    %206 = vector.shape_cast %205 : vector<1x8x128xf32> to vector<8x128xf32>
    %207 = arith.subf %204, %206 : vector<8x128xf32>
    %208 = arith.mulf %207, %207 : vector<8x128xf32>
    %209 = arith.addf %202, %208 : vector<8x128xf32>
    %c0_145 = arith.constant 0 : index
    %c0_146 = arith.constant 0 : index
    %210 = vector.load %arg10[%c0_145, %c0_146] : memref<8x128xf32, #tpu.memory_space<vmem>>, vector<8x128xf32>
    %cst_147 = arith.constant 0.000000e+00 : f32
    %211 = vector.broadcast %cst_147 : f32 to vector<8x128xf32>
    %212 = arith.select %65, %209, %211 : vector<8x128xi1>, vector<8x128xf32>
    %213 = arith.addf %210, %212 : vector<8x128xf32>
    %c0_148 = arith.constant 0 : index
    %c0_149 = arith.constant 0 : index
    %214 = vector.load %arg10[%c0_148, %c0_149] : memref<8x128xf32, #tpu.memory_space<vmem>>, vector<8x128xf32>
    tpu.vector_store %arg10[%c0_148, %c0_149], %213 {strides = array<i32>} : memref<8x128xf32, #tpu.memory_space<vmem>>, vector<8x128xf32>,
    %c0_150 = arith.constant 0 : index
    %c0_151 = arith.constant 0 : index
    %215 = vector.load %arg9[%c0_150, %c0_151] : memref<8x128xf32, #tpu.memory_space<vmem>>, vector<8x128xf32>
    %216 = arith.mulf %42, %42 : vector<8x128xf32>
    %217 = arith.mulf %52, %52 : vector<8x128xf32>
    %218 = arith.addf %216, %217 : vector<8x128xf32>
    %cst_152 = arith.constant 0.000000e+00 : f32
    %219 = vector.broadcast %cst_152 : f32 to vector<8x128xf32>
    %220 = arith.select %68, %218, %219 : vector<8x128xi1>, vector<8x128xf32>
    %221 = arith.addf %215, %220 : vector<8x128xf32>
    %c0_153 = arith.constant 0 : index
    %c0_154 = arith.constant 0 : index
    %222 = vector.load %arg9[%c0_153, %c0_154] : memref<8x128xf32, #tpu.memory_space<vmem>>, vector<8x128xf32>
    tpu.vector_store %arg9[%c0_153, %c0_154], %221 {strides = array<i32>} : memref<8x128xf32, #tpu.memory_space<vmem>>, vector<8x128xf32>,
    %223 = arith.addf %32, %54 : vector<8x128xf32>
    %cst_155 = arith.constant 0.142857149 : f32
    %224 = vector.broadcast %cst_155 : f32 to vector<8x128xf32>
    %225 = arith.mulf %223, %224 : vector<8x128xf32>
    %226 = arith.addf %29, %56 : vector<8x128xf32>
    %cst_156 = arith.constant 0.142857149 : f32
    %227 = vector.broadcast %cst_156 : f32 to vector<8x128xf32>
    %228 = arith.mulf %226, %227 : vector<8x128xf32>
    %cst_157 = arith.constant 5.000000e-01 : f32
    %229 = vector.broadcast %cst_157 : f32 to vector<8x128xf32>
    %230 = arith.mulf %58, %229 : vector<8x128xf32>
    %231 = arith.subf %225, %230 : vector<8x128xf32>
    %cst_158 = arith.constant 5.000000e-01 : f32
    %232 = vector.broadcast %cst_158 : f32 to vector<8x128xf32>
    %233 = arith.mulf %58, %232 : vector<8x128xf32>
    %234 = arith.addf %225, %233 : vector<8x128xf32>
    %cst_159 = arith.constant 5.000000e-01 : f32
    %235 = vector.broadcast %cst_159 : f32 to vector<8x128xf32>
    %236 = arith.mulf %60, %235 : vector<8x128xf32>
    %237 = arith.subf %228, %236 : vector<8x128xf32>
    %cst_160 = arith.constant 5.000000e-01 : f32
    %238 = vector.broadcast %cst_160 : f32 to vector<8x128xf32>
    %239 = arith.mulf %60, %238 : vector<8x128xf32>
    %240 = arith.addf %228, %239 : vector<8x128xf32>
    %241 = arith.subf %234, %231 : vector<8x128xf32>
    %242 = arith.subf %240, %237 : vector<8x128xf32>
    %243 = arith.mulf %241, %242 : vector<8x128xf32>
    %244 = arith.addf %32, %34 : vector<8x128xf32>
    %cst_161 = arith.constant 0.142857149 : f32
    %245 = vector.broadcast %cst_161 : f32 to vector<8x128xf32>
    %246 = arith.mulf %244, %245 : vector<8x128xf32>
    %247 = arith.addf %29, %36 : vector<8x128xf32>
    %cst_162 = arith.constant 0.142857149 : f32
    %248 = vector.broadcast %cst_162 : f32 to vector<8x128xf32>
    %249 = arith.mulf %247, %248 : vector<8x128xf32>
    %cst_163 = arith.constant 5.000000e-01 : f32
    %250 = vector.broadcast %cst_163 : f32 to vector<8x128xf32>
    %251 = arith.mulf %38, %250 : vector<8x128xf32>
    %252 = arith.subf %246, %251 : vector<8x128xf32>
    %cst_164 = arith.constant 5.000000e-01 : f32
    %253 = vector.broadcast %cst_164 : f32 to vector<8x128xf32>
    %254 = arith.mulf %38, %253 : vector<8x128xf32>
    %255 = arith.addf %246, %254 : vector<8x128xf32>
    %cst_165 = arith.constant 5.000000e-01 : f32
    %256 = vector.broadcast %cst_165 : f32 to vector<8x128xf32>
    %257 = arith.mulf %40, %256 : vector<8x128xf32>
    %258 = arith.subf %249, %257 : vector<8x128xf32>
    %cst_166 = arith.constant 5.000000e-01 : f32
    %259 = vector.broadcast %cst_166 : f32 to vector<8x128xf32>
    %260 = arith.mulf %40, %259 : vector<8x128xf32>
    %261 = arith.addf %249, %260 : vector<8x128xf32>
    %262 = arith.minimumf %255, %234 : vector<8x128xf32>
    %263 = arith.maximumf %252, %231 : vector<8x128xf32>
    %264 = arith.subf %262, %263 : vector<8x128xf32>
    %cst_167 = arith.constant 0.000000e+00 : f32
    %265 = vector.broadcast %cst_167 : f32 to vector<8x128xf32>
    %266 = arith.maximumf %264, %265 : vector<8x128xf32>
    %267 = arith.minimumf %261, %240 : vector<8x128xf32>
    %268 = arith.maximumf %258, %237 : vector<8x128xf32>
    %269 = arith.subf %267, %268 : vector<8x128xf32>
    %cst_168 = arith.constant 0.000000e+00 : f32
    %270 = vector.broadcast %cst_168 : f32 to vector<8x128xf32>
    %271 = arith.maximumf %269, %270 : vector<8x128xf32>
    %272 = arith.mulf %266, %271 : vector<8x128xf32>
    %273 = arith.subf %255, %252 : vector<8x128xf32>
    %274 = arith.subf %261, %258 : vector<8x128xf32>
    %275 = arith.mulf %273, %274 : vector<8x128xf32>
    %276 = arith.addf %275, %243 : vector<8x128xf32>
    %277 = arith.subf %276, %272 : vector<8x128xf32>
    %cst_169 = arith.constant 9.99999971E-10 : f32
    %278 = vector.broadcast %cst_169 : f32 to vector<8x128xf32>
    %279 = arith.addf %277, %278 : vector<8x128xf32>
    %280 = arith.divf %272, %279 : vector<8x128xf32>
    %281 = arith.addf %32, %44 : vector<8x128xf32>
    %cst_170 = arith.constant 0.142857149 : f32
    %282 = vector.broadcast %cst_170 : f32 to vector<8x128xf32>
    %283 = arith.mulf %281, %282 : vector<8x128xf32>
    %284 = arith.addf %29, %46 : vector<8x128xf32>
    %cst_171 = arith.constant 0.142857149 : f32
    %285 = vector.broadcast %cst_171 : f32 to vector<8x128xf32>
    %286 = arith.mulf %284, %285 : vector<8x128xf32>
    %cst_172 = arith.constant 5.000000e-01 : f32
    %287 = vector.broadcast %cst_172 : f32 to vector<8x128xf32>
    %288 = arith.mulf %48, %287 : vector<8x128xf32>
    %289 = arith.subf %283, %288 : vector<8x128xf32>
    %cst_173 = arith.constant 5.000000e-01 : f32
    %290 = vector.broadcast %cst_173 : f32 to vector<8x128xf32>
    %291 = arith.mulf %48, %290 : vector<8x128xf32>
    %292 = arith.addf %283, %291 : vector<8x128xf32>
    %cst_174 = arith.constant 5.000000e-01 : f32
    %293 = vector.broadcast %cst_174 : f32 to vector<8x128xf32>
    %294 = arith.mulf %50, %293 : vector<8x128xf32>
    %295 = arith.subf %286, %294 : vector<8x128xf32>
    %cst_175 = arith.constant 5.000000e-01 : f32
    %296 = vector.broadcast %cst_175 : f32 to vector<8x128xf32>
    %297 = arith.mulf %50, %296 : vector<8x128xf32>
    %298 = arith.addf %286, %297 : vector<8x128xf32>
    %299 = arith.minimumf %292, %234 : vector<8x128xf32>
    %300 = arith.maximumf %289, %231 : vector<8x128xf32>
    %301 = arith.subf %299, %300 : vector<8x128xf32>
    %cst_176 = arith.constant 0.000000e+00 : f32
    %302 = vector.broadcast %cst_176 : f32 to vector<8x128xf32>
    %303 = arith.maximumf %301, %302 : vector<8x128xf32>
    %304 = arith.minimumf %298, %240 : vector<8x128xf32>
    %305 = arith.maximumf %295, %237 : vector<8x128xf32>
    %306 = arith.subf %304, %305 : vector<8x128xf32>
    %cst_177 = arith.constant 0.000000e+00 : f32
    %307 = vector.broadcast %cst_177 : f32 to vector<8x128xf32>
    %308 = arith.maximumf %306, %307 : vector<8x128xf32>
    %309 = arith.mulf %303, %308 : vector<8x128xf32>
    %310 = arith.subf %292, %289 : vector<8x128xf32>
    %311 = arith.subf %298, %295 : vector<8x128xf32>
    %312 = arith.mulf %310, %311 : vector<8x128xf32>
    %313 = arith.addf %312, %243 : vector<8x128xf32>
    %314 = arith.subf %313, %309 : vector<8x128xf32>
    %cst_178 = arith.constant 9.99999971E-10 : f32
    %315 = vector.broadcast %cst_178 : f32 to vector<8x128xf32>
    %316 = arith.addf %314, %315 : vector<8x128xf32>
    %317 = arith.divf %309, %316 : vector<8x128xf32>
    %318 = arith.cmpf ogt, %317, %280 : vector<8x128xf32>
    %319 = arith.maximumf %280, %317 : vector<8x128xf32>
    %320 = arith.select %318, %44, %34 : vector<8x128xi1>, vector<8x128xf32>
    %321 = arith.select %318, %46, %36 : vector<8x128xi1>, vector<8x128xf32>
    %322 = arith.select %318, %48, %38 : vector<8x128xi1>, vector<8x128xf32>
    %323 = arith.select %318, %50, %40 : vector<8x128xi1>, vector<8x128xf32>
    %324 = arith.select %318, %52, %42 : vector<8x128xi1>, vector<8x128xf32>
    %325 = arith.subf %320, %54 : vector<8x128xf32>
    %326 = arith.mulf %325, %325 : vector<8x128xf32>
    %327 = arith.subf %321, %56 : vector<8x128xf32>
    %328 = arith.mulf %327, %327 : vector<8x128xf32>
    %329 = arith.addf %326, %328 : vector<8x128xf32>
    %cst_179 = arith.constant 9.99999997E-7 : f32
    %330 = vector.broadcast %cst_179 : f32 to vector<8x128xf32>
    %331 = arith.maximumf %322, %330 : vector<8x128xf32>
    %332 = math.sqrt %331 : vector<8x128xf32>
    %cst_180 = arith.constant 9.99999997E-7 : f32
    %333 = vector.broadcast %cst_180 : f32 to vector<8x128xf32>
    %334 = arith.maximumf %58, %333 : vector<8x128xf32>
    %335 = math.sqrt %334 : vector<8x128xf32>
    %336 = arith.subf %332, %335 : vector<8x128xf32>
    %337 = arith.mulf %336, %336 : vector<8x128xf32>
    %cst_181 = arith.constant 9.99999997E-7 : f32
    %338 = vector.broadcast %cst_181 : f32 to vector<8x128xf32>
    %339 = arith.maximumf %323, %338 : vector<8x128xf32>
    %340 = math.sqrt %339 : vector<8x128xf32>
    %cst_182 = arith.constant 9.99999997E-7 : f32
    %341 = vector.broadcast %cst_182 : f32 to vector<8x128xf32>
    %342 = arith.maximumf %60, %341 : vector<8x128xf32>
    %343 = math.sqrt %342 : vector<8x128xf32>
    %344 = arith.subf %340, %343 : vector<8x128xf32>
    %345 = arith.mulf %344, %344 : vector<8x128xf32>
    %346 = arith.addf %337, %345 : vector<8x128xf32>
    %c0_183 = arith.constant 0 : index
    %c0_184 = arith.constant 0 : index
    %347 = vector.load %arg7[%c0_183, %c0_184] : memref<8x128xf32, #tpu.memory_space<vmem>>, vector<8x128xf32>
    %348 = arith.addf %329, %346 : vector<8x128xf32>
    %cst_185 = arith.constant 0.000000e+00 : f32
    %349 = vector.broadcast %cst_185 : f32 to vector<8x128xf32>
    %350 = arith.select %65, %348, %349 : vector<8x128xi1>, vector<8x128xf32>
    %351 = arith.addf %347, %350 : vector<8x128xf32>
    %c0_186 = arith.constant 0 : index
    %c0_187 = arith.constant 0 : index
    %352 = vector.load %arg7[%c0_186, %c0_187] : memref<8x128xf32, #tpu.memory_space<vmem>>, vector<8x128xf32>
    tpu.vector_store %arg7[%c0_186, %c0_187], %351 {strides = array<i32>} : memref<8x128xf32, #tpu.memory_space<vmem>>, vector<8x128xf32>,
    %c0_188 = arith.constant 0 : index
    %c0_189 = arith.constant 0 : index
    %353 = vector.load %arg8[%c0_188, %c0_189] : memref<8x128xf32, #tpu.memory_space<vmem>>, vector<8x128xf32>
    %354 = arith.subf %324, %319 : vector<8x128xf32>
    %355 = arith.mulf %354, %354 : vector<8x128xf32>
    %cst_190 = arith.constant 0.000000e+00 : f32
    %356 = vector.broadcast %cst_190 : f32 to vector<8x128xf32>
    %357 = arith.select %65, %355, %356 : vector<8x128xi1>, vector<8x128xf32>
    %358 = arith.addf %353, %357 : vector<8x128xf32>
    %c0_191 = arith.constant 0 : index
    %c0_192 = arith.constant 0 : index
    %359 = vector.load %arg8[%c0_191, %c0_192] : memref<8x128xf32, #tpu.memory_space<vmem>>, vector<8x128xf32>
    tpu.vector_store %arg8[%c0_191, %c0_192], %358 {strides = array<i32>} : memref<8x128xf32, #tpu.memory_space<vmem>>, vector<8x128xf32>,
    %c8_i32 = arith.constant 8 : i32
    %360 = arith.addi %5, %c8_i32 : i32
    %361 = vector.broadcast %360 : i32 to vector<8x128xi32>
    %362 = arith.addi %361, %6 : vector<8x128xi32>
    %c128_i32_193 = arith.constant 128 : i32
    %363 = vector.broadcast %c128_i32_193 : i32 to vector<8x128xi32>
    %364 = arith.muli %362, %363 : vector<8x128xi32>
    %365 = arith.addi %364, %7 : vector<8x128xi32>
    %c2940_i32_194 = arith.constant 2940 : i32
    %366 = vector.broadcast %c2940_i32_194 : i32 to vector<8x128xi32>
    %367 = arith.cmpi slt, %365, %366 : vector<8x128xi32>
    %368 = arith.sitofp %365 : vector<8x128xi32> to vector<8x128xf32>
    %cst_195 = arith.constant 5.000000e-01 : f32
    %369 = vector.broadcast %cst_195 : f32 to vector<8x128xf32>
    %370 = arith.addf %368, %369 : vector<8x128xf32>
    %cst_196 = arith.constant 0.0204081628 : f32
    %371 = vector.broadcast %cst_196 : f32 to vector<8x128xf32>
    %372 = arith.mulf %370, %371 : vector<8x128xf32>
    %373 = math.floor %372 : vector<8x128xf32>
    %cst_197 = arith.constant 4.900000e+01 : f32
    %374 = vector.broadcast %cst_197 : f32 to vector<8x128xf32>
    %375 = arith.mulf %374, %373 : vector<8x128xf32>
    %376 = arith.subf %368, %375 : vector<8x128xf32>
    %cst_198 = arith.constant 5.000000e-01 : f32
    %377 = vector.broadcast %cst_198 : f32 to vector<8x128xf32>
    %378 = arith.addf %376, %377 : vector<8x128xf32>
    %cst_199 = arith.constant 0.142857149 : f32
    %379 = vector.broadcast %cst_199 : f32 to vector<8x128xf32>
    %380 = arith.mulf %378, %379 : vector<8x128xf32>
    %381 = math.floor %380 : vector<8x128xf32>
    %cst_200 = arith.constant 7.000000e+00 : f32
    %382 = vector.broadcast %cst_200 : f32 to vector<8x128xf32>
    %383 = arith.mulf %381, %382 : vector<8x128xf32>
    %384 = arith.subf %376, %383 : vector<8x128xf32>
    %c0_201 = arith.constant 0 : index
    %c8_202 = arith.constant 8 : index
    %c0_203 = arith.constant 0 : index
    %385 = vector.load %arg2[%c0_201, %c8_202, %c0_203] : memref<30x24x128xf32, #tpu.memory_space<vmem>>, vector<1x8x128xf32>
    %386 = vector.shape_cast %385 : vector<1x8x128xf32> to vector<8x128xf32>
    %c1_204 = arith.constant 1 : index
    %c8_205 = arith.constant 8 : index
    %c0_206 = arith.constant 0 : index
    %387 = vector.load %arg2[%c1_204, %c8_205, %c0_206] : memref<30x24x128xf32, #tpu.memory_space<vmem>>, vector<1x8x128xf32>
    %388 = vector.shape_cast %387 : vector<1x8x128xf32> to vector<8x128xf32>
    %c2_207 = arith.constant 2 : index
    %c8_208 = arith.constant 8 : index
    %c0_209 = arith.constant 0 : index
    %389 = vector.load %arg2[%c2_207, %c8_208, %c0_209] : memref<30x24x128xf32, #tpu.memory_space<vmem>>, vector<1x8x128xf32>
    %390 = vector.shape_cast %389 : vector<1x8x128xf32> to vector<8x128xf32>
    %c3_210 = arith.constant 3 : index
    %c8_211 = arith.constant 8 : index
    %c0_212 = arith.constant 0 : index
    %391 = vector.load %arg2[%c3_210, %c8_211, %c0_212] : memref<30x24x128xf32, #tpu.memory_space<vmem>>, vector<1x8x128xf32>
    %392 = vector.shape_cast %391 : vector<1x8x128xf32> to vector<8x128xf32>
    %c4_213 = arith.constant 4 : index
    %c8_214 = arith.constant 8 : index
    %c0_215 = arith.constant 0 : index
    %393 = vector.load %arg2[%c4_213, %c8_214, %c0_215] : memref<30x24x128xf32, #tpu.memory_space<vmem>>, vector<1x8x128xf32>
    %394 = vector.shape_cast %393 : vector<1x8x128xf32> to vector<8x128xf32>
    %c5_216 = arith.constant 5 : index
    %c8_217 = arith.constant 8 : index
    %c0_218 = arith.constant 0 : index
    %395 = vector.load %arg2[%c5_216, %c8_217, %c0_218] : memref<30x24x128xf32, #tpu.memory_space<vmem>>, vector<1x8x128xf32>
    %396 = vector.shape_cast %395 : vector<1x8x128xf32> to vector<8x128xf32>
    %c6_219 = arith.constant 6 : index
    %c8_220 = arith.constant 8 : index
    %c0_221 = arith.constant 0 : index
    %397 = vector.load %arg2[%c6_219, %c8_220, %c0_221] : memref<30x24x128xf32, #tpu.memory_space<vmem>>, vector<1x8x128xf32>
    %398 = vector.shape_cast %397 : vector<1x8x128xf32> to vector<8x128xf32>
    %c7_222 = arith.constant 7 : index
    %c8_223 = arith.constant 8 : index
    %c0_224 = arith.constant 0 : index
    %399 = vector.load %arg2[%c7_222, %c8_223, %c0_224] : memref<30x24x128xf32, #tpu.memory_space<vmem>>, vector<1x8x128xf32>
    %400 = vector.shape_cast %399 : vector<1x8x128xf32> to vector<8x128xf32>
    %c8_225 = arith.constant 8 : index
    %c8_226 = arith.constant 8 : index
    %c0_227 = arith.constant 0 : index
    %401 = vector.load %arg2[%c8_225, %c8_226, %c0_227] : memref<30x24x128xf32, #tpu.memory_space<vmem>>, vector<1x8x128xf32>
    %402 = vector.shape_cast %401 : vector<1x8x128xf32> to vector<8x128xf32>
    %c9_228 = arith.constant 9 : index
    %c8_229 = arith.constant 8 : index
    %c0_230 = arith.constant 0 : index
    %403 = vector.load %arg2[%c9_228, %c8_229, %c0_230] : memref<30x24x128xf32, #tpu.memory_space<vmem>>, vector<1x8x128xf32>
    %404 = vector.shape_cast %403 : vector<1x8x128xf32> to vector<8x128xf32>
    %c0_231 = arith.constant 0 : index
    %c8_232 = arith.constant 8 : index
    %c0_233 = arith.constant 0 : index
    %405 = vector.load %arg3[%c0_231, %c8_232, %c0_233] : memref<4x24x128xf32, #tpu.memory_space<vmem>>, vector<1x8x128xf32>
    %406 = vector.shape_cast %405 : vector<1x8x128xf32> to vector<8x128xf32>
    %c1_234 = arith.constant 1 : index
    %c8_235 = arith.constant 8 : index
    %c0_236 = arith.constant 0 : index
    %407 = vector.load %arg3[%c1_234, %c8_235, %c0_236] : memref<4x24x128xf32, #tpu.memory_space<vmem>>, vector<1x8x128xf32>
    %408 = vector.shape_cast %407 : vector<1x8x128xf32> to vector<8x128xf32>
    %c2_237 = arith.constant 2 : index
    %c8_238 = arith.constant 8 : index
    %c0_239 = arith.constant 0 : index
    %409 = vector.load %arg3[%c2_237, %c8_238, %c0_239] : memref<4x24x128xf32, #tpu.memory_space<vmem>>, vector<1x8x128xf32>
    %410 = vector.shape_cast %409 : vector<1x8x128xf32> to vector<8x128xf32>
    %c3_240 = arith.constant 3 : index
    %c8_241 = arith.constant 8 : index
    %c0_242 = arith.constant 0 : index
    %411 = vector.load %arg3[%c3_240, %c8_241, %c0_242] : memref<4x24x128xf32, #tpu.memory_space<vmem>>, vector<1x8x128xf32>
    %412 = vector.shape_cast %411 : vector<1x8x128xf32> to vector<8x128xf32>
    %c0_243 = arith.constant 0 : index
    %c8_244 = arith.constant 8 : index
    %c0_245 = arith.constant 0 : index
    %413 = vector.load %arg4[%c0_243, %c8_244, %c0_245] : memref<1x24x128xf32, #tpu.memory_space<vmem>>, vector<1x8x128xf32>
    %414 = vector.shape_cast %413 : vector<1x8x128xf32> to vector<8x128xf32>
    %cst_246 = arith.constant 5.000000e-01 : f32
    %415 = vector.broadcast %cst_246 : f32 to vector<8x128xf32>
    %416 = arith.cmpf ogt, %414, %415 : vector<8x128xf32>
    %417 = arith.andi %416, %367 : vector<8x128xi1>
    %cst_247 = arith.constant 5.000000e-01 : f32
    %418 = vector.broadcast %cst_247 : f32 to vector<8x128xf32>
    %419 = arith.cmpf ole, %414, %418 : vector<8x128xf32>
    %420 = arith.andi %419, %367 : vector<8x128xi1>
    %cst_248 = arith.constant 0.000000e+00 : f32
    %421 = vector.broadcast %cst_248 : f32 to vector<8x128xf32>
    %c10_249 = arith.constant 10 : index
    %c8_250 = arith.constant 8 : index
    %c0_251 = arith.constant 0 : index
    %422 = vector.load %arg2[%c10_249, %c8_250, %c0_251] : memref<30x24x128xf32, #tpu.memory_space<vmem>>, vector<1x8x128xf32>
    %423 = vector.shape_cast %422 : vector<1x8x128xf32> to vector<8x128xf32>
    %c0_252 = arith.constant 0 : index
    %c8_253 = arith.constant 8 : index
    %c0_254 = arith.constant 0 : index
    %424 = vector.load %arg5[%c0_252, %c8_253, %c0_254] : memref<20x24x128xf32, #tpu.memory_space<vmem>>, vector<1x8x128xf32>
    %425 = vector.shape_cast %424 : vector<1x8x128xf32> to vector<8x128xf32>
    %426 = arith.subf %423, %425 : vector<8x128xf32>
    %427 = arith.mulf %426, %426 : vector<8x128xf32>
    %428 = arith.addf %421, %427 : vector<8x128xf32>
    %c11_255 = arith.constant 11 : index
    %c8_256 = arith.constant 8 : index
    %c0_257 = arith.constant 0 : index
    %429 = vector.load %arg2[%c11_255, %c8_256, %c0_257] : memref<30x24x128xf32, #tpu.memory_space<vmem>>, vector<1x8x128xf32>
    %430 = vector.shape_cast %429 : vector<1x8x128xf32> to vector<8x128xf32>
    %c1_258 = arith.constant 1 : index
    %c8_259 = arith.constant 8 : index
    %c0_260 = arith.constant 0 : index
    %431 = vector.load %arg5[%c1_258, %c8_259, %c0_260] : memref<20x24x128xf32, #tpu.memory_space<vmem>>, vector<1x8x128xf32>
    %432 = vector.shape_cast %431 : vector<1x8x128xf32> to vector<8x128xf32>
    %433 = arith.subf %430, %432 : vector<8x128xf32>
    %434 = arith.mulf %433, %433 : vector<8x128xf32>
    %435 = arith.addf %428, %434 : vector<8x128xf32>
    %c12_261 = arith.constant 12 : index
    %c8_262 = arith.constant 8 : index
    %c0_263 = arith.constant 0 : index
    %436 = vector.load %arg2[%c12_261, %c8_262, %c0_263] : memref<30x24x128xf32, #tpu.memory_space<vmem>>, vector<1x8x128xf32>
    %437 = vector.shape_cast %436 : vector<1x8x128xf32> to vector<8x128xf32>
    %c2_264 = arith.constant 2 : index
    %c8_265 = arith.constant 8 : index
    %c0_266 = arith.constant 0 : index
    %438 = vector.load %arg5[%c2_264, %c8_265, %c0_266] : memref<20x24x128xf32, #tpu.memory_space<vmem>>, vector<1x8x128xf32>
    %439 = vector.shape_cast %438 : vector<1x8x128xf32> to vector<8x128xf32>
    %440 = arith.subf %437, %439 : vector<8x128xf32>
    %441 = arith.mulf %440, %440 : vector<8x128xf32>
    %442 = arith.addf %435, %441 : vector<8x128xf32>
    %c13_267 = arith.constant 13 : index
    %c8_268 = arith.constant 8 : index
    %c0_269 = arith.constant 0 : index
    %443 = vector.load %arg2[%c13_267, %c8_268, %c0_269] : memref<30x24x128xf32, #tpu.memory_space<vmem>>, vector<1x8x128xf32>
    %444 = vector.shape_cast %443 : vector<1x8x128xf32> to vector<8x128xf32>
    %c3_270 = arith.constant 3 : index
    %c8_271 = arith.constant 8 : index
    %c0_272 = arith.constant 0 : index
    %445 = vector.load %arg5[%c3_270, %c8_271, %c0_272] : memref<20x24x128xf32, #tpu.memory_space<vmem>>, vector<1x8x128xf32>
    %446 = vector.shape_cast %445 : vector<1x8x128xf32> to vector<8x128xf32>
    %447 = arith.subf %444, %446 : vector<8x128xf32>
    %448 = arith.mulf %447, %447 : vector<8x128xf32>
    %449 = arith.addf %442, %448 : vector<8x128xf32>
    %c14_273 = arith.constant 14 : index
    %c8_274 = arith.constant 8 : index
    %c0_275 = arith.constant 0 : index
    %450 = vector.load %arg2[%c14_273, %c8_274, %c0_275] : memref<30x24x128xf32, #tpu.memory_space<vmem>>, vector<1x8x128xf32>
    %451 = vector.shape_cast %450 : vector<1x8x128xf32> to vector<8x128xf32>
    %c4_276 = arith.constant 4 : index
    %c8_277 = arith.constant 8 : index
    %c0_278 = arith.constant 0 : index
    %452 = vector.load %arg5[%c4_276, %c8_277, %c0_278] : memref<20x24x128xf32, #tpu.memory_space<vmem>>, vector<1x8x128xf32>
    %453 = vector.shape_cast %452 : vector<1x8x128xf32> to vector<8x128xf32>
    %454 = arith.subf %451, %453 : vector<8x128xf32>
    %455 = arith.mulf %454, %454 : vector<8x128xf32>
    %456 = arith.addf %449, %455 : vector<8x128xf32>
    %c15_279 = arith.constant 15 : index
    %c8_280 = arith.constant 8 : index
    %c0_281 = arith.constant 0 : index
    %457 = vector.load %arg2[%c15_279, %c8_280, %c0_281] : memref<30x24x128xf32, #tpu.memory_space<vmem>>, vector<1x8x128xf32>
    %458 = vector.shape_cast %457 : vector<1x8x128xf32> to vector<8x128xf32>
    %c5_282 = arith.constant 5 : index
    %c8_283 = arith.constant 8 : index
    %c0_284 = arith.constant 0 : index
    %459 = vector.load %arg5[%c5_282, %c8_283, %c0_284] : memref<20x24x128xf32, #tpu.memory_space<vmem>>, vector<1x8x128xf32>
    %460 = vector.shape_cast %459 : vector<1x8x128xf32> to vector<8x128xf32>
    %461 = arith.subf %458, %460 : vector<8x128xf32>
    %462 = arith.mulf %461, %461 : vector<8x128xf32>
    %463 = arith.addf %456, %462 : vector<8x128xf32>
    %c16_285 = arith.constant 16 : index
    %c8_286 = arith.constant 8 : index
    %c0_287 = arith.constant 0 : index
    %464 = vector.load %arg2[%c16_285, %c8_286, %c0_287] : memref<30x24x128xf32, #tpu.memory_space<vmem>>, vector<1x8x128xf32>
    %465 = vector.shape_cast %464 : vector<1x8x128xf32> to vector<8x128xf32>
    %c6_288 = arith.constant 6 : index
    %c8_289 = arith.constant 8 : index
    %c0_290 = arith.constant 0 : index
    %466 = vector.load %arg5[%c6_288, %c8_289, %c0_290] : memref<20x24x128xf32, #tpu.memory_space<vmem>>, vector<1x8x128xf32>
    %467 = vector.shape_cast %466 : vector<1x8x128xf32> to vector<8x128xf32>
    %468 = arith.subf %465, %467 : vector<8x128xf32>
    %469 = arith.mulf %468, %468 : vector<8x128xf32>
    %470 = arith.addf %463, %469 : vector<8x128xf32>
    %c17_291 = arith.constant 17 : index
    %c8_292 = arith.constant 8 : index
    %c0_293 = arith.constant 0 : index
    %471 = vector.load %arg2[%c17_291, %c8_292, %c0_293] : memref<30x24x128xf32, #tpu.memory_space<vmem>>, vector<1x8x128xf32>
    %472 = vector.shape_cast %471 : vector<1x8x128xf32> to vector<8x128xf32>
    %c7_294 = arith.constant 7 : index
    %c8_295 = arith.constant 8 : index
    %c0_296 = arith.constant 0 : index
    %473 = vector.load %arg5[%c7_294, %c8_295, %c0_296] : memref<20x24x128xf32, #tpu.memory_space<vmem>>, vector<1x8x128xf32>
    %474 = vector.shape_cast %473 : vector<1x8x128xf32> to vector<8x128xf32>
    %475 = arith.subf %472, %474 : vector<8x128xf32>
    %476 = arith.mulf %475, %475 : vector<8x128xf32>
    %477 = arith.addf %470, %476 : vector<8x128xf32>
    %c18_297 = arith.constant 18 : index
    %c8_298 = arith.constant 8 : index
    %c0_299 = arith.constant 0 : index
    %478 = vector.load %arg2[%c18_297, %c8_298, %c0_299] : memref<30x24x128xf32, #tpu.memory_space<vmem>>, vector<1x8x128xf32>
    %479 = vector.shape_cast %478 : vector<1x8x128xf32> to vector<8x128xf32>
    %c8_300 = arith.constant 8 : index
    %c8_301 = arith.constant 8 : index
    %c0_302 = arith.constant 0 : index
    %480 = vector.load %arg5[%c8_300, %c8_301, %c0_302] : memref<20x24x128xf32, #tpu.memory_space<vmem>>, vector<1x8x128xf32>
    %481 = vector.shape_cast %480 : vector<1x8x128xf32> to vector<8x128xf32>
    %482 = arith.subf %479, %481 : vector<8x128xf32>
    %483 = arith.mulf %482, %482 : vector<8x128xf32>
    %484 = arith.addf %477, %483 : vector<8x128xf32>
    %c19_303 = arith.constant 19 : index
    %c8_304 = arith.constant 8 : index
    %c0_305 = arith.constant 0 : index
    %485 = vector.load %arg2[%c19_303, %c8_304, %c0_305] : memref<30x24x128xf32, #tpu.memory_space<vmem>>, vector<1x8x128xf32>
    %486 = vector.shape_cast %485 : vector<1x8x128xf32> to vector<8x128xf32>
    %c9_306 = arith.constant 9 : index
    %c8_307 = arith.constant 8 : index
    %c0_308 = arith.constant 0 : index
    %487 = vector.load %arg5[%c9_306, %c8_307, %c0_308] : memref<20x24x128xf32, #tpu.memory_space<vmem>>, vector<1x8x128xf32>
    %488 = vector.shape_cast %487 : vector<1x8x128xf32> to vector<8x128xf32>
    %489 = arith.subf %486, %488 : vector<8x128xf32>
    %490 = arith.mulf %489, %489 : vector<8x128xf32>
    %491 = arith.addf %484, %490 : vector<8x128xf32>
    %c20_309 = arith.constant 20 : index
    %c8_310 = arith.constant 8 : index
    %c0_311 = arith.constant 0 : index
    %492 = vector.load %arg2[%c20_309, %c8_310, %c0_311] : memref<30x24x128xf32, #tpu.memory_space<vmem>>, vector<1x8x128xf32>
    %493 = vector.shape_cast %492 : vector<1x8x128xf32> to vector<8x128xf32>
    %c10_312 = arith.constant 10 : index
    %c8_313 = arith.constant 8 : index
    %c0_314 = arith.constant 0 : index
    %494 = vector.load %arg5[%c10_312, %c8_313, %c0_314] : memref<20x24x128xf32, #tpu.memory_space<vmem>>, vector<1x8x128xf32>
    %495 = vector.shape_cast %494 : vector<1x8x128xf32> to vector<8x128xf32>
    %496 = arith.subf %493, %495 : vector<8x128xf32>
    %497 = arith.mulf %496, %496 : vector<8x128xf32>
    %498 = arith.addf %491, %497 : vector<8x128xf32>
    %c21_315 = arith.constant 21 : index
    %c8_316 = arith.constant 8 : index
    %c0_317 = arith.constant 0 : index
    %499 = vector.load %arg2[%c21_315, %c8_316, %c0_317] : memref<30x24x128xf32, #tpu.memory_space<vmem>>, vector<1x8x128xf32>
    %500 = vector.shape_cast %499 : vector<1x8x128xf32> to vector<8x128xf32>
    %c11_318 = arith.constant 11 : index
    %c8_319 = arith.constant 8 : index
    %c0_320 = arith.constant 0 : index
    %501 = vector.load %arg5[%c11_318, %c8_319, %c0_320] : memref<20x24x128xf32, #tpu.memory_space<vmem>>, vector<1x8x128xf32>
    %502 = vector.shape_cast %501 : vector<1x8x128xf32> to vector<8x128xf32>
    %503 = arith.subf %500, %502 : vector<8x128xf32>
    %504 = arith.mulf %503, %503 : vector<8x128xf32>
    %505 = arith.addf %498, %504 : vector<8x128xf32>
    %c22_321 = arith.constant 22 : index
    %c8_322 = arith.constant 8 : index
    %c0_323 = arith.constant 0 : index
    %506 = vector.load %arg2[%c22_321, %c8_322, %c0_323] : memref<30x24x128xf32, #tpu.memory_space<vmem>>, vector<1x8x128xf32>
    %507 = vector.shape_cast %506 : vector<1x8x128xf32> to vector<8x128xf32>
    %c12_324 = arith.constant 12 : index
    %c8_325 = arith.constant 8 : index
    %c0_326 = arith.constant 0 : index
    %508 = vector.load %arg5[%c12_324, %c8_325, %c0_326] : memref<20x24x128xf32, #tpu.memory_space<vmem>>, vector<1x8x128xf32>
    %509 = vector.shape_cast %508 : vector<1x8x128xf32> to vector<8x128xf32>
    %510 = arith.subf %507, %509 : vector<8x128xf32>
    %511 = arith.mulf %510, %510 : vector<8x128xf32>
    %512 = arith.addf %505, %511 : vector<8x128xf32>
    %c23_327 = arith.constant 23 : index
    %c8_328 = arith.constant 8 : index
    %c0_329 = arith.constant 0 : index
    %513 = vector.load %arg2[%c23_327, %c8_328, %c0_329] : memref<30x24x128xf32, #tpu.memory_space<vmem>>, vector<1x8x128xf32>
    %514 = vector.shape_cast %513 : vector<1x8x128xf32> to vector<8x128xf32>
    %c13_330 = arith.constant 13 : index
    %c8_331 = arith.constant 8 : index
    %c0_332 = arith.constant 0 : index
    %515 = vector.load %arg5[%c13_330, %c8_331, %c0_332] : memref<20x24x128xf32, #tpu.memory_space<vmem>>, vector<1x8x128xf32>
    %516 = vector.shape_cast %515 : vector<1x8x128xf32> to vector<8x128xf32>
    %517 = arith.subf %514, %516 : vector<8x128xf32>
    %518 = arith.mulf %517, %517 : vector<8x128xf32>
    %519 = arith.addf %512, %518 : vector<8x128xf32>
    %c24_333 = arith.constant 24 : index
    %c8_334 = arith.constant 8 : index
    %c0_335 = arith.constant 0 : index
    %520 = vector.load %arg2[%c24_333, %c8_334, %c0_335] : memref<30x24x128xf32, #tpu.memory_space<vmem>>, vector<1x8x128xf32>
    %521 = vector.shape_cast %520 : vector<1x8x128xf32> to vector<8x128xf32>
    %c14_336 = arith.constant 14 : index
    %c8_337 = arith.constant 8 : index
    %c0_338 = arith.constant 0 : index
    %522 = vector.load %arg5[%c14_336, %c8_337, %c0_338] : memref<20x24x128xf32, #tpu.memory_space<vmem>>, vector<1x8x128xf32>
    %523 = vector.shape_cast %522 : vector<1x8x128xf32> to vector<8x128xf32>
    %524 = arith.subf %521, %523 : vector<8x128xf32>
    %525 = arith.mulf %524, %524 : vector<8x128xf32>
    %526 = arith.addf %519, %525 : vector<8x128xf32>
    %c25_339 = arith.constant 25 : index
    %c8_340 = arith.constant 8 : index
    %c0_341 = arith.constant 0 : index
    %527 = vector.load %arg2[%c25_339, %c8_340, %c0_341] : memref<30x24x128xf32, #tpu.memory_space<vmem>>, vector<1x8x128xf32>
    %528 = vector.shape_cast %527 : vector<1x8x128xf32> to vector<8x128xf32>
    %c15_342 = arith.constant 15 : index
    %c8_343 = arith.constant 8 : index
    %c0_344 = arith.constant 0 : index
    %529 = vector.load %arg5[%c15_342, %c8_343, %c0_344] : memref<20x24x128xf32, #tpu.memory_space<vmem>>, vector<1x8x128xf32>
    %530 = vector.shape_cast %529 : vector<1x8x128xf32> to vector<8x128xf32>
    %531 = arith.subf %528, %530 : vector<8x128xf32>
    %532 = arith.mulf %531, %531 : vector<8x128xf32>
    %533 = arith.addf %526, %532 : vector<8x128xf32>
    %c26_345 = arith.constant 26 : index
    %c8_346 = arith.constant 8 : index
    %c0_347 = arith.constant 0 : index
    %534 = vector.load %arg2[%c26_345, %c8_346, %c0_347] : memref<30x24x128xf32, #tpu.memory_space<vmem>>, vector<1x8x128xf32>
    %535 = vector.shape_cast %534 : vector<1x8x128xf32> to vector<8x128xf32>
    %c16_348 = arith.constant 16 : index
    %c8_349 = arith.constant 8 : index
    %c0_350 = arith.constant 0 : index
    %536 = vector.load %arg5[%c16_348, %c8_349, %c0_350] : memref<20x24x128xf32, #tpu.memory_space<vmem>>, vector<1x8x128xf32>
    %537 = vector.shape_cast %536 : vector<1x8x128xf32> to vector<8x128xf32>
    %538 = arith.subf %535, %537 : vector<8x128xf32>
    %539 = arith.mulf %538, %538 : vector<8x128xf32>
    %540 = arith.addf %533, %539 : vector<8x128xf32>
    %c27_351 = arith.constant 27 : index
    %c8_352 = arith.constant 8 : index
    %c0_353 = arith.constant 0 : index
    %541 = vector.load %arg2[%c27_351, %c8_352, %c0_353] : memref<30x24x128xf32, #tpu.memory_space<vmem>>, vector<1x8x128xf32>
    %542 = vector.shape_cast %541 : vector<1x8x128xf32> to vector<8x128xf32>
    %c17_354 = arith.constant 17 : index
    %c8_355 = arith.constant 8 : index
    %c0_356 = arith.constant 0 : index
    %543 = vector.load %arg5[%c17_354, %c8_355, %c0_356] : memref<20x24x128xf32, #tpu.memory_space<vmem>>, vector<1x8x128xf32>
    %544 = vector.shape_cast %543 : vector<1x8x128xf32> to vector<8x128xf32>
    %545 = arith.subf %542, %544 : vector<8x128xf32>
    %546 = arith.mulf %545, %545 : vector<8x128xf32>
    %547 = arith.addf %540, %546 : vector<8x128xf32>
    %c28_357 = arith.constant 28 : index
    %c8_358 = arith.constant 8 : index
    %c0_359 = arith.constant 0 : index
    %548 = vector.load %arg2[%c28_357, %c8_358, %c0_359] : memref<30x24x128xf32, #tpu.memory_space<vmem>>, vector<1x8x128xf32>
    %549 = vector.shape_cast %548 : vector<1x8x128xf32> to vector<8x128xf32>
    %c18_360 = arith.constant 18 : index
    %c8_361 = arith.constant 8 : index
    %c0_362 = arith.constant 0 : index
    %550 = vector.load %arg5[%c18_360, %c8_361, %c0_362] : memref<20x24x128xf32, #tpu.memory_space<vmem>>, vector<1x8x128xf32>
    %551 = vector.shape_cast %550 : vector<1x8x128xf32> to vector<8x128xf32>
    %552 = arith.subf %549, %551 : vector<8x128xf32>
    %553 = arith.mulf %552, %552 : vector<8x128xf32>
    %554 = arith.addf %547, %553 : vector<8x128xf32>
    %c29_363 = arith.constant 29 : index
    %c8_364 = arith.constant 8 : index
    %c0_365 = arith.constant 0 : index
    %555 = vector.load %arg2[%c29_363, %c8_364, %c0_365] : memref<30x24x128xf32, #tpu.memory_space<vmem>>, vector<1x8x128xf32>
    %556 = vector.shape_cast %555 : vector<1x8x128xf32> to vector<8x128xf32>
    %c19_366 = arith.constant 19 : index
    %c8_367 = arith.constant 8 : index
    %c0_368 = arith.constant 0 : index
    %557 = vector.load %arg5[%c19_366, %c8_367, %c0_368] : memref<20x24x128xf32, #tpu.memory_space<vmem>>, vector<1x8x128xf32>
    %558 = vector.shape_cast %557 : vector<1x8x128xf32> to vector<8x128xf32>
    %559 = arith.subf %556, %558 : vector<8x128xf32>
    %560 = arith.mulf %559, %559 : vector<8x128xf32>
    %561 = arith.addf %554, %560 : vector<8x128xf32>
    %c0_369 = arith.constant 0 : index
    %c0_370 = arith.constant 0 : index
    %562 = vector.load %arg10[%c0_369, %c0_370] : memref<8x128xf32, #tpu.memory_space<vmem>>, vector<8x128xf32>
    %cst_371 = arith.constant 0.000000e+00 : f32
    %563 = vector.broadcast %cst_371 : f32 to vector<8x128xf32>
    %564 = arith.select %417, %561, %563 : vector<8x128xi1>, vector<8x128xf32>
    %565 = arith.addf %562, %564 : vector<8x128xf32>
    %c0_372 = arith.constant 0 : index
    %c0_373 = arith.constant 0 : index
    %566 = vector.load %arg10[%c0_372, %c0_373] : memref<8x128xf32, #tpu.memory_space<vmem>>, vector<8x128xf32>
    tpu.vector_store %arg10[%c0_372, %c0_373], %565 {strides = array<i32>} : memref<8x128xf32, #tpu.memory_space<vmem>>, vector<8x128xf32>,
    %c0_374 = arith.constant 0 : index
    %c0_375 = arith.constant 0 : index
    %567 = vector.load %arg9[%c0_374, %c0_375] : memref<8x128xf32, #tpu.memory_space<vmem>>, vector<8x128xf32>
    %568 = arith.mulf %394, %394 : vector<8x128xf32>
    %569 = arith.mulf %404, %404 : vector<8x128xf32>
    %570 = arith.addf %568, %569 : vector<8x128xf32>
    %cst_376 = arith.constant 0.000000e+00 : f32
    %571 = vector.broadcast %cst_376 : f32 to vector<8x128xf32>
    %572 = arith.select %420, %570, %571 : vector<8x128xi1>, vector<8x128xf32>
    %573 = arith.addf %567, %572 : vector<8x128xf32>
    %c0_377 = arith.constant 0 : index
    %c0_378 = arith.constant 0 : index
    %574 = vector.load %arg9[%c0_377, %c0_378] : memref<8x128xf32, #tpu.memory_space<vmem>>, vector<8x128xf32>
    tpu.vector_store %arg9[%c0_377, %c0_378], %573 {strides = array<i32>} : memref<8x128xf32, #tpu.memory_space<vmem>>, vector<8x128xf32>,
    %575 = arith.addf %384, %406 : vector<8x128xf32>
    %cst_379 = arith.constant 0.142857149 : f32
    %576 = vector.broadcast %cst_379 : f32 to vector<8x128xf32>
    %577 = arith.mulf %575, %576 : vector<8x128xf32>
    %578 = arith.addf %381, %408 : vector<8x128xf32>
    %cst_380 = arith.constant 0.142857149 : f32
    %579 = vector.broadcast %cst_380 : f32 to vector<8x128xf32>
    %580 = arith.mulf %578, %579 : vector<8x128xf32>
    %cst_381 = arith.constant 5.000000e-01 : f32
    %581 = vector.broadcast %cst_381 : f32 to vector<8x128xf32>
    %582 = arith.mulf %410, %581 : vector<8x128xf32>
    %583 = arith.subf %577, %582 : vector<8x128xf32>
    %cst_382 = arith.constant 5.000000e-01 : f32
    %584 = vector.broadcast %cst_382 : f32 to vector<8x128xf32>
    %585 = arith.mulf %410, %584 : vector<8x128xf32>
    %586 = arith.addf %577, %585 : vector<8x128xf32>
    %cst_383 = arith.constant 5.000000e-01 : f32
    %587 = vector.broadcast %cst_383 : f32 to vector<8x128xf32>
    %588 = arith.mulf %412, %587 : vector<8x128xf32>
    %589 = arith.subf %580, %588 : vector<8x128xf32>
    %cst_384 = arith.constant 5.000000e-01 : f32
    %590 = vector.broadcast %cst_384 : f32 to vector<8x128xf32>
    %591 = arith.mulf %412, %590 : vector<8x128xf32>
    %592 = arith.addf %580, %591 : vector<8x128xf32>
    %593 = arith.subf %586, %583 : vector<8x128xf32>
    %594 = arith.subf %592, %589 : vector<8x128xf32>
    %595 = arith.mulf %593, %594 : vector<8x128xf32>
    %596 = arith.addf %384, %386 : vector<8x128xf32>
    %cst_385 = arith.constant 0.142857149 : f32
    %597 = vector.broadcast %cst_385 : f32 to vector<8x128xf32>
    %598 = arith.mulf %596, %597 : vector<8x128xf32>
    %599 = arith.addf %381, %388 : vector<8x128xf32>
    %cst_386 = arith.constant 0.142857149 : f32
    %600 = vector.broadcast %cst_386 : f32 to vector<8x128xf32>
    %601 = arith.mulf %599, %600 : vector<8x128xf32>
    %cst_387 = arith.constant 5.000000e-01 : f32
    %602 = vector.broadcast %cst_387 : f32 to vector<8x128xf32>
    %603 = arith.mulf %390, %602 : vector<8x128xf32>
    %604 = arith.subf %598, %603 : vector<8x128xf32>
    %cst_388 = arith.constant 5.000000e-01 : f32
    %605 = vector.broadcast %cst_388 : f32 to vector<8x128xf32>
    %606 = arith.mulf %390, %605 : vector<8x128xf32>
    %607 = arith.addf %598, %606 : vector<8x128xf32>
    %cst_389 = arith.constant 5.000000e-01 : f32
    %608 = vector.broadcast %cst_389 : f32 to vector<8x128xf32>
    %609 = arith.mulf %392, %608 : vector<8x128xf32>
    %610 = arith.subf %601, %609 : vector<8x128xf32>
    %cst_390 = arith.constant 5.000000e-01 : f32
    %611 = vector.broadcast %cst_390 : f32 to vector<8x128xf32>
    %612 = arith.mulf %392, %611 : vector<8x128xf32>
    %613 = arith.addf %601, %612 : vector<8x128xf32>
    %614 = arith.minimumf %607, %586 : vector<8x128xf32>
    %615 = arith.maximumf %604, %583 : vector<8x128xf32>
    %616 = arith.subf %614, %615 : vector<8x128xf32>
    %cst_391 = arith.constant 0.000000e+00 : f32
    %617 = vector.broadcast %cst_391 : f32 to vector<8x128xf32>
    %618 = arith.maximumf %616, %617 : vector<8x128xf32>
    %619 = arith.minimumf %613, %592 : vector<8x128xf32>
    %620 = arith.maximumf %610, %589 : vector<8x128xf32>
    %621 = arith.subf %619, %620 : vector<8x128xf32>
    %cst_392 = arith.constant 0.000000e+00 : f32
    %622 = vector.broadcast %cst_392 : f32 to vector<8x128xf32>
    %623 = arith.maximumf %621, %622 : vector<8x128xf32>
    %624 = arith.mulf %618, %623 : vector<8x128xf32>
    %625 = arith.subf %607, %604 : vector<8x128xf32>
    %626 = arith.subf %613, %610 : vector<8x128xf32>
    %627 = arith.mulf %625, %626 : vector<8x128xf32>
    %628 = arith.addf %627, %595 : vector<8x128xf32>
    %629 = arith.subf %628, %624 : vector<8x128xf32>
    %cst_393 = arith.constant 9.99999971E-10 : f32
    %630 = vector.broadcast %cst_393 : f32 to vector<8x128xf32>
    %631 = arith.addf %629, %630 : vector<8x128xf32>
    %632 = arith.divf %624, %631 : vector<8x128xf32>
    %633 = arith.addf %384, %396 : vector<8x128xf32>
    %cst_394 = arith.constant 0.142857149 : f32
    %634 = vector.broadcast %cst_394 : f32 to vector<8x128xf32>
    %635 = arith.mulf %633, %634 : vector<8x128xf32>
    %636 = arith.addf %381, %398 : vector<8x128xf32>
    %cst_395 = arith.constant 0.142857149 : f32
    %637 = vector.broadcast %cst_395 : f32 to vector<8x128xf32>
    %638 = arith.mulf %636, %637 : vector<8x128xf32>
    %cst_396 = arith.constant 5.000000e-01 : f32
    %639 = vector.broadcast %cst_396 : f32 to vector<8x128xf32>
    %640 = arith.mulf %400, %639 : vector<8x128xf32>
    %641 = arith.subf %635, %640 : vector<8x128xf32>
    %cst_397 = arith.constant 5.000000e-01 : f32
    %642 = vector.broadcast %cst_397 : f32 to vector<8x128xf32>
    %643 = arith.mulf %400, %642 : vector<8x128xf32>
    %644 = arith.addf %635, %643 : vector<8x128xf32>
    %cst_398 = arith.constant 5.000000e-01 : f32
    %645 = vector.broadcast %cst_398 : f32 to vector<8x128xf32>
    %646 = arith.mulf %402, %645 : vector<8x128xf32>
    %647 = arith.subf %638, %646 : vector<8x128xf32>
    %cst_399 = arith.constant 5.000000e-01 : f32
    %648 = vector.broadcast %cst_399 : f32 to vector<8x128xf32>
    %649 = arith.mulf %402, %648 : vector<8x128xf32>
    %650 = arith.addf %638, %649 : vector<8x128xf32>
    %651 = arith.minimumf %644, %586 : vector<8x128xf32>
    %652 = arith.maximumf %641, %583 : vector<8x128xf32>
    %653 = arith.subf %651, %652 : vector<8x128xf32>
    %cst_400 = arith.constant 0.000000e+00 : f32
    %654 = vector.broadcast %cst_400 : f32 to vector<8x128xf32>
    %655 = arith.maximumf %653, %654 : vector<8x128xf32>
    %656 = arith.minimumf %650, %592 : vector<8x128xf32>
    %657 = arith.maximumf %647, %589 : vector<8x128xf32>
    %658 = arith.subf %656, %657 : vector<8x128xf32>
    %cst_401 = arith.constant 0.000000e+00 : f32
    %659 = vector.broadcast %cst_401 : f32 to vector<8x128xf32>
    %660 = arith.maximumf %658, %659 : vector<8x128xf32>
    %661 = arith.mulf %655, %660 : vector<8x128xf32>
    %662 = arith.subf %644, %641 : vector<8x128xf32>
    %663 = arith.subf %650, %647 : vector<8x128xf32>
    %664 = arith.mulf %662, %663 : vector<8x128xf32>
    %665 = arith.addf %664, %595 : vector<8x128xf32>
    %666 = arith.subf %665, %661 : vector<8x128xf32>
    %cst_402 = arith.constant 9.99999971E-10 : f32
    %667 = vector.broadcast %cst_402 : f32 to vector<8x128xf32>
    %668 = arith.addf %666, %667 : vector<8x128xf32>
    %669 = arith.divf %661, %668 : vector<8x128xf32>
    %670 = arith.cmpf ogt, %669, %632 : vector<8x128xf32>
    %671 = arith.maximumf %632, %669 : vector<8x128xf32>
    %672 = arith.select %670, %396, %386 : vector<8x128xi1>, vector<8x128xf32>
    %673 = arith.select %670, %398, %388 : vector<8x128xi1>, vector<8x128xf32>
    %674 = arith.select %670, %400, %390 : vector<8x128xi1>, vector<8x128xf32>
    %675 = arith.select %670, %402, %392 : vector<8x128xi1>, vector<8x128xf32>
    %676 = arith.select %670, %404, %394 : vector<8x128xi1>, vector<8x128xf32>
    %677 = arith.subf %672, %406 : vector<8x128xf32>
    %678 = arith.mulf %677, %677 : vector<8x128xf32>
    %679 = arith.subf %673, %408 : vector<8x128xf32>
    %680 = arith.mulf %679, %679 : vector<8x128xf32>
    %681 = arith.addf %678, %680 : vector<8x128xf32>
    %cst_403 = arith.constant 9.99999997E-7 : f32
    %682 = vector.broadcast %cst_403 : f32 to vector<8x128xf32>
    %683 = arith.maximumf %674, %682 : vector<8x128xf32>
    %684 = math.sqrt %683 : vector<8x128xf32>
    %cst_404 = arith.constant 9.99999997E-7 : f32
    %685 = vector.broadcast %cst_404 : f32 to vector<8x128xf32>
    %686 = arith.maximumf %410, %685 : vector<8x128xf32>
    %687 = math.sqrt %686 : vector<8x128xf32>
    %688 = arith.subf %684, %687 : vector<8x128xf32>
    %689 = arith.mulf %688, %688 : vector<8x128xf32>
    %cst_405 = arith.constant 9.99999997E-7 : f32
    %690 = vector.broadcast %cst_405 : f32 to vector<8x128xf32>
    %691 = arith.maximumf %675, %690 : vector<8x128xf32>
    %692 = math.sqrt %691 : vector<8x128xf32>
    %cst_406 = arith.constant 9.99999997E-7 : f32
    %693 = vector.broadcast %cst_406 : f32 to vector<8x128xf32>
    %694 = arith.maximumf %412, %693 : vector<8x128xf32>
    %695 = math.sqrt %694 : vector<8x128xf32>
    %696 = arith.subf %692, %695 : vector<8x128xf32>
    %697 = arith.mulf %696, %696 : vector<8x128xf32>
    %698 = arith.addf %689, %697 : vector<8x128xf32>
    %c0_407 = arith.constant 0 : index
    %c0_408 = arith.constant 0 : index
    %699 = vector.load %arg7[%c0_407, %c0_408] : memref<8x128xf32, #tpu.memory_space<vmem>>, vector<8x128xf32>
    %700 = arith.addf %681, %698 : vector<8x128xf32>
    %cst_409 = arith.constant 0.000000e+00 : f32
    %701 = vector.broadcast %cst_409 : f32 to vector<8x128xf32>
    %702 = arith.select %417, %700, %701 : vector<8x128xi1>, vector<8x128xf32>
    %703 = arith.addf %699, %702 : vector<8x128xf32>
    %c0_410 = arith.constant 0 : index
    %c0_411 = arith.constant 0 : index
    %704 = vector.load %arg7[%c0_410, %c0_411] : memref<8x128xf32, #tpu.memory_space<vmem>>, vector<8x128xf32>
    tpu.vector_store %arg7[%c0_410, %c0_411], %703 {strides = array<i32>} : memref<8x128xf32, #tpu.memory_space<vmem>>, vector<8x128xf32>,
    %c0_412 = arith.constant 0 : index
    %c0_413 = arith.constant 0 : index
    %705 = vector.load %arg8[%c0_412, %c0_413] : memref<8x128xf32, #tpu.memory_space<vmem>>, vector<8x128xf32>
    %706 = arith.subf %676, %671 : vector<8x128xf32>
    %707 = arith.mulf %706, %706 : vector<8x128xf32>
    %cst_414 = arith.constant 0.000000e+00 : f32
    %708 = vector.broadcast %cst_414 : f32 to vector<8x128xf32>
    %709 = arith.select %417, %707, %708 : vector<8x128xi1>, vector<8x128xf32>
    %710 = arith.addf %705, %709 : vector<8x128xf32>
    %c0_415 = arith.constant 0 : index
    %c0_416 = arith.constant 0 : index
    %711 = vector.load %arg8[%c0_415, %c0_416] : memref<8x128xf32, #tpu.memory_space<vmem>>, vector<8x128xf32>
    tpu.vector_store %arg8[%c0_415, %c0_416], %710 {strides = array<i32>} : memref<8x128xf32, #tpu.memory_space<vmem>>, vector<8x128xf32>,
    %c16_i32 = arith.constant 16 : i32
    %712 = arith.addi %5, %c16_i32 : i32
    %713 = vector.broadcast %712 : i32 to vector<8x128xi32>
    %714 = arith.addi %713, %6 : vector<8x128xi32>
    %c128_i32_417 = arith.constant 128 : i32
    %715 = vector.broadcast %c128_i32_417 : i32 to vector<8x128xi32>
    %716 = arith.muli %714, %715 : vector<8x128xi32>
    %717 = arith.addi %716, %7 : vector<8x128xi32>
    %c2940_i32_418 = arith.constant 2940 : i32
    %718 = vector.broadcast %c2940_i32_418 : i32 to vector<8x128xi32>
    %719 = arith.cmpi slt, %717, %718 : vector<8x128xi32>
    %720 = arith.sitofp %717 : vector<8x128xi32> to vector<8x128xf32>
    %cst_419 = arith.constant 5.000000e-01 : f32
    %721 = vector.broadcast %cst_419 : f32 to vector<8x128xf32>
    %722 = arith.addf %720, %721 : vector<8x128xf32>
    %cst_420 = arith.constant 0.0204081628 : f32
    %723 = vector.broadcast %cst_420 : f32 to vector<8x128xf32>
    %724 = arith.mulf %722, %723 : vector<8x128xf32>
    %725 = math.floor %724 : vector<8x128xf32>
    %cst_421 = arith.constant 4.900000e+01 : f32
    %726 = vector.broadcast %cst_421 : f32 to vector<8x128xf32>
    %727 = arith.mulf %726, %725 : vector<8x128xf32>
    %728 = arith.subf %720, %727 : vector<8x128xf32>
    %cst_422 = arith.constant 5.000000e-01 : f32
    %729 = vector.broadcast %cst_422 : f32 to vector<8x128xf32>
    %730 = arith.addf %728, %729 : vector<8x128xf32>
    %cst_423 = arith.constant 0.142857149 : f32
    %731 = vector.broadcast %cst_423 : f32 to vector<8x128xf32>
    %732 = arith.mulf %730, %731 : vector<8x128xf32>
    %733 = math.floor %732 : vector<8x128xf32>
    %cst_424 = arith.constant 7.000000e+00 : f32
    %734 = vector.broadcast %cst_424 : f32 to vector<8x128xf32>
    %735 = arith.mulf %733, %734 : vector<8x128xf32>
    %736 = arith.subf %728, %735 : vector<8x128xf32>
    %c0_425 = arith.constant 0 : index
    %c16_426 = arith.constant 16 : index
    %c0_427 = arith.constant 0 : index
    %737 = vector.load %arg2[%c0_425, %c16_426, %c0_427] : memref<30x24x128xf32, #tpu.memory_space<vmem>>, vector<1x8x128xf32>
    %738 = vector.shape_cast %737 : vector<1x8x128xf32> to vector<8x128xf32>
    %c1_428 = arith.constant 1 : index
    %c16_429 = arith.constant 16 : index
    %c0_430 = arith.constant 0 : index
    %739 = vector.load %arg2[%c1_428, %c16_429, %c0_430] : memref<30x24x128xf32, #tpu.memory_space<vmem>>, vector<1x8x128xf32>
    %740 = vector.shape_cast %739 : vector<1x8x128xf32> to vector<8x128xf32>
    %c2_431 = arith.constant 2 : index
    %c16_432 = arith.constant 16 : index
    %c0_433 = arith.constant 0 : index
    %741 = vector.load %arg2[%c2_431, %c16_432, %c0_433] : memref<30x24x128xf32, #tpu.memory_space<vmem>>, vector<1x8x128xf32>
    %742 = vector.shape_cast %741 : vector<1x8x128xf32> to vector<8x128xf32>
    %c3_434 = arith.constant 3 : index
    %c16_435 = arith.constant 16 : index
    %c0_436 = arith.constant 0 : index
    %743 = vector.load %arg2[%c3_434, %c16_435, %c0_436] : memref<30x24x128xf32, #tpu.memory_space<vmem>>, vector<1x8x128xf32>
    %744 = vector.shape_cast %743 : vector<1x8x128xf32> to vector<8x128xf32>
    %c4_437 = arith.constant 4 : index
    %c16_438 = arith.constant 16 : index
    %c0_439 = arith.constant 0 : index
    %745 = vector.load %arg2[%c4_437, %c16_438, %c0_439] : memref<30x24x128xf32, #tpu.memory_space<vmem>>, vector<1x8x128xf32>
    %746 = vector.shape_cast %745 : vector<1x8x128xf32> to vector<8x128xf32>
    %c5_440 = arith.constant 5 : index
    %c16_441 = arith.constant 16 : index
    %c0_442 = arith.constant 0 : index
    %747 = vector.load %arg2[%c5_440, %c16_441, %c0_442] : memref<30x24x128xf32, #tpu.memory_space<vmem>>, vector<1x8x128xf32>
    %748 = vector.shape_cast %747 : vector<1x8x128xf32> to vector<8x128xf32>
    %c6_443 = arith.constant 6 : index
    %c16_444 = arith.constant 16 : index
    %c0_445 = arith.constant 0 : index
    %749 = vector.load %arg2[%c6_443, %c16_444, %c0_445] : memref<30x24x128xf32, #tpu.memory_space<vmem>>, vector<1x8x128xf32>
    %750 = vector.shape_cast %749 : vector<1x8x128xf32> to vector<8x128xf32>
    %c7_446 = arith.constant 7 : index
    %c16_447 = arith.constant 16 : index
    %c0_448 = arith.constant 0 : index
    %751 = vector.load %arg2[%c7_446, %c16_447, %c0_448] : memref<30x24x128xf32, #tpu.memory_space<vmem>>, vector<1x8x128xf32>
    %752 = vector.shape_cast %751 : vector<1x8x128xf32> to vector<8x128xf32>
    %c8_449 = arith.constant 8 : index
    %c16_450 = arith.constant 16 : index
    %c0_451 = arith.constant 0 : index
    %753 = vector.load %arg2[%c8_449, %c16_450, %c0_451] : memref<30x24x128xf32, #tpu.memory_space<vmem>>, vector<1x8x128xf32>
    %754 = vector.shape_cast %753 : vector<1x8x128xf32> to vector<8x128xf32>
    %c9_452 = arith.constant 9 : index
    %c16_453 = arith.constant 16 : index
    %c0_454 = arith.constant 0 : index
    %755 = vector.load %arg2[%c9_452, %c16_453, %c0_454] : memref<30x24x128xf32, #tpu.memory_space<vmem>>, vector<1x8x128xf32>
    %756 = vector.shape_cast %755 : vector<1x8x128xf32> to vector<8x128xf32>
    %c0_455 = arith.constant 0 : index
    %c16_456 = arith.constant 16 : index
    %c0_457 = arith.constant 0 : index
    %757 = vector.load %arg3[%c0_455, %c16_456, %c0_457] : memref<4x24x128xf32, #tpu.memory_space<vmem>>, vector<1x8x128xf32>
    %758 = vector.shape_cast %757 : vector<1x8x128xf32> to vector<8x128xf32>
    %c1_458 = arith.constant 1 : index
    %c16_459 = arith.constant 16 : index
    %c0_460 = arith.constant 0 : index
    %759 = vector.load %arg3[%c1_458, %c16_459, %c0_460] : memref<4x24x128xf32, #tpu.memory_space<vmem>>, vector<1x8x128xf32>
    %760 = vector.shape_cast %759 : vector<1x8x128xf32> to vector<8x128xf32>
    %c2_461 = arith.constant 2 : index
    %c16_462 = arith.constant 16 : index
    %c0_463 = arith.constant 0 : index
    %761 = vector.load %arg3[%c2_461, %c16_462, %c0_463] : memref<4x24x128xf32, #tpu.memory_space<vmem>>, vector<1x8x128xf32>
    %762 = vector.shape_cast %761 : vector<1x8x128xf32> to vector<8x128xf32>
    %c3_464 = arith.constant 3 : index
    %c16_465 = arith.constant 16 : index
    %c0_466 = arith.constant 0 : index
    %763 = vector.load %arg3[%c3_464, %c16_465, %c0_466] : memref<4x24x128xf32, #tpu.memory_space<vmem>>, vector<1x8x128xf32>
    %764 = vector.shape_cast %763 : vector<1x8x128xf32> to vector<8x128xf32>
    %c0_467 = arith.constant 0 : index
    %c16_468 = arith.constant 16 : index
    %c0_469 = arith.constant 0 : index
    %765 = vector.load %arg4[%c0_467, %c16_468, %c0_469] : memref<1x24x128xf32, #tpu.memory_space<vmem>>, vector<1x8x128xf32>
    %766 = vector.shape_cast %765 : vector<1x8x128xf32> to vector<8x128xf32>
    %cst_470 = arith.constant 5.000000e-01 : f32
    %767 = vector.broadcast %cst_470 : f32 to vector<8x128xf32>
    %768 = arith.cmpf ogt, %766, %767 : vector<8x128xf32>
    %769 = arith.andi %768, %719 : vector<8x128xi1>
    %cst_471 = arith.constant 5.000000e-01 : f32
    %770 = vector.broadcast %cst_471 : f32 to vector<8x128xf32>
    %771 = arith.cmpf ole, %766, %770 : vector<8x128xf32>
    %772 = arith.andi %771, %719 : vector<8x128xi1>
    %cst_472 = arith.constant 0.000000e+00 : f32
    %773 = vector.broadcast %cst_472 : f32 to vector<8x128xf32>
    %c10_473 = arith.constant 10 : index
    %c16_474 = arith.constant 16 : index
    %c0_475 = arith.constant 0 : index
    %774 = vector.load %arg2[%c10_473, %c16_474, %c0_475] : memref<30x24x128xf32, #tpu.memory_space<vmem>>, vector<1x8x128xf32>
    %775 = vector.shape_cast %774 : vector<1x8x128xf32> to vector<8x128xf32>
    %c0_476 = arith.constant 0 : index
    %c16_477 = arith.constant 16 : index
    %c0_478 = arith.constant 0 : index
    %776 = vector.load %arg5[%c0_476, %c16_477, %c0_478] : memref<20x24x128xf32, #tpu.memory_space<vmem>>, vector<1x8x128xf32>
    %777 = vector.shape_cast %776 : vector<1x8x128xf32> to vector<8x128xf32>
    %778 = arith.subf %775, %777 : vector<8x128xf32>
    %779 = arith.mulf %778, %778 : vector<8x128xf32>
    %780 = arith.addf %773, %779 : vector<8x128xf32>
    %c11_479 = arith.constant 11 : index
    %c16_480 = arith.constant 16 : index
    %c0_481 = arith.constant 0 : index
    %781 = vector.load %arg2[%c11_479, %c16_480, %c0_481] : memref<30x24x128xf32, #tpu.memory_space<vmem>>, vector<1x8x128xf32>
    %782 = vector.shape_cast %781 : vector<1x8x128xf32> to vector<8x128xf32>
    %c1_482 = arith.constant 1 : index
    %c16_483 = arith.constant 16 : index
    %c0_484 = arith.constant 0 : index
    %783 = vector.load %arg5[%c1_482, %c16_483, %c0_484] : memref<20x24x128xf32, #tpu.memory_space<vmem>>, vector<1x8x128xf32>
    %784 = vector.shape_cast %783 : vector<1x8x128xf32> to vector<8x128xf32>
    %785 = arith.subf %782, %784 : vector<8x128xf32>
    %786 = arith.mulf %785, %785 : vector<8x128xf32>
    %787 = arith.addf %780, %786 : vector<8x128xf32>
    %c12_485 = arith.constant 12 : index
    %c16_486 = arith.constant 16 : index
    %c0_487 = arith.constant 0 : index
    %788 = vector.load %arg2[%c12_485, %c16_486, %c0_487] : memref<30x24x128xf32, #tpu.memory_space<vmem>>, vector<1x8x128xf32>
    %789 = vector.shape_cast %788 : vector<1x8x128xf32> to vector<8x128xf32>
    %c2_488 = arith.constant 2 : index
    %c16_489 = arith.constant 16 : index
    %c0_490 = arith.constant 0 : index
    %790 = vector.load %arg5[%c2_488, %c16_489, %c0_490] : memref<20x24x128xf32, #tpu.memory_space<vmem>>, vector<1x8x128xf32>
    %791 = vector.shape_cast %790 : vector<1x8x128xf32> to vector<8x128xf32>
    %792 = arith.subf %789, %791 : vector<8x128xf32>
    %793 = arith.mulf %792, %792 : vector<8x128xf32>
    %794 = arith.addf %787, %793 : vector<8x128xf32>
    %c13_491 = arith.constant 13 : index
    %c16_492 = arith.constant 16 : index
    %c0_493 = arith.constant 0 : index
    %795 = vector.load %arg2[%c13_491, %c16_492, %c0_493] : memref<30x24x128xf32, #tpu.memory_space<vmem>>, vector<1x8x128xf32>
    %796 = vector.shape_cast %795 : vector<1x8x128xf32> to vector<8x128xf32>
    %c3_494 = arith.constant 3 : index
    %c16_495 = arith.constant 16 : index
    %c0_496 = arith.constant 0 : index
    %797 = vector.load %arg5[%c3_494, %c16_495, %c0_496] : memref<20x24x128xf32, #tpu.memory_space<vmem>>, vector<1x8x128xf32>
    %798 = vector.shape_cast %797 : vector<1x8x128xf32> to vector<8x128xf32>
    %799 = arith.subf %796, %798 : vector<8x128xf32>
    %800 = arith.mulf %799, %799 : vector<8x128xf32>
    %801 = arith.addf %794, %800 : vector<8x128xf32>
    %c14_497 = arith.constant 14 : index
    %c16_498 = arith.constant 16 : index
    %c0_499 = arith.constant 0 : index
    %802 = vector.load %arg2[%c14_497, %c16_498, %c0_499] : memref<30x24x128xf32, #tpu.memory_space<vmem>>, vector<1x8x128xf32>
    %803 = vector.shape_cast %802 : vector<1x8x128xf32> to vector<8x128xf32>
    %c4_500 = arith.constant 4 : index
    %c16_501 = arith.constant 16 : index
    %c0_502 = arith.constant 0 : index
    %804 = vector.load %arg5[%c4_500, %c16_501, %c0_502] : memref<20x24x128xf32, #tpu.memory_space<vmem>>, vector<1x8x128xf32>
    %805 = vector.shape_cast %804 : vector<1x8x128xf32> to vector<8x128xf32>
    %806 = arith.subf %803, %805 : vector<8x128xf32>
    %807 = arith.mulf %806, %806 : vector<8x128xf32>
    %808 = arith.addf %801, %807 : vector<8x128xf32>
    %c15_503 = arith.constant 15 : index
    %c16_504 = arith.constant 16 : index
    %c0_505 = arith.constant 0 : index
    %809 = vector.load %arg2[%c15_503, %c16_504, %c0_505] : memref<30x24x128xf32, #tpu.memory_space<vmem>>, vector<1x8x128xf32>
    %810 = vector.shape_cast %809 : vector<1x8x128xf32> to vector<8x128xf32>
    %c5_506 = arith.constant 5 : index
    %c16_507 = arith.constant 16 : index
    %c0_508 = arith.constant 0 : index
    %811 = vector.load %arg5[%c5_506, %c16_507, %c0_508] : memref<20x24x128xf32, #tpu.memory_space<vmem>>, vector<1x8x128xf32>
    %812 = vector.shape_cast %811 : vector<1x8x128xf32> to vector<8x128xf32>
    %813 = arith.subf %810, %812 : vector<8x128xf32>
    %814 = arith.mulf %813, %813 : vector<8x128xf32>
    %815 = arith.addf %808, %814 : vector<8x128xf32>
    %c16_509 = arith.constant 16 : index
    %c16_510 = arith.constant 16 : index
    %c0_511 = arith.constant 0 : index
    %816 = vector.load %arg2[%c16_509, %c16_510, %c0_511] : memref<30x24x128xf32, #tpu.memory_space<vmem>>, vector<1x8x128xf32>
    %817 = vector.shape_cast %816 : vector<1x8x128xf32> to vector<8x128xf32>
    %c6_512 = arith.constant 6 : index
    %c16_513 = arith.constant 16 : index
    %c0_514 = arith.constant 0 : index
    %818 = vector.load %arg5[%c6_512, %c16_513, %c0_514] : memref<20x24x128xf32, #tpu.memory_space<vmem>>, vector<1x8x128xf32>
    %819 = vector.shape_cast %818 : vector<1x8x128xf32> to vector<8x128xf32>
    %820 = arith.subf %817, %819 : vector<8x128xf32>
    %821 = arith.mulf %820, %820 : vector<8x128xf32>
    %822 = arith.addf %815, %821 : vector<8x128xf32>
    %c17_515 = arith.constant 17 : index
    %c16_516 = arith.constant 16 : index
    %c0_517 = arith.constant 0 : index
    %823 = vector.load %arg2[%c17_515, %c16_516, %c0_517] : memref<30x24x128xf32, #tpu.memory_space<vmem>>, vector<1x8x128xf32>
    %824 = vector.shape_cast %823 : vector<1x8x128xf32> to vector<8x128xf32>
    %c7_518 = arith.constant 7 : index
    %c16_519 = arith.constant 16 : index
    %c0_520 = arith.constant 0 : index
    %825 = vector.load %arg5[%c7_518, %c16_519, %c0_520] : memref<20x24x128xf32, #tpu.memory_space<vmem>>, vector<1x8x128xf32>
    %826 = vector.shape_cast %825 : vector<1x8x128xf32> to vector<8x128xf32>
    %827 = arith.subf %824, %826 : vector<8x128xf32>
    %828 = arith.mulf %827, %827 : vector<8x128xf32>
    %829 = arith.addf %822, %828 : vector<8x128xf32>
    %c18_521 = arith.constant 18 : index
    %c16_522 = arith.constant 16 : index
    %c0_523 = arith.constant 0 : index
    %830 = vector.load %arg2[%c18_521, %c16_522, %c0_523] : memref<30x24x128xf32, #tpu.memory_space<vmem>>, vector<1x8x128xf32>
    %831 = vector.shape_cast %830 : vector<1x8x128xf32> to vector<8x128xf32>
    %c8_524 = arith.constant 8 : index
    %c16_525 = arith.constant 16 : index
    %c0_526 = arith.constant 0 : index
    %832 = vector.load %arg5[%c8_524, %c16_525, %c0_526] : memref<20x24x128xf32, #tpu.memory_space<vmem>>, vector<1x8x128xf32>
    %833 = vector.shape_cast %832 : vector<1x8x128xf32> to vector<8x128xf32>
    %834 = arith.subf %831, %833 : vector<8x128xf32>
    %835 = arith.mulf %834, %834 : vector<8x128xf32>
    %836 = arith.addf %829, %835 : vector<8x128xf32>
    %c19_527 = arith.constant 19 : index
    %c16_528 = arith.constant 16 : index
    %c0_529 = arith.constant 0 : index
    %837 = vector.load %arg2[%c19_527, %c16_528, %c0_529] : memref<30x24x128xf32, #tpu.memory_space<vmem>>, vector<1x8x128xf32>
    %838 = vector.shape_cast %837 : vector<1x8x128xf32> to vector<8x128xf32>
    %c9_530 = arith.constant 9 : index
    %c16_531 = arith.constant 16 : index
    %c0_532 = arith.constant 0 : index
    %839 = vector.load %arg5[%c9_530, %c16_531, %c0_532] : memref<20x24x128xf32, #tpu.memory_space<vmem>>, vector<1x8x128xf32>
    %840 = vector.shape_cast %839 : vector<1x8x128xf32> to vector<8x128xf32>
    %841 = arith.subf %838, %840 : vector<8x128xf32>
    %842 = arith.mulf %841, %841 : vector<8x128xf32>
    %843 = arith.addf %836, %842 : vector<8x128xf32>
    %c20_533 = arith.constant 20 : index
    %c16_534 = arith.constant 16 : index
    %c0_535 = arith.constant 0 : index
    %844 = vector.load %arg2[%c20_533, %c16_534, %c0_535] : memref<30x24x128xf32, #tpu.memory_space<vmem>>, vector<1x8x128xf32>
    %845 = vector.shape_cast %844 : vector<1x8x128xf32> to vector<8x128xf32>
    %c10_536 = arith.constant 10 : index
    %c16_537 = arith.constant 16 : index
    %c0_538 = arith.constant 0 : index
    %846 = vector.load %arg5[%c10_536, %c16_537, %c0_538] : memref<20x24x128xf32, #tpu.memory_space<vmem>>, vector<1x8x128xf32>
    %847 = vector.shape_cast %846 : vector<1x8x128xf32> to vector<8x128xf32>
    %848 = arith.subf %845, %847 : vector<8x128xf32>
    %849 = arith.mulf %848, %848 : vector<8x128xf32>
    %850 = arith.addf %843, %849 : vector<8x128xf32>
    %c21_539 = arith.constant 21 : index
    %c16_540 = arith.constant 16 : index
    %c0_541 = arith.constant 0 : index
    %851 = vector.load %arg2[%c21_539, %c16_540, %c0_541] : memref<30x24x128xf32, #tpu.memory_space<vmem>>, vector<1x8x128xf32>
    %852 = vector.shape_cast %851 : vector<1x8x128xf32> to vector<8x128xf32>
    %c11_542 = arith.constant 11 : index
    %c16_543 = arith.constant 16 : index
    %c0_544 = arith.constant 0 : index
    %853 = vector.load %arg5[%c11_542, %c16_543, %c0_544] : memref<20x24x128xf32, #tpu.memory_space<vmem>>, vector<1x8x128xf32>
    %854 = vector.shape_cast %853 : vector<1x8x128xf32> to vector<8x128xf32>
    %855 = arith.subf %852, %854 : vector<8x128xf32>
    %856 = arith.mulf %855, %855 : vector<8x128xf32>
    %857 = arith.addf %850, %856 : vector<8x128xf32>
    %c22_545 = arith.constant 22 : index
    %c16_546 = arith.constant 16 : index
    %c0_547 = arith.constant 0 : index
    %858 = vector.load %arg2[%c22_545, %c16_546, %c0_547] : memref<30x24x128xf32, #tpu.memory_space<vmem>>, vector<1x8x128xf32>
    %859 = vector.shape_cast %858 : vector<1x8x128xf32> to vector<8x128xf32>
    %c12_548 = arith.constant 12 : index
    %c16_549 = arith.constant 16 : index
    %c0_550 = arith.constant 0 : index
    %860 = vector.load %arg5[%c12_548, %c16_549, %c0_550] : memref<20x24x128xf32, #tpu.memory_space<vmem>>, vector<1x8x128xf32>
    %861 = vector.shape_cast %860 : vector<1x8x128xf32> to vector<8x128xf32>
    %862 = arith.subf %859, %861 : vector<8x128xf32>
    %863 = arith.mulf %862, %862 : vector<8x128xf32>
    %864 = arith.addf %857, %863 : vector<8x128xf32>
    %c23_551 = arith.constant 23 : index
    %c16_552 = arith.constant 16 : index
    %c0_553 = arith.constant 0 : index
    %865 = vector.load %arg2[%c23_551, %c16_552, %c0_553] : memref<30x24x128xf32, #tpu.memory_space<vmem>>, vector<1x8x128xf32>
    %866 = vector.shape_cast %865 : vector<1x8x128xf32> to vector<8x128xf32>
    %c13_554 = arith.constant 13 : index
    %c16_555 = arith.constant 16 : index
    %c0_556 = arith.constant 0 : index
    %867 = vector.load %arg5[%c13_554, %c16_555, %c0_556] : memref<20x24x128xf32, #tpu.memory_space<vmem>>, vector<1x8x128xf32>
    %868 = vector.shape_cast %867 : vector<1x8x128xf32> to vector<8x128xf32>
    %869 = arith.subf %866, %868 : vector<8x128xf32>
    %870 = arith.mulf %869, %869 : vector<8x128xf32>
    %871 = arith.addf %864, %870 : vector<8x128xf32>
    %c24_557 = arith.constant 24 : index
    %c16_558 = arith.constant 16 : index
    %c0_559 = arith.constant 0 : index
    %872 = vector.load %arg2[%c24_557, %c16_558, %c0_559] : memref<30x24x128xf32, #tpu.memory_space<vmem>>, vector<1x8x128xf32>
    %873 = vector.shape_cast %872 : vector<1x8x128xf32> to vector<8x128xf32>
    %c14_560 = arith.constant 14 : index
    %c16_561 = arith.constant 16 : index
    %c0_562 = arith.constant 0 : index
    %874 = vector.load %arg5[%c14_560, %c16_561, %c0_562] : memref<20x24x128xf32, #tpu.memory_space<vmem>>, vector<1x8x128xf32>
    %875 = vector.shape_cast %874 : vector<1x8x128xf32> to vector<8x128xf32>
    %876 = arith.subf %873, %875 : vector<8x128xf32>
    %877 = arith.mulf %876, %876 : vector<8x128xf32>
    %878 = arith.addf %871, %877 : vector<8x128xf32>
    %c25_563 = arith.constant 25 : index
    %c16_564 = arith.constant 16 : index
    %c0_565 = arith.constant 0 : index
    %879 = vector.load %arg2[%c25_563, %c16_564, %c0_565] : memref<30x24x128xf32, #tpu.memory_space<vmem>>, vector<1x8x128xf32>
    %880 = vector.shape_cast %879 : vector<1x8x128xf32> to vector<8x128xf32>
    %c15_566 = arith.constant 15 : index
    %c16_567 = arith.constant 16 : index
    %c0_568 = arith.constant 0 : index
    %881 = vector.load %arg5[%c15_566, %c16_567, %c0_568] : memref<20x24x128xf32, #tpu.memory_space<vmem>>, vector<1x8x128xf32>
    %882 = vector.shape_cast %881 : vector<1x8x128xf32> to vector<8x128xf32>
    %883 = arith.subf %880, %882 : vector<8x128xf32>
    %884 = arith.mulf %883, %883 : vector<8x128xf32>
    %885 = arith.addf %878, %884 : vector<8x128xf32>
    %c26_569 = arith.constant 26 : index
    %c16_570 = arith.constant 16 : index
    %c0_571 = arith.constant 0 : index
    %886 = vector.load %arg2[%c26_569, %c16_570, %c0_571] : memref<30x24x128xf32, #tpu.memory_space<vmem>>, vector<1x8x128xf32>
    %887 = vector.shape_cast %886 : vector<1x8x128xf32> to vector<8x128xf32>
    %c16_572 = arith.constant 16 : index
    %c16_573 = arith.constant 16 : index
    %c0_574 = arith.constant 0 : index
    %888 = vector.load %arg5[%c16_572, %c16_573, %c0_574] : memref<20x24x128xf32, #tpu.memory_space<vmem>>, vector<1x8x128xf32>
    %889 = vector.shape_cast %888 : vector<1x8x128xf32> to vector<8x128xf32>
    %890 = arith.subf %887, %889 : vector<8x128xf32>
    %891 = arith.mulf %890, %890 : vector<8x128xf32>
    %892 = arith.addf %885, %891 : vector<8x128xf32>
    %c27_575 = arith.constant 27 : index
    %c16_576 = arith.constant 16 : index
    %c0_577 = arith.constant 0 : index
    %893 = vector.load %arg2[%c27_575, %c16_576, %c0_577] : memref<30x24x128xf32, #tpu.memory_space<vmem>>, vector<1x8x128xf32>
    %894 = vector.shape_cast %893 : vector<1x8x128xf32> to vector<8x128xf32>
    %c17_578 = arith.constant 17 : index
    %c16_579 = arith.constant 16 : index
    %c0_580 = arith.constant 0 : index
    %895 = vector.load %arg5[%c17_578, %c16_579, %c0_580] : memref<20x24x128xf32, #tpu.memory_space<vmem>>, vector<1x8x128xf32>
    %896 = vector.shape_cast %895 : vector<1x8x128xf32> to vector<8x128xf32>
    %897 = arith.subf %894, %896 : vector<8x128xf32>
    %898 = arith.mulf %897, %897 : vector<8x128xf32>
    %899 = arith.addf %892, %898 : vector<8x128xf32>
    %c28_581 = arith.constant 28 : index
    %c16_582 = arith.constant 16 : index
    %c0_583 = arith.constant 0 : index
    %900 = vector.load %arg2[%c28_581, %c16_582, %c0_583] : memref<30x24x128xf32, #tpu.memory_space<vmem>>, vector<1x8x128xf32>
    %901 = vector.shape_cast %900 : vector<1x8x128xf32> to vector<8x128xf32>
    %c18_584 = arith.constant 18 : index
    %c16_585 = arith.constant 16 : index
    %c0_586 = arith.constant 0 : index
    %902 = vector.load %arg5[%c18_584, %c16_585, %c0_586] : memref<20x24x128xf32, #tpu.memory_space<vmem>>, vector<1x8x128xf32>
    %903 = vector.shape_cast %902 : vector<1x8x128xf32> to vector<8x128xf32>
    %904 = arith.subf %901, %903 : vector<8x128xf32>
    %905 = arith.mulf %904, %904 : vector<8x128xf32>
    %906 = arith.addf %899, %905 : vector<8x128xf32>
    %c29_587 = arith.constant 29 : index
    %c16_588 = arith.constant 16 : index
    %c0_589 = arith.constant 0 : index
    %907 = vector.load %arg2[%c29_587, %c16_588, %c0_589] : memref<30x24x128xf32, #tpu.memory_space<vmem>>, vector<1x8x128xf32>
    %908 = vector.shape_cast %907 : vector<1x8x128xf32> to vector<8x128xf32>
    %c19_590 = arith.constant 19 : index
    %c16_591 = arith.constant 16 : index
    %c0_592 = arith.constant 0 : index
    %909 = vector.load %arg5[%c19_590, %c16_591, %c0_592] : memref<20x24x128xf32, #tpu.memory_space<vmem>>, vector<1x8x128xf32>
    %910 = vector.shape_cast %909 : vector<1x8x128xf32> to vector<8x128xf32>
    %911 = arith.subf %908, %910 : vector<8x128xf32>
    %912 = arith.mulf %911, %911 : vector<8x128xf32>
    %913 = arith.addf %906, %912 : vector<8x128xf32>
    %c0_593 = arith.constant 0 : index
    %c0_594 = arith.constant 0 : index
    %914 = vector.load %arg10[%c0_593, %c0_594] : memref<8x128xf32, #tpu.memory_space<vmem>>, vector<8x128xf32>
    %cst_595 = arith.constant 0.000000e+00 : f32
    %915 = vector.broadcast %cst_595 : f32 to vector<8x128xf32>
    %916 = arith.select %769, %913, %915 : vector<8x128xi1>, vector<8x128xf32>
    %917 = arith.addf %914, %916 : vector<8x128xf32>
    %c0_596 = arith.constant 0 : index
    %c0_597 = arith.constant 0 : index
    %918 = vector.load %arg10[%c0_596, %c0_597] : memref<8x128xf32, #tpu.memory_space<vmem>>, vector<8x128xf32>
    tpu.vector_store %arg10[%c0_596, %c0_597], %917 {strides = array<i32>} : memref<8x128xf32, #tpu.memory_space<vmem>>, vector<8x128xf32>,
    %c0_598 = arith.constant 0 : index
    %c0_599 = arith.constant 0 : index
    %919 = vector.load %arg9[%c0_598, %c0_599] : memref<8x128xf32, #tpu.memory_space<vmem>>, vector<8x128xf32>
    %920 = arith.mulf %746, %746 : vector<8x128xf32>
    %921 = arith.mulf %756, %756 : vector<8x128xf32>
    %922 = arith.addf %920, %921 : vector<8x128xf32>
    %cst_600 = arith.constant 0.000000e+00 : f32
    %923 = vector.broadcast %cst_600 : f32 to vector<8x128xf32>
    %924 = arith.select %772, %922, %923 : vector<8x128xi1>, vector<8x128xf32>
    %925 = arith.addf %919, %924 : vector<8x128xf32>
    %c0_601 = arith.constant 0 : index
    %c0_602 = arith.constant 0 : index
    %926 = vector.load %arg9[%c0_601, %c0_602] : memref<8x128xf32, #tpu.memory_space<vmem>>, vector<8x128xf32>
    tpu.vector_store %arg9[%c0_601, %c0_602], %925 {strides = array<i32>} : memref<8x128xf32, #tpu.memory_space<vmem>>, vector<8x128xf32>,
    %927 = arith.addf %736, %758 : vector<8x128xf32>
    %cst_603 = arith.constant 0.142857149 : f32
    %928 = vector.broadcast %cst_603 : f32 to vector<8x128xf32>
    %929 = arith.mulf %927, %928 : vector<8x128xf32>
    %930 = arith.addf %733, %760 : vector<8x128xf32>
    %cst_604 = arith.constant 0.142857149 : f32
    %931 = vector.broadcast %cst_604 : f32 to vector<8x128xf32>
    %932 = arith.mulf %930, %931 : vector<8x128xf32>
    %cst_605 = arith.constant 5.000000e-01 : f32
    %933 = vector.broadcast %cst_605 : f32 to vector<8x128xf32>
    %934 = arith.mulf %762, %933 : vector<8x128xf32>
    %935 = arith.subf %929, %934 : vector<8x128xf32>
    %cst_606 = arith.constant 5.000000e-01 : f32
    %936 = vector.broadcast %cst_606 : f32 to vector<8x128xf32>
    %937 = arith.mulf %762, %936 : vector<8x128xf32>
    %938 = arith.addf %929, %937 : vector<8x128xf32>
    %cst_607 = arith.constant 5.000000e-01 : f32
    %939 = vector.broadcast %cst_607 : f32 to vector<8x128xf32>
    %940 = arith.mulf %764, %939 : vector<8x128xf32>
    %941 = arith.subf %932, %940 : vector<8x128xf32>
    %cst_608 = arith.constant 5.000000e-01 : f32
    %942 = vector.broadcast %cst_608 : f32 to vector<8x128xf32>
    %943 = arith.mulf %764, %942 : vector<8x128xf32>
    %944 = arith.addf %932, %943 : vector<8x128xf32>
    %945 = arith.subf %938, %935 : vector<8x128xf32>
    %946 = arith.subf %944, %941 : vector<8x128xf32>
    %947 = arith.mulf %945, %946 : vector<8x128xf32>
    %948 = arith.addf %736, %738 : vector<8x128xf32>
    %cst_609 = arith.constant 0.142857149 : f32
    %949 = vector.broadcast %cst_609 : f32 to vector<8x128xf32>
    %950 = arith.mulf %948, %949 : vector<8x128xf32>
    %951 = arith.addf %733, %740 : vector<8x128xf32>
    %cst_610 = arith.constant 0.142857149 : f32
    %952 = vector.broadcast %cst_610 : f32 to vector<8x128xf32>
    %953 = arith.mulf %951, %952 : vector<8x128xf32>
    %cst_611 = arith.constant 5.000000e-01 : f32
    %954 = vector.broadcast %cst_611 : f32 to vector<8x128xf32>
    %955 = arith.mulf %742, %954 : vector<8x128xf32>
    %956 = arith.subf %950, %955 : vector<8x128xf32>
    %cst_612 = arith.constant 5.000000e-01 : f32
    %957 = vector.broadcast %cst_612 : f32 to vector<8x128xf32>
    %958 = arith.mulf %742, %957 : vector<8x128xf32>
    %959 = arith.addf %950, %958 : vector<8x128xf32>
    %cst_613 = arith.constant 5.000000e-01 : f32
    %960 = vector.broadcast %cst_613 : f32 to vector<8x128xf32>
    %961 = arith.mulf %744, %960 : vector<8x128xf32>
    %962 = arith.subf %953, %961 : vector<8x128xf32>
    %cst_614 = arith.constant 5.000000e-01 : f32
    %963 = vector.broadcast %cst_614 : f32 to vector<8x128xf32>
    %964 = arith.mulf %744, %963 : vector<8x128xf32>
    %965 = arith.addf %953, %964 : vector<8x128xf32>
    %966 = arith.minimumf %959, %938 : vector<8x128xf32>
    %967 = arith.maximumf %956, %935 : vector<8x128xf32>
    %968 = arith.subf %966, %967 : vector<8x128xf32>
    %cst_615 = arith.constant 0.000000e+00 : f32
    %969 = vector.broadcast %cst_615 : f32 to vector<8x128xf32>
    %970 = arith.maximumf %968, %969 : vector<8x128xf32>
    %971 = arith.minimumf %965, %944 : vector<8x128xf32>
    %972 = arith.maximumf %962, %941 : vector<8x128xf32>
    %973 = arith.subf %971, %972 : vector<8x128xf32>
    %cst_616 = arith.constant 0.000000e+00 : f32
    %974 = vector.broadcast %cst_616 : f32 to vector<8x128xf32>
    %975 = arith.maximumf %973, %974 : vector<8x128xf32>
    %976 = arith.mulf %970, %975 : vector<8x128xf32>
    %977 = arith.subf %959, %956 : vector<8x128xf32>
    %978 = arith.subf %965, %962 : vector<8x128xf32>
    %979 = arith.mulf %977, %978 : vector<8x128xf32>
    %980 = arith.addf %979, %947 : vector<8x128xf32>
    %981 = arith.subf %980, %976 : vector<8x128xf32>
    %cst_617 = arith.constant 9.99999971E-10 : f32
    %982 = vector.broadcast %cst_617 : f32 to vector<8x128xf32>
    %983 = arith.addf %981, %982 : vector<8x128xf32>
    %984 = arith.divf %976, %983 : vector<8x128xf32>
    %985 = arith.addf %736, %748 : vector<8x128xf32>
    %cst_618 = arith.constant 0.142857149 : f32
    %986 = vector.broadcast %cst_618 : f32 to vector<8x128xf32>
    %987 = arith.mulf %985, %986 : vector<8x128xf32>
    %988 = arith.addf %733, %750 : vector<8x128xf32>
    %cst_619 = arith.constant 0.142857149 : f32
    %989 = vector.broadcast %cst_619 : f32 to vector<8x128xf32>
    %990 = arith.mulf %988, %989 : vector<8x128xf32>
    %cst_620 = arith.constant 5.000000e-01 : f32
    %991 = vector.broadcast %cst_620 : f32 to vector<8x128xf32>
    %992 = arith.mulf %752, %991 : vector<8x128xf32>
    %993 = arith.subf %987, %992 : vector<8x128xf32>
    %cst_621 = arith.constant 5.000000e-01 : f32
    %994 = vector.broadcast %cst_621 : f32 to vector<8x128xf32>
    %995 = arith.mulf %752, %994 : vector<8x128xf32>
    %996 = arith.addf %987, %995 : vector<8x128xf32>
    %cst_622 = arith.constant 5.000000e-01 : f32
    %997 = vector.broadcast %cst_622 : f32 to vector<8x128xf32>
    %998 = arith.mulf %754, %997 : vector<8x128xf32>
    %999 = arith.subf %990, %998 : vector<8x128xf32>
    %cst_623 = arith.constant 5.000000e-01 : f32
    %1000 = vector.broadcast %cst_623 : f32 to vector<8x128xf32>
    %1001 = arith.mulf %754, %1000 : vector<8x128xf32>
    %1002 = arith.addf %990, %1001 : vector<8x128xf32>
    %1003 = arith.minimumf %996, %938 : vector<8x128xf32>
    %1004 = arith.maximumf %993, %935 : vector<8x128xf32>
    %1005 = arith.subf %1003, %1004 : vector<8x128xf32>
    %cst_624 = arith.constant 0.000000e+00 : f32
    %1006 = vector.broadcast %cst_624 : f32 to vector<8x128xf32>
    %1007 = arith.maximumf %1005, %1006 : vector<8x128xf32>
    %1008 = arith.minimumf %1002, %944 : vector<8x128xf32>
    %1009 = arith.maximumf %999, %941 : vector<8x128xf32>
    %1010 = arith.subf %1008, %1009 : vector<8x128xf32>
    %cst_625 = arith.constant 0.000000e+00 : f32
    %1011 = vector.broadcast %cst_625 : f32 to vector<8x128xf32>
    %1012 = arith.maximumf %1010, %1011 : vector<8x128xf32>
    %1013 = arith.mulf %1007, %1012 : vector<8x128xf32>
    %1014 = arith.subf %996, %993 : vector<8x128xf32>
    %1015 = arith.subf %1002, %999 : vector<8x128xf32>
    %1016 = arith.mulf %1014, %1015 : vector<8x128xf32>
    %1017 = arith.addf %1016, %947 : vector<8x128xf32>
    %1018 = arith.subf %1017, %1013 : vector<8x128xf32>
    %cst_626 = arith.constant 9.99999971E-10 : f32
    %1019 = vector.broadcast %cst_626 : f32 to vector<8x128xf32>
    %1020 = arith.addf %1018, %1019 : vector<8x128xf32>
    %1021 = arith.divf %1013, %1020 : vector<8x128xf32>
    %1022 = arith.cmpf ogt, %1021, %984 : vector<8x128xf32>
    %1023 = arith.maximumf %984, %1021 : vector<8x128xf32>
    %1024 = arith.select %1022, %748, %738 : vector<8x128xi1>, vector<8x128xf32>
    %1025 = arith.select %1022, %750, %740 : vector<8x128xi1>, vector<8x128xf32>
    %1026 = arith.select %1022, %752, %742 : vector<8x128xi1>, vector<8x128xf32>
    %1027 = arith.select %1022, %754, %744 : vector<8x128xi1>, vector<8x128xf32>
    %1028 = arith.select %1022, %756, %746 : vector<8x128xi1>, vector<8x128xf32>
    %1029 = arith.subf %1024, %758 : vector<8x128xf32>
    %1030 = arith.mulf %1029, %1029 : vector<8x128xf32>
    %1031 = arith.subf %1025, %760 : vector<8x128xf32>
    %1032 = arith.mulf %1031, %1031 : vector<8x128xf32>
    %1033 = arith.addf %1030, %1032 : vector<8x128xf32>
    %cst_627 = arith.constant 9.99999997E-7 : f32
    %1034 = vector.broadcast %cst_627 : f32 to vector<8x128xf32>
    %1035 = arith.maximumf %1026, %1034 : vector<8x128xf32>
    %1036 = math.sqrt %1035 : vector<8x128xf32>
    %cst_628 = arith.constant 9.99999997E-7 : f32
    %1037 = vector.broadcast %cst_628 : f32 to vector<8x128xf32>
    %1038 = arith.maximumf %762, %1037 : vector<8x128xf32>
    %1039 = math.sqrt %1038 : vector<8x128xf32>
    %1040 = arith.subf %1036, %1039 : vector<8x128xf32>
    %1041 = arith.mulf %1040, %1040 : vector<8x128xf32>
    %cst_629 = arith.constant 9.99999997E-7 : f32
    %1042 = vector.broadcast %cst_629 : f32 to vector<8x128xf32>
    %1043 = arith.maximumf %1027, %1042 : vector<8x128xf32>
    %1044 = math.sqrt %1043 : vector<8x128xf32>
    %cst_630 = arith.constant 9.99999997E-7 : f32
    %1045 = vector.broadcast %cst_630 : f32 to vector<8x128xf32>
    %1046 = arith.maximumf %764, %1045 : vector<8x128xf32>
    %1047 = math.sqrt %1046 : vector<8x128xf32>
    %1048 = arith.subf %1044, %1047 : vector<8x128xf32>
    %1049 = arith.mulf %1048, %1048 : vector<8x128xf32>
    %1050 = arith.addf %1041, %1049 : vector<8x128xf32>
    %c0_631 = arith.constant 0 : index
    %c0_632 = arith.constant 0 : index
    %1051 = vector.load %arg7[%c0_631, %c0_632] : memref<8x128xf32, #tpu.memory_space<vmem>>, vector<8x128xf32>
    %1052 = arith.addf %1033, %1050 : vector<8x128xf32>
    %cst_633 = arith.constant 0.000000e+00 : f32
    %1053 = vector.broadcast %cst_633 : f32 to vector<8x128xf32>
    %1054 = arith.select %769, %1052, %1053 : vector<8x128xi1>, vector<8x128xf32>
    %1055 = arith.addf %1051, %1054 : vector<8x128xf32>
    %c0_634 = arith.constant 0 : index
    %c0_635 = arith.constant 0 : index
    %1056 = vector.load %arg7[%c0_634, %c0_635] : memref<8x128xf32, #tpu.memory_space<vmem>>, vector<8x128xf32>
    tpu.vector_store %arg7[%c0_634, %c0_635], %1055 {strides = array<i32>} : memref<8x128xf32, #tpu.memory_space<vmem>>, vector<8x128xf32>,
    %c0_636 = arith.constant 0 : index
    %c0_637 = arith.constant 0 : index
    %1057 = vector.load %arg8[%c0_636, %c0_637] : memref<8x128xf32, #tpu.memory_space<vmem>>, vector<8x128xf32>
    %1058 = arith.subf %1028, %1023 : vector<8x128xf32>
    %1059 = arith.mulf %1058, %1058 : vector<8x128xf32>
    %cst_638 = arith.constant 0.000000e+00 : f32
    %1060 = vector.broadcast %cst_638 : f32 to vector<8x128xf32>
    %1061 = arith.select %769, %1059, %1060 : vector<8x128xi1>, vector<8x128xf32>
    %1062 = arith.addf %1057, %1061 : vector<8x128xf32>
    %c0_639 = arith.constant 0 : index
    %c0_640 = arith.constant 0 : index
    %1063 = vector.load %arg8[%c0_639, %c0_640] : memref<8x128xf32, #tpu.memory_space<vmem>>, vector<8x128xf32>
    tpu.vector_store %arg8[%c0_639, %c0_640], %1062 {strides = array<i32>} : memref<8x128xf32, #tpu.memory_space<vmem>>, vector<8x128xf32>,
    %c0_i32_641 = arith.constant 0 : i32
    %1064 = arith.cmpi eq, %arg1, %c0_i32_641 : i32
    %1065 = arith.extui %1064 : i1 to i32
    %c0_i32_642 = arith.constant 0 : i32
    %1066 = arith.cmpi ne, %1065, %c0_i32_642 : i32
    scf.if %1066 {
      %c0_643 = arith.constant 0 : index
      %c0_644 = arith.constant 0 : index
      %1067 = vector.load %arg7[%c0_643, %c0_644] : memref<8x128xf32, #tpu.memory_space<vmem>>, vector<8x128xf32>
      %1068 = vector.shape_cast %1067 : vector<8x128xf32> to vector<1x8x128xf32>
      %cst_645 = arith.constant dense<0.000000e+00> : vector<1xf32>
      %1069 = vector.multi_reduction <add>, %1068, %cst_645 [1, 2] : vector<1x8x128xf32> to vector<1xf32>
      %1070 = vector.shape_cast %1069 : vector<1xf32> to vector<1x1x1xf32>
      %1071 = vector.extract %1070[0, 0, 0] : f32 from vector<1x1x1xf32>
      %cst_646 = arith.constant 5.000000e+00 : f32
      %1072 = arith.mulf %cst_646, %1071 : f32
      %c0_647 = arith.constant 0 : index
      %c0_648 = arith.constant 0 : index
      %1073 = vector.load %arg8[%c0_647, %c0_648] : memref<8x128xf32, #tpu.memory_space<vmem>>, vector<8x128xf32>
      %1074 = vector.shape_cast %1073 : vector<8x128xf32> to vector<1x8x128xf32>
      %cst_649 = arith.constant dense<0.000000e+00> : vector<1xf32>
      %1075 = vector.multi_reduction <add>, %1074, %cst_649 [1, 2] : vector<1x8x128xf32> to vector<1xf32>
      %1076 = vector.shape_cast %1075 : vector<1xf32> to vector<1x1x1xf32>
      %1077 = vector.extract %1076[0, 0, 0] : f32 from vector<1x1x1xf32>
      %c0_650 = arith.constant 0 : index
      %c0_651 = arith.constant 0 : index
      %1078 = vector.load %arg9[%c0_650, %c0_651] : memref<8x128xf32, #tpu.memory_space<vmem>>, vector<8x128xf32>
      %1079 = vector.shape_cast %1078 : vector<8x128xf32> to vector<1x8x128xf32>
      %cst_652 = arith.constant dense<0.000000e+00> : vector<1xf32>
      %1080 = vector.multi_reduction <add>, %1079, %cst_652 [1, 2] : vector<1x8x128xf32> to vector<1xf32>
      %1081 = vector.shape_cast %1080 : vector<1xf32> to vector<1x1x1xf32>
      %1082 = vector.extract %1081[0, 0, 0] : f32 from vector<1x1x1xf32>
      %cst_653 = arith.constant 5.000000e-01 : f32
      %1083 = arith.mulf %cst_653, %1082 : f32
      %c0_654 = arith.constant 0 : index
      %c0_655 = arith.constant 0 : index
      %1084 = vector.load %arg10[%c0_654, %c0_655] : memref<8x128xf32, #tpu.memory_space<vmem>>, vector<8x128xf32>
      %1085 = vector.shape_cast %1084 : vector<8x128xf32> to vector<1x8x128xf32>
      %cst_656 = arith.constant dense<0.000000e+00> : vector<1xf32>
      %1086 = vector.multi_reduction <add>, %1085, %cst_656 [1, 2] : vector<1x8x128xf32> to vector<1xf32>
      %1087 = vector.shape_cast %1086 : vector<1xf32> to vector<1x1x1xf32>
      %1088 = vector.extract %1087[0, 0, 0] : f32 from vector<1x1x1xf32>
      %1089 = arith.addf %1072, %1077 : f32
      %1090 = arith.addf %1089, %1083 : f32
      %1091 = arith.addf %1090, %1088 : f32
      %1092 = tpu.iota {dimensions = array<i32: 1>} : vector<8x128xi32>
      %1093 = tpu.iota {dimensions = array<i32: 0>} : vector<8x128xi32>
      %c0_i32_657 = arith.constant 0 : i32
      %1094 = vector.broadcast %c0_i32_657 : i32 to vector<8x128xi32>
      %1095 = arith.cmpi eq, %1092, %1094 : vector<8x128xi32>
      %cst_658 = arith.constant 0.000000e+00 : f32
      %1096 = vector.broadcast %1091 : f32 to vector<8x128xf32>
      %1097 = vector.broadcast %cst_658 : f32 to vector<8x128xf32>
      %1098 = arith.select %1095, %1096, %1097 : vector<8x128xi1>, vector<8x128xf32>
      %c1_i32_659 = arith.constant 1 : i32
      %1099 = vector.broadcast %c1_i32_659 : i32 to vector<8x128xi32>
      %1100 = arith.cmpi eq, %1092, %1099 : vector<8x128xi32>
      %cst_660 = arith.constant 0.000000e+00 : f32
      %1101 = vector.broadcast %1072 : f32 to vector<8x128xf32>
      %1102 = vector.broadcast %cst_660 : f32 to vector<8x128xf32>
      %1103 = arith.select %1100, %1101, %1102 : vector<8x128xi1>, vector<8x128xf32>
      %1104 = arith.addf %1098, %1103 : vector<8x128xf32>
      %c2_i32 = arith.constant 2 : i32
      %1105 = vector.broadcast %c2_i32 : i32 to vector<8x128xi32>
      %1106 = arith.cmpi eq, %1092, %1105 : vector<8x128xi32>
      %cst_661 = arith.constant 0.000000e+00 : f32
      %1107 = vector.broadcast %1077 : f32 to vector<8x128xf32>
      %1108 = vector.broadcast %cst_661 : f32 to vector<8x128xf32>
      %1109 = arith.select %1106, %1107, %1108 : vector<8x128xi1>, vector<8x128xf32>
      %1110 = arith.addf %1104, %1109 : vector<8x128xf32>
      %c3_i32 = arith.constant 3 : i32
      %1111 = vector.broadcast %c3_i32 : i32 to vector<8x128xi32>
      %1112 = arith.cmpi eq, %1092, %1111 : vector<8x128xi32>
      %cst_662 = arith.constant 0.000000e+00 : f32
      %1113 = vector.broadcast %1083 : f32 to vector<8x128xf32>
      %1114 = vector.broadcast %cst_662 : f32 to vector<8x128xf32>
      %1115 = arith.select %1112, %1113, %1114 : vector<8x128xi1>, vector<8x128xf32>
      %1116 = arith.addf %1110, %1115 : vector<8x128xf32>
      %c4_i32 = arith.constant 4 : i32
      %1117 = vector.broadcast %c4_i32 : i32 to vector<8x128xi32>
      %1118 = arith.cmpi eq, %1092, %1117 : vector<8x128xi32>
      %cst_663 = arith.constant 0.000000e+00 : f32
      %1119 = vector.broadcast %1088 : f32 to vector<8x128xf32>
      %1120 = vector.broadcast %cst_663 : f32 to vector<8x128xf32>
      %1121 = arith.select %1118, %1119, %1120 : vector<8x128xi1>, vector<8x128xf32>
      %1122 = arith.addf %1116, %1121 : vector<8x128xf32>
      %c0_i32_664 = arith.constant 0 : i32
      %1123 = vector.broadcast %c0_i32_664 : i32 to vector<8x128xi32>
      %1124 = arith.cmpi eq, %1093, %1123 : vector<8x128xi32>
      %cst_665 = arith.constant 0.000000e+00 : f32
      %1125 = vector.broadcast %cst_665 : f32 to vector<8x128xf32>
      %1126 = arith.select %1124, %1122, %1125 : vector<8x128xi1>, vector<8x128xf32>
      %c0_666 = arith.constant 0 : index
      %c0_667 = arith.constant 0 : index
      %1127 = vector.load %arg6[%c0_666, %c0_667] : memref<8x128xf32, #tpu.memory_space<vmem>>, vector<8x128xf32>
      tpu.vector_store %arg6[%c0_666, %c0_667], %1126 {strides = array<i32>} : memref<8x128xf32, #tpu.memory_space<vmem>>, vector<8x128xf32>,
    } else {
    }
    return
  }
  func.func @transform_0(%arg0: i32, %arg1: i32) -> (i32, i32, i32) {
    %c1_i32 = arith.constant 1 : i32
    %0 = arith.muli %arg0, %c1_i32 : i32
    %1 = arith.addi %0, %arg1 : i32
    %c0_i32 = arith.constant 0 : i32
    %2 = arith.minsi %1, %c0_i32 : i32
    %c0_i32_0 = arith.constant 0 : i32
    %c0_i32_1 = arith.constant 0 : i32
    %c0_i32_2 = arith.constant 0 : i32
    return %c0_i32_0, %2, %c0_i32_1 : i32, i32, i32
  }
  func.func @transform_1(%arg0: i32, %arg1: i32) -> (i32, i32, i32) {
    %c1_i32 = arith.constant 1 : i32
    %0 = arith.muli %arg0, %c1_i32 : i32
    %1 = arith.addi %0, %arg1 : i32
    %c0_i32 = arith.constant 0 : i32
    %2 = arith.minsi %1, %c0_i32 : i32
    %c0_i32_0 = arith.constant 0 : i32
    %c0_i32_1 = arith.constant 0 : i32
    %c0_i32_2 = arith.constant 0 : i32
    return %c0_i32_0, %2, %c0_i32_1 : i32, i32, i32
  }
  func.func @transform_2(%arg0: i32, %arg1: i32) -> (i32, i32, i32) {
    %c1_i32 = arith.constant 1 : i32
    %0 = arith.muli %arg0, %c1_i32 : i32
    %1 = arith.addi %0, %arg1 : i32
    %c0_i32 = arith.constant 0 : i32
    %2 = arith.minsi %1, %c0_i32 : i32
    %c0_i32_0 = arith.constant 0 : i32
    %c0_i32_1 = arith.constant 0 : i32
    %c0_i32_2 = arith.constant 0 : i32
    return %c0_i32_0, %2, %c0_i32_1 : i32, i32, i32
  }
  func.func @transform_3(%arg0: i32, %arg1: i32) -> (i32, i32, i32) {
    %c1_i32 = arith.constant 1 : i32
    %0 = arith.muli %arg0, %c1_i32 : i32
    %1 = arith.addi %0, %arg1 : i32
    %c0_i32 = arith.constant 0 : i32
    %2 = arith.minsi %1, %c0_i32 : i32
    %c0_i32_0 = arith.constant 0 : i32
    %c0_i32_1 = arith.constant 0 : i32
    %c0_i32_2 = arith.constant 0 : i32
    return %c0_i32_0, %2, %c0_i32_1 : i32, i32, i32
  }
  func.func @transform_4(%arg0: i32, %arg1: i32) -> (i32, i32) {
    %c0_i32 = arith.constant 0 : i32
    %c0_i32_0 = arith.constant 0 : i32
    return %arg0, %c0_i32 : i32, i32
  }
}

</mosaic_0001>

<bundles_post_ra>
// kernel: tpu_custom_call.1
= control target key start
LH: loop header
LB: loop body
LE: loop exit
PB: predicated region body
PF: predicated region fallthrough
CT: control target
= control target key end

     0   :  { %9 = vsyncpa [#allocation7], 0  ;;  %s2221_s0 = inlined_call_operand.hbm [shape: f32[30,24,128], index: 0, kind: input, shape index: {}]   ;;  %s2222_s1 = inlined_call_operand.hbm [shape: f32[4,24,128], index: 1, kind: input, shape index: {}]   ;;  %s2223_s2 = inlined_call_operand.hbm [shape: f32[1,24,128], index: 2, kind: input, shape index: {}]   ;;  %s2224_s3 = inlined_call_operand.hbm [shape: f32[20,24,128], index: 3, kind: input, shape index: {}]   ;;  %s2225_s4 = inlined_call_operand.hbm [shape: f32[8,128], index: 4, kind: output, shape index: {}]  }
   0x1   :  { %10 = vsyncpa [#allocation10], 0 }
   0x2   :  { %11 = vsyncpa [#allocation13], 0 }
   0x3   :  { %12 = vsyncpa [#allocation8], 0  ;;  %s42_s17 = sshll.u32 %s2222_s1, 4  ;;  %s1428_s18 = smov [#allocation9]   ;;  %s43_s17 = int_to_ptr.hbm [resolvable:$true] %s42_s17 }
   0x4   :  { %s44_s19 = sshll.u32 %s1428_s18, 4  ;;  %s23_s22 = sshll.u32 %s2221_s0, 4  ;;  %s45_s19 = int_to_ptr.vmem [resolvable:$true] %s44_s19  ;;  %s24_s22 = int_to_ptr.hbm [resolvable:$true] %s23_s22 }
   0x5   :  { %s1429_s23 = smov 128   ;;  %s1430_s24 = smov 8  }
   0x6   :  { %50 = dma.hbm_to_vmem [thread:$0]  %s43_s17, 1536, %s45_s19, [#allocation10], %s1429_s23, %s1429_s23, %s1430_s24  }
   0x7   :  { %s1431_s25 = smov [#allocation6]   ;;  %s61_s29 = sshll.u32 %s2223_s2, 4  ;;  %s62_s29 = int_to_ptr.hbm [resolvable:$true] %s61_s29 }
   0x8   :  { %s25_s26 = sshll.u32 %s1431_s25, 4  ;;  %s80_s5 = sshll.u32 %s2224_s3, 4  ;;  %s26_s26 = int_to_ptr.vmem [resolvable:$true] %s25_s26  ;;  %s81_s5 = int_to_ptr.hbm [resolvable:$true] %s80_s5 }
   0x9   :  { %31 = dma.hbm_to_vmem [thread:$0]  %s24_s22, 11520, %s26_s26, [#allocation7], %s1429_s23, %s1429_s23, %s1430_s24  }
   0xa   :  { %s1432_s6 = smov [#allocation11]   ;;  %s1433_s0 = smov [#allocation12]  }
   0xb   :  { %s63_s7 = sshll.u32 %s1432_s6, 4  ;;  %s82_s8 = sshll.u32 %s1433_s0, 4  ;;  %s64_s7 = int_to_ptr.vmem [resolvable:$true] %s63_s7  ;;  %s83_s8 = int_to_ptr.vmem [resolvable:$true] %s82_s8 }
   0xc   :  { %69 = dma.hbm_to_vmem [thread:$0]  %s62_s29, 384, %s64_s7, [#allocation10], %s1429_s23, %s1429_s23, %s1430_s24  }
   0xd   :  { %88 = dma.hbm_to_vmem [thread:$0]  %s81_s5, 7680, %s83_s8, [#allocation13], %s1429_s23, %s1429_s23, %s1430_s24  }
   0xe   :  { %1420 = dma.done.wait [#allocation7], 11520  }
   0xf   :  { %1421 = vsyncadd [#allocation7], 4294955776 }
  0x10   :  { %1422 = dma.done.wait [#allocation10], 1920  }
  0x11   :  { %1423 = vsyncadd [#allocation10], 4294965376 }
  0x12   :  { %1424 = dma.done.wait [#allocation13], 7680  }
  0x13   :  { %1425 = vsyncadd [#allocation13], 4294959616  ;;  %v131_v0 = vlaneseq  ;;  %v159_v9 = vld [vmem:[#allocation6 + $0x60] sm:$0xff]  ;;  %v169_v10 = vld [vmem:[#allocation6 + $0xd8] sm:$0xff]  ;;  %s1434_s16 = smov [#allocation14]   ;;  %s1222_s20 = sshll.u32 %s2225_s4, 4  ;;  %s1223_s20 = int_to_ptr.hbm [resolvable:$true] %s1222_s20 }
  0x14   :  { %v177_v11 = vld [vmem:[#allocation11] sm:$0xff]  ;;  %v326_v13 = vmul.f32 %v159_v9, %v159_v9  ;;  %v526_v14 = vld [vmem:[#allocation6 + $0x68] sm:$0xff]  ;;  %v531_v15 = vld [vmem:[#allocation6 + $0xe0] sm:$0xff]  ;;  %v327_v17 = vmul.f32 %v169_v10, %v169_v10  ;;  %s1220_s17 = sshll.u32 %s1434_s16, 4  ;;  %s1221_s17 = int_to_ptr.vmem [resolvable:$true] %s1220_s17 }
  0x15   :  { %v1472_v1 = vshrl.u32 %v131_v0, 7  ;;  %v1474_v2 = vand.u32 127, %v131_v0  ;;  %vm180_vm1 = vcmp.le.f32.partialorder %v177_v11, 0.5  ;;  %v1480_v16 = vld [vmem:[#allocation11 + $0x8] sm:$0xff]  ;;  %v646_v19 = vmul.f32 %v526_v14, %v526_v14  ;;  %v846_v20 = vld [vmem:[#allocation6 + $0x70] sm:$0xff]  ;;  %v851_v25 = vld [vmem:[#allocation6 + $0xe8] sm:$0xff] }
  0x16   :  { %vm539_vm2 = vcmp.le.f32.partialorder %v1480_v16, 0.5  ;;  %v647_v23 = vmul.f32 %v531_v15, %v531_v15  ;;  %v856_v26 = vld [vmem:[#allocation11 + $0x10] sm:$0xff]  ;;  %v966_v27 = vmul.f32 %v846_v20, %v846_v20  ;;  %v328_v28 = vadd.f32 %v327_v17, %v326_v13  ;;  %v1511_v53 = vld [vmem:[#allocation6 + $0x30] sm:$0xff]  ;;  %v1515_v56 = vld [vmem:[#allocation9 + $0x48] sm:$0xff] }
  0x17   :  { %2236 = vst [vmem:[#allocation19_spill] sm:$0xff] %v1472_v1  ;;  %v137_v3 = vmul.u32 128, %v1472_v1  ;;  %v507_v4 = vadd.s32 8, %v1472_v1  ;;  %v827_v5 = vadd.s32 16, %v1472_v1  ;;  %vm859_vm5 = vcmp.le.f32.partialorder %v856_v26, 0.5  ;;  %v1513_v55 = vld [vmem:[#allocation9 + $0x30] sm:$0xff] }
  0x18   :  { %2237 = vst [vmem:[#allocation20_spill] sm:$0xff] %v1474_v2  ;;  %v648_v31 = vadd.f32 %v647_v23, %v646_v19  ;;  %v967_v35 = vmul.f32 %v851_v25, %v851_v25  ;;  %vm178_vm8 = vcmp.gt.f32.partialorder %v177_v11, 0.5  ;;  %v1517_v58 = vld [vmem:[#allocation6 + $0x18] sm:$0xff]  ;;  %v1519_v59 = vld [vmem:[#allocation6 + $0x48] sm:$0xff]  ;;  %v1523_v62 = vld [vmem:[#allocation6 + $0x90] sm:$0xff] }
  0x19   :  { %v138_v6 = vadd.s32 %v137_v3, %v1474_v2  ;;  %v508_v7 = vmul.u32 128, %v507_v4  ;;  %v828_v8 = vmul.u32 128, %v827_v5  ;;  %v1521_v60 = vld [vmem:[#allocation9 + $0x18] sm:$0xff]  ;;  %v1527_v0 = vld [vmem:[#allocation6 + $0xc0] sm:$0xff]  ;;  %v349_v3 = vmul.f32 0.5, %v1511_v53  ;;  %v1543_v17 = vld [vmem:[#allocation9] sm:$0xff] }
  0x1a   :  { %v968_v41 = vadd.f32 %v967_v35, %v966_v27  ;;  %v1525_v63 = vld [vmem:[#allocation6 + $0xa8] sm:$0xff]  ;;  %v1537_v13 = vld [vmem:[#allocation9 + $0x50] sm:$0xff]  ;;  %v1548_v22 = vld [vmem:[#allocation9 + $0x20] sm:$0xff] }
  0x1b   :  { %vm139_vm0 = vcmp.lt.s32.totalorder %v138_v6, 2940  ;;  %v140_v12 = vcvt.s32.f32 %v138_v6  ;;  %v1483_v18 = vadd.s32 %v508_v7, %v1474_v2  ;;  %v1492_v24 = vadd.s32 %v828_v8, %v1474_v2  ;;  %v1532_v8 = vld [vmem:[#allocation6 + $0x38] sm:$0xff]  ;;  %v1541_v15 = vld [vmem:[#allocation6] sm:$0xff]  ;;  %2244 = vst [vmem:[#allocation23_spill] sm:$0xff] %v1548_v22 }
  0x1c   :  { %vm1487_vm3 = vmand %vm180_vm1, %vm139_vm0  ;;  %v336_v6 = vmul.f32 0.5, %v1513_v55  ;;  %v339_v7 = vmul.f32 0.5, %v1515_v56  ;;  %2243 = vst [vmem:[#allocation22_spill] sm:$0xff] %v1532_v8  ;;  %v389_v20 = vmul.f32 0.5, %v1525_v63  ;;  %v1550_v27 = vld [vmem:[#allocation6 + $0x20] sm:$0xff] }
  0x1d   :  { %v141_v21 = vadd.f32 0.5, %v140_v12  ;;  %2240 = vst [vmem:[#allocation21_spill] sm:$0xff] %v1492_v24  ;;  %vm510_vm4 = vcmp.lt.s32.totalorder %v1483_v18, 2940  ;;  %v511_v29 = vcvt.s32.f32 %v1483_v18  ;;  %vm830_vm7 = vcmp.lt.s32.totalorder %v1492_v24, 2940  ;;  %vm1507_vm10 = vmand %vm178_vm8, %vm139_vm0 }
  0x1e   :  { %vm540_vm6 = vmand %vm539_vm2, %vm510_vm4  ;;  %v831_v32 = vcvt.s32.f32 %v1492_v24  ;;  %v329_v33 = vsel %vm1487_vm3, %v328_v28, 0.0  ;;  %2245 = vst [vmem:[#allocation24_spill] sm:$0xff] %v1550_v27  ;;  %v1553_v28 = vmul.f32 0.5, %v1532_v8 }
  0x1f   :  { %v142_v30 = vmul.f32 0.020408163, %v141_v21  ;;  %v512_v34 = vadd.f32 0.5, %v511_v29  ;;  %v649_v37 = vsel %vm540_vm6, %v648_v31, 0.0  ;;  %vm860_vm9 = vmand %vm859_vm5, %vm830_vm7  ;;  %v392_v21 = vmul.f32 0.5, %v1527_v0  ;;  %v1558_v31 = vld [vmem:[#allocation6 + $0x78] sm:$0xff] }
  0x20   :  { %v832_v38 = vadd.f32 0.5, %v831_v32  ;;  %v650_v40 = vadd.f32 %v649_v37, %v329_v33  ;;  %v969_v46 = vsel %vm860_vm9, %v968_v41, 0.0 }
  0x21   :  { %v143_v36 = vfloor.f32 %v142_v30  ;;  %v513_v39 = vmul.f32 0.020408163, %v512_v34  ;;  %v1561_v34 = vmul.f32 0.5, %v1537_v13 }
  0x22   :  { %v833_v45 = vmul.f32 0.020408163, %v832_v38  ;;  %v970_v48 = vadd.f32 %v969_v46, %v650_v40 }
  0x23   :  { %v144_v43 = vmul.f32 49.0, %v143_v36  ;;  %v514_v44 = vfloor.f32 %v513_v39 }
  0x24   :  { %1170 = vadd.xlane.f32.xlu1 %v970_v48  ;;  %v834_v52 = vfloor.f32 %v833_v45 }
  0x25   :  { %v145_v47 = vsub.f32 %v140_v12, %v144_v43  ;;  %v515_v49 = vmul.f32 49.0, %v514_v44  ;;  %v352_v12 = vmul.f32 0.5, %v1519_v59 }
  0x26   :  { %v835_v5 = vmul.f32 49.0, %v834_v52 }
  0x27   :  { %v146_v50 = vadd.f32 0.5, %v145_v47  ;;  %v516_v51 = vsub.f32 %v511_v29, %v515_v49 }
  0x28   :  { %v1556_v30 = vsub.f32 %v831_v32, %v835_v5 }
  0x29   :  { %v147_v54 = vmul.f32 0.14285715, %v146_v50  ;;  %v517_v57 = vadd.f32 0.5, %v516_v51 }
  0x2b   :  { %v148_v61 = vfloor.f32 %v147_v54  ;;  %v518_v4 = vmul.f32 0.14285715, %v517_v57 }
  0x2d   :  { %v149_v9 = vmul.f32 7.0, %v148_v61  ;;  %v334_v10 = vadd.f32 %v1521_v60, %v148_v61  ;;  %v347_v11 = vadd.f32 %v1517_v58, %v148_v61  ;;  %v1539_v14 = vfloor.f32 %v518_v4 }
  0x2e   :  { %v387_v19 = vadd.f32 %v1523_v62, %v148_v61 }
  0x2f   :  { %v150_v23 = vsub.f32 %v145_v47, %v149_v9  ;;  %v335_v25 = vmul.f32 0.14285715, %v334_v10  ;;  %v348_v26 = vmul.f32 0.14285715, %v347_v11  ;;  %v520_v29 = vmul.f32 7.0, %v1539_v14 }
  0x30   :  { %v388_v33 = vmul.f32 0.14285715, %v387_v19  ;;  %v654_v38 = vadd.f32 %v1548_v22, %v1539_v14  ;;  %v667_v32 = vadd.f32 %v1550_v27, %v1539_v14  ;;  %v1640_v22 = vld [vmem:[#allocation6 + $0x98] sm:$0xff] }
  0x31   :  { %v332_v35 = vadd.f32 %v1543_v17, %v150_v23  ;;  %v340_v36 = vsub.f32 %v335_v25, %v339_v7  ;;  %v341_v37 = vadd.f32 %v339_v7, %v335_v25  ;;  %v345_v39 = vadd.f32 %v1541_v15, %v150_v23 }
  0x32   :  { %v353_v40 = vsub.f32 %v348_v26, %v352_v12  ;;  %v354_v41 = vadd.f32 %v352_v12, %v348_v26  ;;  %v1569_v43 = vsub.f32 %v516_v51, %v520_v29  ;;  %v385_v46 = vadd.f32 %v1558_v31, %v150_v23 }
  0x33   :  { %v333_v44 = vmul.f32 0.14285715, %v332_v35  ;;  %v343_v45 = vsub.f32 %v341_v37, %v340_v36  ;;  %v346_v47 = vmul.f32 0.14285715, %v345_v39  ;;  %v393_v61 = vsub.f32 %v388_v33, %v392_v21 }
  0x34   :  { %v359_v48 = vmin.f32 %v354_v41, %v341_v37  ;;  %v360_v49 = vmax.f32 %v353_v40, %v340_v36  ;;  %v365_v50 = vsub.f32 %v354_v41, %v353_v40  ;;  %v386_v57 = vmul.f32 0.14285715, %v385_v46  ;;  %v1572_v41 = vld [vmem:[#allocation9 + $0x8] sm:$0xff] }
  0x35   :  { %v337_v52 = vsub.f32 %v333_v44, %v336_v6  ;;  %v338_v54 = vadd.f32 %v336_v6, %v333_v44  ;;  %v350_v4 = vsub.f32 %v346_v47, %v349_v3  ;;  %v351_v5 = vadd.f32 %v349_v3, %v346_v47  ;;  %2246 = vst [vmem:[#allocation25_spill] sm:$0xff] %v1572_v41 }
  0x36   :  { %v361_v7 = vsub.f32 %v359_v48, %v360_v49  ;;  %v394_v9 = vadd.f32 %v392_v21, %v388_v33  ;;  %v390_v11 = vsub.f32 %v386_v57, %v389_v20  ;;  %v391_v51 = vadd.f32 %v389_v20, %v386_v57  ;;  %v1580_v49 = vld [vmem:[#allocation6 + $0x8] sm:$0xff] }
  0x37   :  { %v342_v10 = vsub.f32 %v338_v54, %v337_v52  ;;  %v400_v12 = vmax.f32 %v393_v61, %v340_v36  ;;  %v355_v19 = vmin.f32 %v351_v5, %v338_v54  ;;  %v356_v25 = vmax.f32 %v350_v4, %v337_v52 }
  0x38   :  { %v362_v26 = vmax.f32 %v361_v7, 0.0  ;;  %v364_v23 = vsub.f32 %v351_v5, %v350_v4  ;;  %v395_v35 = vmin.f32 %v391_v51, %v338_v54  ;;  %v396_v39 = vmax.f32 %v390_v11, %v337_v52 }
  0x39   :  { %v344_v29 = vmul.f32 %v343_v45, %v342_v10  ;;  %v399_v40 = vmin.f32 %v394_v9, %v341_v37  ;;  %v357_v6 = vsub.f32 %v355_v19, %v356_v25  ;;  %v404_v46 = vsub.f32 %v391_v51, %v390_v11  ;;  %v1582_v37 = vld [vmem:[#allocation9 + $0x38] sm:$0xff]  ;;  %v1599_v51 = vld [vmem:[#allocation6 + $0x80] sm:$0xff] }
  0x3a   :  { %v366_v44 = vmul.f32 %v365_v50, %v364_v23  ;;  %v405_v3 = vsub.f32 %v394_v9, %v393_v61  ;;  %v397_v47 = vsub.f32 %v395_v35, %v396_v39  ;;  %v1575_v33 = vmax.f32 %v1513_v55, 1e-06  ;;  %v1588_v55 = vld [vmem:[#allocation6 + $0x50] sm:$0xff] }
  0x3b   :  { %v401_v21 = vsub.f32 %v399_v40, %v400_v12  ;;  %v1578_v20 = vmax.f32 %v1515_v56, 1e-06  ;;  %v358_v36 = vmax.f32 %v357_v6, 0.0  ;;  %v652_v50 = vadd.f32 %v1572_v41, %v1569_v43  ;;  %2247 = vst [vmem:[#allocation26_spill] sm:$0xff] %v1588_v55 }
  0x3c   :  { %v367_v48 = vadd.f32 %v366_v44, %v344_v29  ;;  %v406_v45 = vmul.f32 %v405_v3, %v404_v46  ;;  %v837_v52 = vadd.f32 0.5, %v1556_v30  ;;  %v398_v54 = vmax.f32 %v397_v47, 0.0 }
  0x3d   :  { %v402_v57 = vmax.f32 %v401_v21, 0.0  ;;  %1257 = vrsqrt.f32 %v1575_v33  ;;  %v1590_v56 = vmul.f32 %v362_v26, %v358_v36  ;;  %v655_v4 = vmul.f32 0.14285715, %v654_v38 }
  0x3e   :  { %v407_v61 = vadd.f32 %v406_v45, %v344_v29  ;;  %1259 = vrsqrt.f32 %v1578_v20  ;;  %v653_v7 = vmul.f32 0.14285715, %v652_v50  ;;  %v656_v9 = vmul.f32 0.5, %v1582_v37  ;;  %v1603_v29 = vld [vmem:[#allocation6 + $0xb0] sm:$0xff] }
  0x3f   :  { %v1593_v5 = vmul.f32 %v402_v57, %v398_v54  ;;  %v665_v10 = vadd.f32 %v1580_v49, %v1569_v43  ;;  %v368_v11 = vsub.f32 %v367_v48, %v1590_v56  ;;  %v668_v12 = vmul.f32 0.14285715, %v667_v32  ;;  %2248 = vst [vmem:[#allocation27_spill] sm:$0xff] %v1603_v29 }
  0x40   :  { %v672_v19 = vmul.f32 0.5, %v1588_v55  ;;  %v838_v25 = vmul.f32 0.14285715, %v837_v52  ;;  %v1606_v35 = vsub.f32 %v655_v4, %v1561_v34  ;;  %v1609_v39 = vadd.f32 %v1561_v34, %v655_v4 }
  0x41   :  { %v408_v26 = vsub.f32 %v407_v61, %v1593_v5  ;;  %v666_v23 = vmul.f32 0.14285715, %v665_v10  ;;  %v369_v38 = vadd.f32 1e-09, %v368_v11  ;;  %v1613_v44 = vadd.f32 %v656_v9, %v653_v7 }
  0x42   :  { %v705_v46 = vadd.f32 %v1599_v51, %v1569_v43  ;;  %v1620_v47 = vsub.f32 %v653_v7, %v656_v9  ;;  %v674_v36 = vadd.f32 %v672_v19, %v668_v12  ;;  %v1623_v34 = vfloor.f32 %v838_v25 }
  0x43   :  { %v1611_v40 = vpop.eup %1257  ;;  %v409_v6 = vadd.f32 1e-09, %v408_v26  ;;  %v671_v32 = vadd.f32 %v1553_v28, %v666_v23  ;;  %1261 = vrcp.f32 %v369_v38  ;;  %v670_v21 = vsub.f32 %v666_v23, %v1553_v28 }
  0x44   :  { %v1618_v3 = vpop.eup %1259  ;;  %v673_v48 = vsub.f32 %v668_v12, %v672_v19  ;;  %v709_v45 = vmul.f32 0.5, %v1603_v29  ;;  %v452_v50 = vmul.f32 %v1611_v40, %v1575_v33  ;;  %v662_v52 = vsub.f32 %v1613_v44, %v1620_v47 }
  0x45   :  { %1263 = vrcp.f32 %v409_v6  ;;  %v480_v43 = vmul.f32 %v1618_v3, %v1578_v20  ;;  %v663_v54 = vsub.f32 %v1609_v39, %v1606_v35  ;;  %vm375_vm11 = vweird.f32 %v369_v38 }
  0x46   :  { %v379_v28 = vand.u32 2147483647, %v369_v38  ;;  %v675_v57 = vmin.f32 %v671_v32, %v1613_v44  ;;  %v706_v61 = vmul.f32 0.14285715, %v705_v46  ;;  %v453_v4 = vmul.f32 %v1611_v40, %v452_v50 }
  0x47   :  { %v481_v7 = vmul.f32 %v1618_v3, %v480_v43  ;;  %v676_v9 = vmax.f32 %v670_v21, %v1620_v47  ;;  %v679_v10 = vmin.f32 %v674_v36, %v1609_v39  ;;  %v381_v11 = vand.u32 2147483648, %v369_v38 }
  0x48   :  { %v680_v12 = vmax.f32 %v673_v48, %v1606_v35  ;;  %v684_v19 = vsub.f32 %v671_v32, %v670_v21  ;;  %v685_v25 = vsub.f32 %v674_v36, %v673_v48  ;;  %vm415_vm12 = vweird.f32 %v409_v6 }
  0x49   :  { %v1262_v26 = vpop.eup %1261  ;;  %v454_v23 = vmul.f32 0.5, %v453_v4  ;;  %v482_v1 = vmul.f32 0.5, %v481_v7  ;;  %v677_v2 = vsub.f32 %v675_v57, %v676_v9  ;;  %v1642_v50 = vmul.f32 %v663_v54, %v662_v52 }
  0x4a   :  { %v371_v46 = vmul.f32 %v1262_v26, %v369_v38  ;;  %v681_v43 = vsub.f32 %v679_v10, %v680_v12  ;;  %v686_v41 = vmul.f32 %v685_v25, %v684_v19  ;;  %vm376_vm13 = vweird.f32 %v1262_v26  ;;  %v1668_v38 = vld [vmem:[#allocation6 + $0xc8] sm:$0xff] }
  0x4b   :  { %v1264_v24 = vpop.eup %1263  ;;  %v419_v29 = vand.u32 2147483647, %v409_v6  ;;  %v421_v8 = vand.u32 2147483648, %v409_v6  ;;  %v455_v32 = vsub.f32 1.5, %v454_v23  ;;  %v678_v21 = vmax.f32 %v677_v2, 0.0  ;;  %vm1654_vm0 = vmor %vm375_vm11, %vm376_vm13 }
  0x4c   :  { %v411_v55 = vmul.f32 %v1264_v24, %v409_v6  ;;  %v372_v27 = vsub.f32 1.0, %v371_v46  ;;  %v682_v36 = vmax.f32 %v681_v43, 0.0  ;;  %vm416_vm14 = vweird.f32 %v1264_v24 }
  0x4d   :  { %v483_v4 = vsub.f32 1.5, %v482_v1  ;;  %v707_v57 = vadd.f32 %v1640_v22, %v1539_v14  ;;  %v840_v7 = vmul.f32 7.0, %v1623_v34  ;;  %vm1647_vm15 = vcmp.eq.f32.partialorder %v379_v28, 8.507059e+37  ;;  %vm1663_vm2 = vmor %vm415_vm12, %vm416_vm14  ;;  %v1782_v28 = vld [vmem:[#allocation9 + $0x28] sm:$0xff] }
  0x4e   :  { %v412_v48 = vsub.f32 1.0, %v411_v55  ;;  %v373_v52 = vmul.f32 %v1262_v26, %v372_v27  ;;  %v687_v9 = vadd.f32 %v686_v41, %v1642_v50  ;;  %v382_v55 = vor.u32 1.1754944e-38, %v381_v11 }
  0x4f   :  { %vm1658_vm1 = vcmp.eq.f32.partialorder %v419_v29, 8.507059e+37  ;;  %v422_v14 = vor.u32 1.1754944e-38, %v421_v8  ;;  %v456_v41 = vmul.f32 %v1611_v40, %v455_v32  ;;  %v1670_v12 = vmul.f32 %v682_v36, %v678_v21 }
  0x50   :  { %v413_v1 = vmul.f32 %v1264_v24, %v412_v48  ;;  %v374_v27 = vadd.f32 %v1262_v26, %v373_v52  ;;  %v1672_v19 = vsub.f32 %v706_v61, %v709_v45  ;;  %v484_v29 = vmul.f32 %v1618_v3, %v483_v4 }
  0x51   :  { %v708_v25 = vmul.f32 0.14285715, %v707_v57  ;;  %v1675_v23 = vadd.f32 %v709_v45, %v706_v61  ;;  %vm458_vm3 = vcmp.eq.f32.partialorder %v1575_v33, inf  ;;  %v461_v6 = vand.u32 2147483648, %v1575_v33  ;;  %v1299_v57 = vld [vmem:[#allocation6 + $0xe8] sm:$0xff] }
  0x52   :  { %v414_v11 = vadd.f32 %v1264_v24, %v413_v1  ;;  %v378_v8 = vsel %vm1654_vm0, %v1262_v26, %v374_v27  ;;  %v688_v40 = vsub.f32 %v687_v9, %v1670_v12  ;;  %vm486_vm5 = vcmp.eq.f32.partialorder %v1578_v20, inf }
  0x53   :  { %v383_v46 = vsel %vm1647_vm15, %v382_v55, %v378_v8  ;;  %v712_v3 = vmul.f32 0.5, %v1668_v38  ;;  %v457_v26 = vmul.f32 %v456_v41, %v1575_v33  ;;  %vm460_vm6 = vcmp.eq.f32.partialorder %v1575_v33, 0.0 }
  0x54   :  { %v418_v43 = vsel %vm1663_vm2, %v1264_v24, %v414_v11  ;;  %v1689_v45 = vmul.f32 %v383_v46, %v1590_v56  ;;  %v1694_v32 = vadd.f32 1e-09, %v688_v40  ;;  %v485_v24 = vmul.f32 %v484_v29, %v1578_v20 }
  0x55   :  { %v423_v61 = vsel %vm1658_vm1, %v422_v14, %v418_v43  ;;  %v715_v36 = vmin.f32 %v1675_v23, %v1613_v44  ;;  %v713_v56 = vsub.f32 %v708_v25, %v712_v3  ;;  %v714_v48 = vadd.f32 %v712_v3, %v708_v25 }
  0x56   :  { %v1697_v21 = vmul.f32 %v423_v61, %v1593_v5  ;;  %1265 = vrcp.f32 %v1694_v32  ;;  %v716_v4 = vmax.f32 %v1672_v19, %v1620_v47  ;;  %vm488_vm9 = vcmp.eq.f32.partialorder %v1578_v20, 0.0 }
  0x57   :  { %v489_v5 = vand.u32 2147483648, %v1578_v20  ;;  %vm537_vm11 = vcmp.gt.f32.partialorder %v1480_v16, 0.5  ;;  %v459_v54 = vsel %vm458_vm3, %v1575_v33, %v457_v26  ;;  %v720_v9 = vmax.f32 %v713_v56, %v1606_v35 }
  0x58   :  { %vm1708_vm8 = vcmp.gt.f32.partialorder %v1697_v21, %v1689_v45  ;;  %vm1732_vm12 = vmand %vm537_vm11, %vm510_vm4  ;;  %v717_v18 = vsub.f32 %v715_v36, %v716_v4  ;;  %v1751_v2 = vsub.f32 %v1556_v30, %v840_v7  ;;  %v1759_v10 = vsel %vm460_vm6, %v461_v6, %v459_v54  ;;  %v1768_v30 = vld [vmem:[#allocation9 + $0x10] sm:$0xff] }
  0x59   :  { %v427_v44 = vsel %vm1708_vm8, %v1558_v31, %v1541_v15  ;;  %v429_v47 = vsel %vm1708_vm8, %v1525_v63, %v1511_v53  ;;  %v430_v52 = vsel %vm1708_vm8, %v1527_v0, %v1519_v59  ;;  %v487_v53 = vsel %vm486_vm5, %v1578_v20, %v485_v24 }
  0x5a   :  { %v1736_v15 = vmax.f32 %v429_v47, 1e-06  ;;  %v1738_v31 = vmax.f32 %v430_v52, 1e-06  ;;  %v699_v59 = vand.u32 2147483647, %v1694_v32  ;;  %v428_v63 = vsel %vm1708_vm8, %v1523_v62, %v1517_v58 }
  0x5b   :  { %v719_v0 = vmin.f32 %v714_v48, %v1609_v39  ;;  %v432_v55 = vsub.f32 %v427_v44, %v1543_v17  ;;  %v1764_v58 = vsel %vm488_vm9, %v489_v5, %v487_v53  ;;  %v724_v62 = vsub.f32 %v1675_v23, %v1672_v19  ;;  %v1791_v23 = vld [vmem:[#allocation9 + $0x40] sm:$0xff]  ;;  %v1853_v39 = vld [vmem:[#allocation6 + $0x58] sm:$0xff] }
  0x5c   :  { %1267 = vrsqrt.f32 %v1736_v15  ;;  %v1755_v1 = vpop.eup %1265  ;;  %v434_v17 = vsub.f32 %v428_v63, %v1521_v60  ;;  %vm695_vm4 = vweird.f32 %v1694_v32  ;;  %v701_v33 = vand.u32 2147483648, %v1694_v32  ;;  %v1822_v52 = vld [vmem:[#allocation6 + $0x10] sm:$0xff] }
  0x5d   :  { %1269 = vrsqrt.f32 %v1738_v31  ;;  %v691_v35 = vmul.f32 %v1755_v1, %v1694_v32  ;;  %vm1775_vm13 = vcmp.eq.f32.partialorder %v699_v59, 8.507059e+37  ;;  %v718_v20 = vmax.f32 %v717_v18, 0.0 }
  0x5e   :  { %v721_v7 = vsub.f32 %v719_v0, %v720_v9  ;;  %v725_v14 = vsub.f32 %v714_v48, %v713_v56  ;;  %v1780_v27 = vmax.f32 %v1582_v37, 1e-06  ;;  %v433_v60 = vmul.f32 %v432_v55, %v432_v55  ;;  %v1812_v56 = vld [vmem:[#allocation9 + $0x58] sm:$0xff] }
  0x5f   :  { %v692_v41 = vsub.f32 1.0, %v691_v35  ;;  %v1785_v19 = vmax.f32 %v1537_v13, 1e-06  ;;  %v972_v11 = vadd.f32 %v1768_v30, %v1751_v2  ;;  %vm696_vm14 = vweird.f32 %v1755_v1  ;;  %v1832_v35 = vld [vmem:[#allocation6 + $0x28] sm:$0xff] }
  0x60   :  { %v722_v29 = vmax.f32 %v721_v7, 0.0  ;;  %v726_v25 = vmul.f32 %v725_v14, %v724_v62  ;;  %1271 = vrsqrt.f32 %v1780_v27  ;;  %v435_v8 = vmul.f32 %v434_v17, %v434_v17  ;;  %vm1808_vm0 = vmor %vm695_vm4, %vm696_vm14 }
  0x61   :  { %v693_v6 = vmul.f32 %v1755_v1, %v692_v41  ;;  %1273 = vrsqrt.f32 %v1785_v19  ;;  %v974_v13 = vadd.f32 %v1782_v28, %v1623_v34  ;;  %v702_v43 = vor.u32 1.1754944e-38, %v701_v33 }
  0x62   :  { %v1268_v37 = vpop.eup %1267  ;;  %v1798_v3 = vmul.f32 %v722_v29, %v718_v20  ;;  %v727_v61 = vadd.f32 %v726_v25, %v1642_v50  ;;  %vm445_vm15 = vcmp.eq.f32.partialorder %v1736_v15, inf  ;;  %v973_v48 = vmul.f32 0.14285715, %v972_v11  ;;  %v1844_v25 = vld [vmem:[#allocation6 + $0x40] sm:$0xff] }
  0x63   :  { %v1270_v40 = vpop.eup %1269  ;;  %v439_v46 = vmul.f32 %v1268_v37, %v1736_v15  ;;  %v694_v24 = vadd.f32 %v1755_v1, %v693_v6  ;;  %v976_v4 = vmul.f32 0.5, %v1791_v23  ;;  %vm447_vm1 = vcmp.eq.f32.partialorder %v1736_v15, 0.0 }
  0x64   :  { %v467_v26 = vmul.f32 %v1270_v40, %v1738_v31  ;;  %v448_v5 = vand.u32 2147483648, %v1736_v15  ;;  %vm473_vm2 = vcmp.eq.f32.partialorder %v1738_v31, inf  ;;  %v728_v44 = vsub.f32 %v727_v61, %v1798_v3 }
  0x65   :  { %v440_v50 = vmul.f32 %v1268_v37, %v439_v46  ;;  %v1819_v47 = vadd.f32 %v435_v8, %v433_v60  ;;  %vm475_vm3 = vcmp.eq.f32.partialorder %v1738_v31, 0.0  ;;  %v975_v54 = vmul.f32 0.14285715, %v974_v13 }
  0x66   :  { %v468_v32 = vmul.f32 %v1270_v40, %v467_v26  ;;  %v1272_v53 = vpop.eup %1271  ;;  %v698_v63 = vsel %vm1808_vm0, %v1755_v1, %v694_v24  ;;  %v729_v18 = vadd.f32 1e-09, %v728_v44  ;;  %v979_v0 = vmul.f32 0.5, %v1812_v56 }
  0x67   :  { %v441_v59 = vmul.f32 0.5, %v440_v50  ;;  %v1828_v9 = vpop.eup %1273  ;;  %v476_v62 = vand.u32 2147483648, %v1738_v31  ;;  %v772_v17 = vmul.f32 %v1272_v53, %v1780_v27  ;;  %v1834_v33 = vsub.f32 %v973_v48, %v976_v4 }
  0x68   :  { %v469_v55 = vmul.f32 0.5, %v468_v32  ;;  %1275 = vrcp.f32 %v729_v18  ;;  %v1836_v7 = vadd.f32 %v976_v4, %v973_v48  ;;  %v985_v1 = vadd.f32 %v1822_v52, %v1751_v2 }
  0x69   :  { %v442_v20 = vsub.f32 1.5, %v441_v59  ;;  %v703_v60 = vsel %vm1775_vm13, %v702_v43, %v698_v63  ;;  %v773_v41 = vmul.f32 %v1272_v53, %v772_v17  ;;  %v800_v11 = vmul.f32 %v1828_v9, %v1785_v19 }
  0x6a   :  { %v470_v14 = vsub.f32 1.5, %v469_v55  ;;  %v1846_v8 = vsub.f32 %v975_v54, %v979_v0  ;;  %v1848_v6 = vadd.f32 %v979_v0, %v975_v54  ;;  %v987_v13 = vadd.f32 %v1832_v35, %v1623_v34 }
  0x6b   :  { %v443_v29 = vmul.f32 %v1268_v37, %v442_v20  ;;  %v774_v61 = vmul.f32 0.5, %v773_v41  ;;  %v801_v26 = vmul.f32 %v1828_v9, %v800_v11  ;;  %v982_v43 = vsub.f32 %v1836_v7, %v1834_v33 }
  0x6c   :  { %v471_v46 = vmul.f32 %v1270_v40, %v470_v14  ;;  %v1859_v24 = vmul.f32 %v703_v60, %v1670_v12  ;;  %v739_v36 = vand.u32 2147483647, %v729_v18  ;;  %v983_v48 = vsub.f32 %v1848_v6, %v1846_v8 }
  0x6d   :  { %v444_v37 = vmul.f32 %v443_v29, %v1736_v15  ;;  %vm735_vm5 = vweird.f32 %v729_v18  ;;  %v986_v40 = vmul.f32 0.14285715, %v985_v1  ;;  %v989_v50 = vmul.f32 0.5, %v1844_v25 }
  0x6e   :  { %v472_v4 = vmul.f32 %v471_v46, %v1738_v31  ;;  %v1276_v44 = vpop.eup %1275  ;;  %v775_v54 = vsub.f32 1.5, %v774_v61  ;;  %v988_v59 = vmul.f32 0.14285715, %v987_v13  ;;  %v992_v12 = vmul.f32 0.5, %v1853_v39 }
  0x6f   :  { %v446_v32 = vsel %vm445_vm15, %v1736_v15, %v444_v37  ;;  %v731_v55 = vmul.f32 %v1276_v44, %v729_v18  ;;  %v802_v17 = vmul.f32 0.5, %v801_v26  ;;  %vm1877_vm6 = vcmp.eq.f32.partialorder %v739_v36, 8.507059e+37 }
  0x70   :  { %v449_v63 = vsel %vm447_vm1, %v448_v5, %v446_v32  ;;  %v474_v0 = vsel %vm473_vm2, %v1738_v31, %v472_v4  ;;  %v741_v60 = vand.u32 2147483648, %v729_v18  ;;  %vm736_vm9 = vweird.f32 %v1276_v44  ;;  %v1882_v5 = vld [vmem:[#allocation6 + $0x88] sm:$0xff]  ;;  %v1897_v18 = vld [vmem:[#allocation6 + $0xa0] sm:$0xff] }
  0x71   :  { %v463_v20 = vsub.f32 %v449_v63, %v1759_v10  ;;  %v477_v1 = vsel %vm475_vm3, %v476_v62, %v474_v0  ;;  %v732_v15 = vsub.f32 1.0, %v731_v55  ;;  %v991_v11 = vadd.f32 %v989_v50, %v986_v40  ;;  %vm1887_vm11 = vmor %vm735_vm5, %vm736_vm9  ;;  %v1908_v0 = vld [vmem:[#allocation6 + $0xb8] sm:$0xff] }
  0x72   :  { %v491_v41 = vsub.f32 %v477_v1, %v1764_v58  ;;  %v776_v13 = vmul.f32 %v1272_v53, %v775_v54  ;;  %v990_v46 = vsub.f32 %v986_v40, %v989_v50  ;;  %v993_v61 = vsub.f32 %v988_v59, %v992_v12 }
  0x73   :  { %v464_v29 = vmul.f32 %v463_v20, %v463_v20  ;;  %v733_v26 = vmul.f32 %v1276_v44, %v732_v15  ;;  %v803_v31 = vsub.f32 1.5, %v802_v17  ;;  %v1884_v62 = vmul.f32 %v983_v48, %v982_v43 }
  0x74   :  { %v492_v10 = vmul.f32 %v491_v41, %v491_v41  ;;  %v742_v58 = vor.u32 1.1754944e-38, %v741_v60  ;;  %vm778_vm4 = vcmp.eq.f32.partialorder %v1780_v27, inf  ;;  %v994_v36 = vadd.f32 %v992_v12, %v988_v59 }
  0x75   :  { %v1025_v4 = vadd.f32 %v1882_v5, %v1751_v2  ;;  %v734_v40 = vadd.f32 %v1276_v44, %v733_v26  ;;  %v781_v50 = vand.u32 2147483648, %v1780_v27  ;;  %v995_v32 = vmin.f32 %v991_v11, %v1836_v7  ;;  %v2272_v26 = vld [vmem:[#allocation22_spill] sm:$0xff] }
  0x76   :  { %v493_v53 = vadd.f32 %v492_v10, %v464_v29  ;;  %v777_v43 = vmul.f32 %v776_v13, %v1780_v27  ;;  %v996_v48 = vmax.f32 %v990_v46, %v1834_v33  ;;  %v999_v54 = vmin.f32 %v994_v36, %v1848_v6 }
  0x77   :  { %v1000_v63 = vmax.f32 %v993_v61, %v1846_v8  ;;  %v738_v2 = vsel %vm1887_vm11, %v1276_v44, %v734_v40  ;;  %v804_v12 = vmul.f32 %v1828_v9, %v803_v31  ;;  %v1004_v55 = vsub.f32 %v991_v11, %v990_v46  ;;  %v1930_v46 = vld [vmem:[#allocation6 + $0xd0] sm:$0xff] }
  0x78   :  { %v1903_v59 = vadd.f32 %v493_v53, %v1819_v47  ;;  %v743_v17 = vsel %vm1877_vm6, %v742_v58, %v738_v2  ;;  %v997_v20 = vsub.f32 %v995_v32, %v996_v48  ;;  %v1005_v60 = vsub.f32 %v994_v36, %v993_v61  ;;  %v2271_v61 = vld [vmem:[#allocation24_spill] sm:$0xff]  ;;  %v2273_v31 = vld [vmem:[#allocation27_spill] sm:$0xff]  ;;  %v2274_v58 = vld [vmem:[#allocation26_spill] sm:$0xff] }
  0x79   :  { %v1001_v1 = vsub.f32 %v999_v54, %v1000_v63  ;;  %v1916_v47 = vmul.f32 %v743_v17, %v1798_v3  ;;  %v1026_v15 = vmul.f32 0.14285715, %v1025_v4  ;;  %v1027_v9 = vadd.f32 %v1897_v18, %v1623_v34  ;;  %v2275_v54 = vld [vmem:[#allocation25_spill] sm:$0xff]  ;;  %v2276_v2 = vld [vmem:[#allocation23_spill] sm:$0xff] }
  0x7a   :  { %v496_v41 = vsel %vm1507_vm10, %v1903_v59, 0.0  ;;  %v998_v44 = vmax.f32 %v997_v20, 0.0  ;;  %v1006_v11 = vmul.f32 %v1005_v60, %v1004_v55  ;;  %v1029_v14 = vmul.f32 0.5, %v1908_v0  ;;  %v183_v20 = vld [vmem:[#allocation6 + $0xf0] sm:$0xff] }
  0x7b   :  { %v1002_v29 = vmax.f32 %v1001_v1, 0.0  ;;  %vm1923_vm13 = vcmp.gt.f32.partialorder %v1916_v47, %v1859_v24  ;;  %vm780_vm14 = vcmp.eq.f32.partialorder %v1780_v27, 0.0  ;;  %v805_v3 = vmul.f32 %v804_v12, %v1785_v19 }
  0x7c   :  { %vm806_vm15 = vcmp.eq.f32.partialorder %v1785_v19, inf  ;;  %v747_v34 = vsel %vm1923_vm13, %v1599_v51, %v1580_v49  ;;  %v748_v10 = vsel %vm1923_vm13, %v1640_v22, %v2271_v61  ;;  %v749_v37 = vsel %vm1923_vm13, %v2273_v31, %v2272_v26  ;;  %v198_v31 = vld [vmem:[#allocation12 + $0x30] sm:$0xff] }
  0x7d   :  { %v750_v36 = vsel %vm1923_vm13, %v1668_v38, %v2274_v58  ;;  %v1948_v4 = vmax.f32 %v749_v37, 1e-06  ;;  %v779_v49 = vsel %vm778_vm4, %v1780_v27, %v777_v43  ;;  %v1028_v53 = vmul.f32 0.14285715, %v1027_v9 }
  0x7e   :  { %v1953_v51 = vmax.f32 %v750_v36, 1e-06  ;;  %v1955_v22 = vmul.f32 %v1002_v29, %v998_v44  ;;  %v1007_v40 = vadd.f32 %v1006_v11, %v1884_v62  ;;  %v1030_v32 = vsub.f32 %v1026_v15, %v1029_v14  ;;  %v184_v29 = vld [vmem:[#allocation12] sm:$0xff] }
  0x7f   :  { %v1032_v48 = vmul.f32 0.5, %v1930_v46  ;;  %v752_v63 = vsub.f32 %v747_v34, %v2275_v54  ;;  %v754_v38 = vsub.f32 %v748_v10, %v2276_v2  ;;  %1277 = vrsqrt.f32 %v1948_v4  ;;  %v189_v11 = vld [vmem:[#allocation6 + $0x108] sm:$0xff]  ;;  %v191_v34 = vld [vmem:[#allocation12 + $0x18] sm:$0xff] }
  0x80   :  { %v809_v12 = vand.u32 2147483648, %v1785_v19  ;;  %1279 = vrsqrt.f32 %v1953_v51  ;;  %v807_v43 = vsel %vm806_vm15, %v1785_v19, %v805_v3  ;;  %vm808_vm0 = vcmp.eq.f32.partialorder %v1785_v19, 0.0 }
  0x81   :  { %v1970_v55 = vsel %vm780_vm14, %v781_v50, %v779_v49  ;;  %v1008_v17 = vsub.f32 %v1007_v40, %v1955_v22  ;;  %v1031_v1 = vadd.f32 %v1029_v14, %v1026_v15  ;;  %v1033_v60 = vsub.f32 %v1028_v53, %v1032_v48  ;;  %v196_v14 = vld [vmem:[#allocation6 + $0x120] sm:$0xff] }
  0x82   :  { %v1034_v9 = vadd.f32 %v1032_v48, %v1028_v53  ;;  %v1036_v44 = vmax.f32 %v1030_v32, %v1834_v33  ;;  %v753_v61 = vmul.f32 %v752_v63, %v752_v63  ;;  %v755_v10 = vmul.f32 %v754_v38, %v754_v38 }
  0x83   :  { %v1974_v3 = vsel %vm808_vm0, %v809_v12, %v807_v43  ;;  %v1976_v19 = vadd.f32 1e-09, %v1008_v17  ;;  %v1035_v27 = vmin.f32 %v1031_v1, %v1836_v7  ;;  %v1040_v26 = vmax.f32 %v1033_v60, %v1846_v8  ;;  %v203_v43 = vld [vmem:[#allocation6 + $0x138] sm:$0xff]  ;;  %v205_v17 = vld [vmem:[#allocation12 + $0x48] sm:$0xff] }
  0x84   :  { %v1039_v50 = vmin.f32 %v1034_v9, %v1848_v6  ;;  %v1044_v15 = vsub.f32 %v1031_v1, %v1030_v32  ;;  %v768_v33 = vand.u32 2147483648, %v1948_v4  ;;  %v185_v58 = vsub.f32 %v183_v20, %v184_v29 }
  0x85   :  { %v1278_v37 = vpop.eup %1277  ;;  %1281 = vrcp.f32 %v1976_v19  ;;  %v192_v36 = vsub.f32 %v189_v11, %v191_v34  ;;  %v1037_v40 = vsub.f32 %v1035_v27, %v1036_v44  ;;  %v1045_v7 = vsub.f32 %v1034_v9, %v1033_v60  ;;  %v210_v11 = vld [vmem:[#allocation6 + $0x150] sm:$0xff]  ;;  %v212_v34 = vld [vmem:[#allocation12 + $0x60] sm:$0xff] }
  0x86   :  { %v1280_v49 = vpop.eup %1279  ;;  %v759_v53 = vmul.f32 %v1278_v37, %v1948_v4  ;;  %v1041_v48 = vsub.f32 %v1039_v50, %v1040_v26  ;;  %v1984_v54 = vadd.f32 %v755_v10, %v753_v61  ;;  %vm765_vm1 = vcmp.eq.f32.partialorder %v1948_v4, inf }
  0x87   :  { %v787_v8 = vmul.f32 %v1280_v49, %v1953_v51  ;;  %v1989_v6 = vmax.f32 %v1791_v23, 1e-06  ;;  %v199_v32 = vsub.f32 %v196_v14, %v198_v31  ;;  %vm767_vm2 = vcmp.eq.f32.partialorder %v1948_v4, 0.0 }
  0x88   :  { %v760_v63 = vmul.f32 %v1278_v37, %v759_v53  ;;  %vm793_vm3 = vcmp.eq.f32.partialorder %v1953_v51, inf  ;;  %v1038_v2 = vmax.f32 %v1037_v40, 0.0  ;;  %v1042_v38 = vmax.f32 %v1041_v48, 0.0 }
  0x89   :  { %v1046_v12 = vmul.f32 %v1045_v7, %v1044_v15  ;;  %v788_v20 = vmul.f32 %v1280_v49, %v787_v8  ;;  %1283 = vrsqrt.f32 %v1989_v6  ;;  %v1995_v1 = vmax.f32 %v1812_v56, 1e-06 }
  0x8a   :  { %v186_v60 = vmul.f32 %v185_v58, %v185_v58  ;;  %v761_v23 = vmul.f32 0.5, %v760_v63  ;;  %v1997_v9 = vmul.f32 %v1042_v38, %v1038_v2  ;;  %v193_v29 = vmul.f32 %v192_v36, %v192_v36  ;;  %v217_v2 = vld [vmem:[#allocation6 + $0x168] sm:$0xff]  ;;  %v219_v38 = vld [vmem:[#allocation12 + $0x78] sm:$0xff] }
  0x8b   :  { %v1047_v44 = vadd.f32 %v1046_v12, %v1884_v62  ;;  %v2000_v61 = vpop.eup %1281  ;;  %v789_v10 = vmul.f32 0.5, %v788_v20  ;;  %1285 = vrsqrt.f32 %v1995_v1  ;;  %v200_v27 = vmul.f32 %v199_v32, %v199_v32 }
  0x8c   :  { %v206_v50 = vsub.f32 %v203_v43, %v205_v17  ;;  %v762_v26 = vsub.f32 1.5, %v761_v23  ;;  %vm795_vm5 = vcmp.eq.f32.partialorder %v1953_v51, 0.0  ;;  %v1011_v56 = vmul.f32 %v2000_v61, %v1976_v19  ;;  %v224_v23 = vld [vmem:[#allocation6 + $0x180] sm:$0xff] }
  0x8d   :  { %v1048_v15 = vsub.f32 %v1047_v44, %v1997_v9  ;;  %v790_v14 = vsub.f32 1.5, %v789_v10  ;;  %v796_v62 = vand.u32 2147483648, %v1953_v51  ;;  %v194_v31 = vadd.f32 %v193_v29, %v186_v60  ;;  %v226_v44 = vld [vmem:[#allocation12 + $0x90] sm:$0xff] }
  0x8e   :  { %v213_v58 = vsub.f32 %v210_v11, %v212_v34  ;;  %v763_v36 = vmul.f32 %v1278_v37, %v762_v26  ;;  %v1012_v53 = vsub.f32 1.0, %v1011_v56  ;;  %v207_v48 = vmul.f32 %v206_v50, %v206_v50  ;;  %v259_v56 = vld [vmem:[#allocation6 + $0x1f8] sm:$0xff] }
  0x8f   :  { %v2008_v40 = vadd.f32 1e-09, %v1048_v15  ;;  %v2010_v7 = vpop.eup %1283  ;;  %v791_v8 = vmul.f32 %v1280_v49, %v790_v14  ;;  %vm1015_vm6 = vweird.f32 %v1976_v19  ;;  %v1019_v32 = vand.u32 2147483647, %v1976_v19 }
  0x90   :  { %v201_v63 = vadd.f32 %v200_v27, %v194_v31  ;;  %v764_v12 = vmul.f32 %v763_v36, %v1948_v4  ;;  %v1013_v43 = vmul.f32 %v2000_v61, %v1012_v53  ;;  %v1021_v37 = vand.u32 2147483648, %v1976_v19 }
  0x91   :  { %1287 = vrcp.f32 %v2008_v40  ;;  %v2018_v17 = vpop.eup %1285  ;;  %v792_v20 = vmul.f32 %v791_v8, %v1953_v51  ;;  %vm1016_vm9 = vweird.f32 %v2000_v61  ;;  %v1092_v49 = vmul.f32 %v2010_v7, %v1989_v6 }
  0x92   :  { %v214_v60 = vmul.f32 %v213_v58, %v213_v58  ;;  %v766_v29 = vsel %vm765_vm1, %v1948_v4, %v764_v12  ;;  %v1120_v11 = vmul.f32 %v2018_v17, %v1995_v1  ;;  %v208_v34 = vadd.f32 %v207_v48, %v201_v63  ;;  %vm2048_vm4 = vmor %vm1015_vm6, %vm1016_vm9  ;;  %v231_v48 = vld [vmem:[#allocation6 + $0x198] sm:$0xff] }
  0x93   :  { %v220_v10 = vsub.f32 %v217_v2, %v219_v38  ;;  %v769_v27 = vsel %vm767_vm2, %v768_v33, %v766_v29  ;;  %v794_v50 = vsel %vm793_vm3, %v1953_v51, %v792_v20  ;;  %v1014_v26 = vadd.f32 %v2000_v61, %v1013_v43  ;;  %v233_v51 = vld [vmem:[#allocation12 + $0xa8] sm:$0xff] }
  0x94   :  { %vm2037_vm11 = vcmp.eq.f32.partialorder %v1019_v32, 8.507059e+37  ;;  %v783_v15 = vsub.f32 %v769_v27, %v1970_v55  ;;  %v797_v14 = vsel %vm795_vm5, %v796_v62, %v794_v50  ;;  %v1093_v33 = vmul.f32 %v2010_v7, %v1092_v49 }
  0x95   :  { %v227_v31 = vsub.f32 %v224_v23, %v226_v44  ;;  %v811_v58 = vsub.f32 %v797_v14, %v1974_v3  ;;  %v1022_v36 = vor.u32 1.1754944e-38, %v1021_v37  ;;  %v1121_v53 = vmul.f32 %v2018_v17, %v1120_v11  ;;  %v238_v44 = vld [vmem:[#allocation6 + $0x1b0] sm:$0xff]  ;;  %v240_v11 = vld [vmem:[#allocation12 + $0xc0] sm:$0xff] }
  0x96   :  { %v215_v55 = vadd.f32 %v214_v60, %v208_v34  ;;  %v784_v8 = vmul.f32 %v783_v15, %v783_v15  ;;  %v1059_v32 = vand.u32 2147483647, %v2008_v40  ;;  %v1061_v19 = vand.u32 2147483648, %v2008_v40  ;;  %v245_v34 = vld [vmem:[#allocation6 + $0x1c8] sm:$0xff] }
  0x97   :  { %v1288_v62 = vpop.eup %1287  ;;  %v221_v63 = vmul.f32 %v220_v10, %v220_v10  ;;  %v812_v2 = vmul.f32 %v811_v58, %v811_v58  ;;  %v1018_v38 = vsel %vm2048_vm4, %v2000_v61, %v1014_v26  ;;  %v1094_v12 = vmul.f32 0.5, %v1093_v33  ;;  %v247_v61 = vld [vmem:[#allocation12 + $0xd8] sm:$0xff] }
  0x98   :  { %v1051_v3 = vmul.f32 %v1288_v62, %v2008_v40  ;;  %v1122_v43 = vmul.f32 0.5, %v1121_v53  ;;  %v228_v20 = vmul.f32 %v227_v31, %v227_v31  ;;  %v234_v49 = vsub.f32 %v231_v48, %v233_v51  ;;  %v252_v31 = vld [vmem:[#allocation6 + $0x1e0] sm:$0xff]  ;;  %v254_v48 = vld [vmem:[#allocation12 + $0xf0] sm:$0xff] }
  0x99   :  { %v222_v37 = vadd.f32 %v221_v63, %v215_v55  ;;  %v813_v60 = vadd.f32 %v812_v2, %v784_v8  ;;  %vm1055_vm14 = vweird.f32 %v2008_v40  ;;  %vm1056_vm15 = vweird.f32 %v1288_v62 }
  0x9a   :  { %v1052_v23 = vsub.f32 1.0, %v1051_v3  ;;  %vm2062_vm0 = vcmp.eq.f32.partialorder %v1059_v32, 8.507059e+37  ;;  %v1023_v27 = vsel %vm2037_vm11, %v1022_v36, %v1018_v38  ;;  %v1095_v26 = vsub.f32 1.5, %v1094_v12  ;;  %vm2069_vm1 = vmor %vm1055_vm14, %vm1056_vm15  ;;  %v261_v36 = vld [vmem:[#allocation12 + $0x108] sm:$0xff] }
  0x9b   :  { %v815_v10 = vadd.f32 %v813_v60, %v1984_v54  ;;  %v1062_v40 = vor.u32 1.1754944e-38, %v1061_v19  ;;  %v1123_v14 = vsub.f32 1.5, %v1122_v43  ;;  %v229_v4 = vadd.f32 %v228_v20, %v222_v37  ;;  %v268_v37 = vld [vmem:[#allocation12 + $0x120] sm:$0xff]  ;;  %v275_v60 = vld [vmem:[#allocation12 + $0x138] sm:$0xff] }
  0x9c   :  { %v1053_v50 = vmul.f32 %v1288_v62, %v1052_v23  ;;  %v235_v33 = vmul.f32 %v234_v49, %v234_v49  ;;  %v241_v55 = vsub.f32 %v238_v44, %v240_v11  ;;  %v248_v54 = vsub.f32 %v245_v34, %v247_v61  ;;  %v273_v49 = vld [vmem:[#allocation6 + $0x228] sm:$0xff] }
  0x9d   :  { %v816_v58 = vsel %vm1732_vm12, %v815_v10, 0.0  ;;  %v2082_v8 = vmul.f32 %v1023_v27, %v1955_v22  ;;  %v1096_v63 = vmul.f32 %v2010_v7, %v1095_v26  ;;  %v1124_v12 = vmul.f32 %v2018_v17, %v1123_v14  ;;  %v280_v10 = vld [vmem:[#allocation6 + $0x240] sm:$0xff]  ;;  %v282_v27 = vld [vmem:[#allocation12 + $0x150] sm:$0xff] }
  0x9e   :  { %v1054_v53 = vadd.f32 %v1288_v62, %v1053_v50  ;;  %v2079_v51 = vadd.f32 %v816_v58, %v496_v41  ;;  %v236_v32 = vadd.f32 %v235_v33, %v229_v4  ;;  %v242_v2 = vmul.f32 %v241_v55, %v241_v55  ;;  %v266_v41 = vld [vmem:[#allocation6 + $0x210] sm:$0xff]  ;;  %v541_v4 = vld [vmem:[#allocation6 + $0xf8] sm:$0xff] }
  0x9f   :  { %v249_v38 = vmul.f32 %v248_v54, %v248_v54  ;;  %v255_v43 = vsub.f32 %v252_v31, %v254_v48  ;;  %v262_v59 = vsub.f32 %v259_v56, %v261_v36  ;;  %vm1098_vm2 = vcmp.eq.f32.partialorder %v1989_v6, inf  ;;  %v542_v33 = vld [vmem:[#allocation12 + $0x8] sm:$0xff]  ;;  %v547_v54 = vld [vmem:[#allocation12 + $0x20] sm:$0xff]  ;;  %v552_v56 = vld [vmem:[#allocation12 + $0x38] sm:$0xff] }
  0xa0   :  { %v1058_v19 = vsel %vm2069_vm1, %v1288_v62, %v1054_v53  ;;  %v243_v20 = vadd.f32 %v242_v2, %v236_v32  ;;  %v1101_v62 = vand.u32 2147483648, %v1989_v6  ;;  %v1097_v17 = vmul.f32 %v1096_v63, %v1989_v6  ;;  %v546_v31 = vld [vmem:[#allocation6 + $0x110] sm:$0xff]  ;;  %v551_v48 = vld [vmem:[#allocation6 + $0x128] sm:$0xff] }
  0xa1   :  { %v1063_v3 = vsel %vm2062_vm0, %v1062_v40, %v1058_v19  ;;  %v256_v7 = vmul.f32 %v255_v43, %v255_v43  ;;  %v269_v29 = vsub.f32 %v266_v41, %v268_v37  ;;  %v1125_v34 = vmul.f32 %v1124_v12, %v1995_v1  ;;  %v289_v40 = vld [vmem:[#allocation12 + $0x168] sm:$0xff]  ;;  %v556_v19 = vld [vmem:[#allocation6 + $0x140] sm:$0xff]  ;;  %v557_v12 = vld [vmem:[#allocation12 + $0x50] sm:$0xff] }
  0xa2   :  { %v2091_v22 = vmul.f32 %v1063_v3, %v1997_v9  ;;  %v250_v44 = vadd.f32 %v249_v38, %v243_v20  ;;  %v263_v61 = vmul.f32 %v262_v59, %v262_v59  ;;  %vm1100_vm5 = vcmp.eq.f32.partialorder %v1989_v6, 0.0  ;;  %v561_v43 = vld [vmem:[#allocation6 + $0x158] sm:$0xff]  ;;  %v562_v59 = vld [vmem:[#allocation12 + $0x68] sm:$0xff] }
  0xa3   :  { %vm1126_vm6 = vcmp.eq.f32.partialorder %v1995_v1, inf  ;;  %v283_v53 = vsub.f32 %v280_v10, %v282_v27  ;;  %vm1128_vm9 = vcmp.eq.f32.partialorder %v1995_v1, 0.0  ;;  %v543_v2 = vsub.f32 %v541_v4, %v542_v33  ;;  %v571_v27 = vld [vmem:[#allocation6 + $0x188] sm:$0xff]  ;;  %v577_v4 = vld [vmem:[#allocation12 + $0xb0] sm:$0xff] }
  0xa4   :  { %vm2097_vm3 = vcmp.gt.f32.partialorder %v2091_v22, %v2082_v8  ;;  %v548_v38 = vsub.f32 %v546_v31, %v547_v54  ;;  %v553_v3 = vsub.f32 %v551_v48, %v552_v56  ;;  %v563_v10 = vsub.f32 %v561_v43, %v562_v59  ;;  %v581_v33 = vld [vmem:[#allocation6 + $0x1b8] sm:$0xff]  ;;  %v582_v56 = vld [vmem:[#allocation12 + $0xc8] sm:$0xff] }
  0xa5   :  { %v1069_v9 = vsel %vm2097_vm3, %v1908_v0, %v1844_v25  ;;  %v1070_v11 = vsel %vm2097_vm3, %v1930_v46, %v1853_v39  ;;  %v1067_v50 = vsel %vm2097_vm3, %v1882_v5, %v1822_v52  ;;  %v276_v25 = vsub.f32 %v273_v49, %v275_v60  ;;  %v287_v0 = vld [vmem:[#allocation6 + $0x258] sm:$0xff]  ;;  %v567_v49 = vld [vmem:[#allocation12 + $0x80] sm:$0xff] }
  0xa6   :  { %v2115_v26 = vmax.f32 %v1069_v9, 1e-06  ;;  %v2117_v15 = vmax.f32 %v1070_v11, 1e-06  ;;  %v1129_v39 = vand.u32 2147483648, %v1995_v1  ;;  %v257_v46 = vadd.f32 %v256_v7, %v250_v44  ;;  %v566_v7 = vld [vmem:[#allocation6 + $0x170] sm:$0xff] }
  0xa7   :  { %v1068_v14 = vsel %vm2097_vm3, %v1897_v18, %v1832_v35  ;;  %v1099_v52 = vsel %vm1098_vm2, %v1989_v6, %v1097_v17  ;;  %v270_v5 = vmul.f32 %v269_v29, %v269_v29  ;;  %v1072_v58 = vsub.f32 %v1067_v50, %v1768_v30  ;;  %v294_v6 = vld [vmem:[#allocation6 + $0x270] sm:$0xff]  ;;  %v572_v50 = vld [vmem:[#allocation12 + $0x98] sm:$0xff] }
  0xa8   :  { %1289 = vrsqrt.f32 %v2115_v26  ;;  %v290_v55 = vsub.f32 %v287_v0, %v289_v40  ;;  %v1127_v35 = vsel %vm1126_vm6, %v1995_v1, %v1125_v34  ;;  %v264_v18 = vadd.f32 %v263_v61, %v257_v46 }
  0xa9   :  { %1291 = vrsqrt.f32 %v2117_v15  ;;  %v277_v36 = vmul.f32 %v276_v25, %v276_v25  ;;  %v1074_v32 = vsub.f32 %v1068_v14, %v1782_v28  ;;  %v2139_v30 = vsel %vm1100_vm5, %v1101_v62, %v1099_v52  ;;  %v296_v62 = vld [vmem:[#allocation12 + $0x180] sm:$0xff] }
  0xaa   :  { %v271_v63 = vadd.f32 %v270_v5, %v264_v18  ;;  %v1073_v41 = vmul.f32 %v1072_v58, %v1072_v58  ;;  %v2141_v37 = vsel %vm1128_vm9, %v1129_v39, %v1127_v35  ;;  %v284_v1 = vmul.f32 %v283_v53, %v283_v53  ;;  %v576_v5 = vld [vmem:[#allocation6 + $0x1a0] sm:$0xff]  ;;  %v301_v58 = vld [vmem:[#allocation6 + $0x288] sm:$0xff] }
  0xab   :  { %v291_v20 = vmul.f32 %v290_v55, %v290_v55  ;;  %v544_v17 = vmul.f32 %v543_v2, %v543_v2  ;;  %v549_v44 = vmul.f32 %v548_v38, %v548_v38  ;;  %v554_v29 = vmul.f32 %v553_v3, %v553_v3  ;;  %v303_v53 = vld [vmem:[#allocation12 + $0x198] sm:$0xff]  ;;  %v310_v38 = vld [vmem:[#allocation12 + $0x1b0] sm:$0xff] }
  0xac   :  { %v278_v60 = vadd.f32 %v277_v36, %v271_v63  ;;  %v1075_v11 = vmul.f32 %v1074_v32, %v1074_v32  ;;  %v558_v61 = vsub.f32 %v556_v19, %v557_v12  ;;  %vm1085_vm11 = vcmp.eq.f32.partialorder %v2115_v26, inf  ;;  %v308_v32 = vld [vmem:[#allocation6 + $0x2a0] sm:$0xff]  ;;  %v586_v19 = vld [vmem:[#allocation6 + $0x1d0] sm:$0xff]  ;;  %v587_v63 = vld [vmem:[#allocation12 + $0xe0] sm:$0xff] }
  0xad   :  { %v550_v0 = vadd.f32 %v549_v44, %v544_v17  ;;  %v568_v40 = vsub.f32 %v566_v7, %v567_v49  ;;  %vm1087_vm4 = vcmp.eq.f32.partialorder %v2115_v26, 0.0  ;;  %v297_v14 = vsub.f32 %v294_v6, %v296_v62  ;;  %v315_v3 = vld [vmem:[#allocation6 + $0x2b8] sm:$0xff]  ;;  %v317_v12 = vld [vmem:[#allocation12 + $0x1c8] sm:$0xff]  ;;  %v2151_v6 = vld [vmem:[#allocation11 + $0x10] sm:$0xff] }
  0xae   :  { %v1290_v28 = vpop.eup %1289  ;;  %v285_v46 = vadd.f32 %v284_v1, %v278_v60  ;;  %v559_v52 = vmul.f32 %v558_v61, %v558_v61  ;;  %v564_v54 = vmul.f32 %v563_v10, %v563_v10  ;;  %v573_v48 = vsub.f32 %v571_v27, %v572_v50  ;;  %v591_v27 = vld [vmem:[#allocation6 + $0x1e8] sm:$0xff]  ;;  %v592_v50 = vld [vmem:[#allocation12 + $0xf8] sm:$0xff] }
  0xaf   :  { %v1292_v9 = vpop.eup %1291  ;;  %v1079_v34 = vmul.f32 %v1290_v28, %v2115_v26  ;;  %v555_v55 = vadd.f32 %v554_v29, %v550_v0  ;;  %v2147_v35 = vadd.f32 %v1075_v11, %v1073_v41  ;;  %v1088_v36 = vand.u32 2147483648, %v2115_v26 }
  0xb0   :  { %v1107_v25 = vmul.f32 %v1292_v9, %v2117_v15  ;;  %vm1113_vm14 = vcmp.eq.f32.partialorder %v2117_v15, inf  ;;  %v569_v59 = vmul.f32 %v568_v40, %v568_v40  ;;  %v578_v1 = vsub.f32 %v576_v5, %v577_v4  ;;  %v597_v5 = vld [vmem:[#allocation12 + $0x110] sm:$0xff] }
  0xb1   :  { %v1080_v39 = vmul.f32 %v1290_v28, %v1079_v34  ;;  %v560_v43 = vadd.f32 %v559_v52, %v555_v55  ;;  %v292_v49 = vadd.f32 %v291_v20, %v285_v46  ;;  %v298_v60 = vmul.f32 %v297_v14, %v297_v14  ;;  %v596_v52 = vld [vmem:[#allocation6 + $0x200] sm:$0xff]  ;;  %v862_v55 = vld [vmem:[#allocation12 + $0x10] sm:$0xff] }
  0xb2   :  { %v1108_v31 = vmul.f32 %v1292_v9, %v1107_v25  ;;  %v304_v41 = vsub.f32 %v301_v58, %v303_v53  ;;  %vm857_vm15 = vcmp.gt.f32.partialorder %v2151_v6, 0.5  ;;  %v574_v44 = vmul.f32 %v573_v48, %v573_v48  ;;  %v601_v58 = vld [vmem:[#allocation6 + $0x218] sm:$0xff]  ;;  %v602_v53 = vld [vmem:[#allocation12 + $0x128] sm:$0xff] }
  0xb3   :  { %v1081_v18 = vmul.f32 0.5, %v1080_v39  ;;  %v565_v17 = vadd.f32 %v564_v54, %v560_v43  ;;  %v583_v29 = vsub.f32 %v581_v33, %v582_v56  ;;  %v311_v34 = vsub.f32 %v308_v32, %v310_v38  ;;  %v606_v32 = vld [vmem:[#allocation6 + $0x230] sm:$0xff]  ;;  %v611_v43 = vld [vmem:[#allocation6 + $0x248] sm:$0xff]  ;;  %vm2176_vm1 = vmand %vm857_vm15, %vm830_vm7 }
  0xb4   :  { %v1109_v2 = vmul.f32 0.5, %v1108_v31  ;;  %v318_v61 = vsub.f32 %v315_v3, %v317_v12  ;;  %v588_v10 = vsub.f32 %v586_v19, %v587_v63  ;;  %vm1115_vm0 = vcmp.eq.f32.partialorder %v2117_v15, 0.0  ;;  %v607_v19 = vld [vmem:[#allocation12 + $0x140] sm:$0xff]  ;;  %v866_v63 = vld [vmem:[#allocation6 + $0x118] sm:$0xff]  ;;  %v626_v6 = vld [vmem:[#allocation6 + $0x290] sm:$0xff] }
  0xb5   :  { %v1082_v7 = vsub.f32 1.5, %v1081_v18  ;;  %v570_v20 = vadd.f32 %v569_v59, %v565_v17  ;;  %v579_v0 = vmul.f32 %v578_v1, %v578_v1  ;;  %v1116_v39 = vand.u32 2147483648, %v2117_v15  ;;  %v612_v59 = vld [vmem:[#allocation12 + $0x158] sm:$0xff]  ;;  %v867_v1 = vld [vmem:[#allocation12 + $0x28] sm:$0xff]  ;;  %v872_v17 = vld [vmem:[#allocation12 + $0x40] sm:$0xff] }
  0xb6   :  { %v1110_v62 = vsub.f32 1.5, %v1109_v2  ;;  %v299_v46 = vadd.f32 %v298_v60, %v292_v49  ;;  %v305_v14 = vmul.f32 %v304_v41, %v304_v41  ;;  %v584_v33 = vmul.f32 %v583_v29, %v583_v29 }
  0xb7   :  { %v1083_v11 = vmul.f32 %v1290_v28, %v1082_v7  ;;  %v575_v4 = vadd.f32 %v574_v44, %v570_v20  ;;  %v593_v31 = vsub.f32 %v591_v27, %v592_v50  ;;  %v312_v48 = vmul.f32 %v311_v34, %v311_v34  ;;  %v877_v34 = vld [vmem:[#allocation12 + $0x58] sm:$0xff] }
  0xb8   :  { %v1111_v25 = vmul.f32 %v1292_v9, %v1110_v62  ;;  %v861_v9 = vld [vmem:[#allocation6 + $0x100] sm:$0xff]  ;;  %v2161_v56 = vmul.f32 %v318_v61, %v318_v61  ;;  %v589_v18 = vmul.f32 %v588_v10, %v588_v10  ;;  %v598_v12 = vsub.f32 %v596_v52, %v597_v5  ;;  %v871_v62 = vld [vmem:[#allocation6 + $0x130] sm:$0xff] }
  0xb9   :  { %v1084_v40 = vmul.f32 %v1083_v11, %v2115_v26  ;;  %v580_v3 = vadd.f32 %v579_v0, %v575_v4  ;;  %v306_v60 = vadd.f32 %v305_v14, %v299_v46  ;;  %v603_v41 = vsub.f32 %v601_v58, %v602_v53  ;;  %v876_v11 = vld [vmem:[#allocation6 + $0x148] sm:$0xff]  ;;  %v887_v46 = vld [vmem:[#allocation12 + $0x88] sm:$0xff]  ;;  %v616_v5 = vld [vmem:[#allocation6 + $0x260] sm:$0xff] }
  0xba   :  { %v1112_v28 = vmul.f32 %v1111_v25, %v2117_v15  ;;  %v594_v44 = vmul.f32 %v593_v31, %v593_v31  ;;  %v608_v29 = vsub.f32 %v606_v32, %v607_v19  ;;  %v613_v10 = vsub.f32 %v611_v43, %v612_v59  ;;  %v881_v25 = vld [vmem:[#allocation6 + $0x160] sm:$0xff]  ;;  %v892_v32 = vld [vmem:[#allocation12 + $0xa0] sm:$0xff] }
  0xbb   :  { %v1086_v54 = vsel %vm1085_vm11, %v2115_v26, %v1084_v40  ;;  %v863_v27 = vsub.f32 %v861_v9, %v862_v55  ;;  %v868_v50 = vsub.f32 %v866_v63, %v867_v1  ;;  %v599_v0 = vmul.f32 %v598_v12, %v598_v12  ;;  %v621_v9 = vld [vmem:[#allocation6 + $0x278] sm:$0xff]  ;;  %v622_v63 = vld [vmem:[#allocation12 + $0x188] sm:$0xff] }
  0xbc   :  { %v1089_v2 = vsel %vm1087_vm4, %v1088_v36, %v1086_v54  ;;  %v1114_v38 = vsel %vm1113_vm14, %v2117_v15, %v1112_v28  ;;  %v585_v36 = vadd.f32 %v584_v33, %v580_v3  ;;  %v873_v40 = vsub.f32 %v871_v62, %v872_v17  ;;  %v617_v28 = vld [vmem:[#allocation12 + $0x170] sm:$0xff]  ;;  %v897_v62 = vld [vmem:[#allocation12 + $0xb8] sm:$0xff] }
  0xbd   :  { %v1103_v7 = vsub.f32 %v1089_v2, %v2139_v30  ;;  %v1117_v49 = vsel %vm1115_vm0, %v1116_v39, %v1114_v38  ;;  %v882_v30 = vld [vmem:[#allocation12 + $0x70] sm:$0xff]  ;;  %v604_v52 = vmul.f32 %v603_v41, %v603_v41  ;;  %v864_v4 = vmul.f32 %v863_v27, %v863_v27  ;;  %v627_v2 = vld [vmem:[#allocation12 + $0x1a0] sm:$0xff] }
  0xbe   :  { %v1131_v26 = vsub.f32 %v1117_v49, %v2141_v37  ;;  %v590_v15 = vadd.f32 %v589_v18, %v585_v36  ;;  %v886_v39 = vld [vmem:[#allocation6 + $0x178] sm:$0xff]  ;;  %v869_v33 = vmul.f32 %v868_v50, %v868_v50  ;;  %v878_v31 = vsub.f32 %v876_v11, %v877_v34  ;;  %v891_v18 = vld [vmem:[#allocation6 + $0x190] sm:$0xff]  ;;  %v631_v49 = vld [vmem:[#allocation6 + $0x2a8] sm:$0xff] }
  0xbf   :  { %v1104_v61 = vmul.f32 %v1103_v7, %v1103_v7  ;;  %v874_v55 = vmul.f32 %v873_v40, %v873_v40  ;;  %v883_v54 = vsub.f32 %v881_v25, %v882_v30  ;;  %v313_v19 = vadd.f32 %v312_v48, %v306_v60  ;;  %v896_v41 = vld [vmem:[#allocation6 + $0x1a8] sm:$0xff]  ;;  %v636_v36 = vld [vmem:[#allocation6 + $0x2c0] sm:$0xff]  ;;  %v902_v25 = vld [vmem:[#allocation12 + $0xd0] sm:$0xff] }
  0xc0   :  { %v1132_v20 = vmul.f32 %v1131_v26, %v1131_v26  ;;  %v595_v53 = vadd.f32 %v594_v44, %v590_v15  ;;  %v870_v38 = vadd.f32 %v869_v33, %v864_v4  ;;  %v879_v3 = vmul.f32 %v878_v31, %v878_v31  ;;  %v632_v26 = vld [vmem:[#allocation12 + $0x1b8] sm:$0xff]  ;;  %v637_v44 = vld [vmem:[#allocation12 + $0x1d0] sm:$0xff] }
  0xc1   :  { %v888_v12 = vsub.f32 %v886_v39, %v887_v46  ;;  %v609_v1 = vmul.f32 %v608_v29, %v608_v29  ;;  %v618_v7 = vsub.f32 %v616_v5, %v617_v28  ;;  %v614_v17 = vmul.f32 %v613_v10, %v613_v10  ;;  %v906_v10 = vld [vmem:[#allocation6 + $0x1d8] sm:$0xff] }
  0xc2   :  { %v1133_v58 = vadd.f32 %v1132_v20, %v1104_v61  ;;  %v600_v59 = vadd.f32 %v599_v0, %v595_v53  ;;  %v875_v11 = vadd.f32 %v874_v55, %v870_v38  ;;  %v884_v48 = vmul.f32 %v883_v54, %v883_v54  ;;  %v907_v0 = vld [vmem:[#allocation12 + $0xe8] sm:$0xff]  ;;  %v912_v53 = vld [vmem:[#allocation12 + $0x100] sm:$0xff]  ;;  %v921_v38 = vld [vmem:[#allocation6 + $0x220] sm:$0xff] }
  0xc3   :  { %v893_v60 = vsub.f32 %v891_v18, %v892_v32  ;;  %v623_v27 = vsub.f32 %v621_v9, %v622_v63  ;;  %v628_v50 = vsub.f32 %v626_v6, %v627_v2  ;;  %v889_v20 = vmul.f32 %v888_v12, %v888_v12  ;;  %v916_v54 = vld [vmem:[#allocation6 + $0x208] sm:$0xff]  ;;  %v917_v18 = vld [vmem:[#allocation12 + $0x118] sm:$0xff] }
  0xc4   :  { %v1135_v43 = vadd.f32 %v1133_v58, %v2147_v35  ;;  %v605_v61 = vadd.f32 %v604_v52, %v600_v59  ;;  %v901_v35 = vld [vmem:[#allocation6 + $0x1c0] sm:$0xff]  ;;  %v880_v30 = vadd.f32 %v879_v3, %v875_v11  ;;  %v898_v15 = vsub.f32 %v896_v41, %v897_v62  ;;  %v911_v58 = vld [vmem:[#allocation6 + $0x1f0] sm:$0xff]  ;;  %v922_v3 = vld [vmem:[#allocation12 + $0x130] sm:$0xff] }
  0xc5   :  { %v619_v39 = vmul.f32 %v618_v7, %v618_v7  ;;  %v633_v46 = vsub.f32 %v631_v49, %v632_v26  ;;  %v638_v14 = vsub.f32 %v636_v36, %v637_v44  ;;  %v894_v28 = vmul.f32 %v893_v60, %v893_v60  ;;  %v1295_v41 = vld [vmem:[#allocation6 + $0xd8] sm:$0xff]  ;;  %v927_v44 = vld [vmem:[#allocation12 + $0x148] sm:$0xff] }
  0xc6   :  { %v1136_v34 = vsel %vm2176_vm1, %v1135_v43, 0.0  ;;  %v610_v40 = vadd.f32 %v609_v1, %v605_v61  ;;  %v885_v5 = vadd.f32 %v884_v48, %v880_v30  ;;  %v903_v4 = vsub.f32 %v901_v35, %v902_v25  ;;  %v926_v36 = vld [vmem:[#allocation6 + $0x238] sm:$0xff]  ;;  %v1297_v61 = vld [vmem:[#allocation6 + $0xe0] sm:$0xff] }
  0xc7   :  { %v1137_v29 = vadd.f32 %v1136_v34, %v2079_v51  ;;  %v624_v33 = vmul.f32 %v623_v27, %v623_v27  ;;  %v908_v31 = vsub.f32 %v906_v10, %v907_v0  ;;  %v2185_v51 = vadd.f32 %v2161_v56, %v313_v19  ;;  %v1294_v19 = vld [vmem:[#allocation6 + $0x60] sm:$0xff]  ;;  %v1296_v34 = vld [vmem:[#allocation6 + $0x68] sm:$0xff]  ;;  %v1298_v27 = vld [vmem:[#allocation6 + $0x70] sm:$0xff] }
  0xc8   :  { %v615_v52 = vadd.f32 %v614_v17, %v610_v40  ;;  %v890_v9 = vadd.f32 %v889_v20, %v885_v5  ;;  %v899_v55 = vmul.f32 %v898_v15, %v898_v15  ;;  %v629_v63 = vmul.f32 %v628_v50, %v628_v50  ;;  %v932_v15 = vld [vmem:[#allocation12 + $0x160] sm:$0xff] }
  0xc9   :  { %1149 = vadd.xlane.f32.xlu0 %v1137_v29  ;;  %v634_v6 = vmul.f32 %v633_v46, %v633_v46  ;;  %v639_v2 = vmul.f32 %v638_v14, %v638_v14  ;;  %v904_v43 = vmul.f32 %v903_v4, %v903_v4  ;;  %v913_v59 = vsub.f32 %v911_v58, %v912_v53  ;;  %v937_v46 = vld [vmem:[#allocation12 + $0x178] sm:$0xff]  ;;  %v942_v58 = vld [vmem:[#allocation12 + $0x190] sm:$0xff] }
  0xca   :  { %v620_v32 = vadd.f32 %v619_v39, %v615_v52  ;;  %v895_v12 = vadd.f32 %v894_v28, %v890_v9  ;;  %v426_v1 = vmax.f32 %v1689_v45, %v1697_v21  ;;  %v909_v49 = vmul.f32 %v908_v31, %v908_v31  ;;  %v936_v39 = vld [vmem:[#allocation6 + $0x268] sm:$0xff]  ;;  %v941_v31 = vld [vmem:[#allocation6 + $0x280] sm:$0xff] }
  0xcb   :  { %v918_v56 = vsub.f32 %v916_v54, %v917_v18  ;;  %v431_v62 = vsel %vm1708_vm8, %v1295_v41, %v1294_v19  ;;  %v923_v26 = vsub.f32 %v921_v38, %v922_v3  ;;  %v746_v48 = vmax.f32 %v1859_v24, %v1916_v47  ;;  %v931_v47 = vld [vmem:[#allocation6 + $0x250] sm:$0xff]  ;;  %v946_v18 = vld [vmem:[#allocation6 + $0x298] sm:$0xff] }
  0xcc   :  { %v625_v7 = vadd.f32 %v624_v33, %v620_v32  ;;  %v900_v17 = vadd.f32 %v899_v55, %v895_v12  ;;  %v500_v11 = vsub.f32 %v431_v62, %v426_v1  ;;  %v751_v45 = vsel %vm1923_vm13, %v1297_v61, %v1296_v34  ;;  %v947_v32 = vld [vmem:[#allocation12 + $0x1a8] sm:$0xff]  ;;  %v952_v12 = vld [vmem:[#allocation12 + $0x1c0] sm:$0xff] }
  0xcd   :  { %v1066_v21 = vmax.f32 %v2082_v8, %v2091_v22  ;;  %v1071_v50 = vsel %vm2097_vm3, %v1299_v57, %v1298_v27  ;;  %v914_v25 = vmul.f32 %v913_v59, %v913_v59  ;;  %v820_v30 = vsub.f32 %v751_v45, %v746_v48  ;;  %v951_v3 = vld [vmem:[#allocation6 + $0x2b0] sm:$0xff]  ;;  %v956_v1 = vld [vmem:[#allocation6 + $0x2c8] sm:$0xff] }
  0xce   :  { %v630_v60 = vadd.f32 %v629_v63, %v625_v7  ;;  %v905_v35 = vadd.f32 %v904_v43, %v900_v17  ;;  %v501_v29 = vmul.f32 %v500_v11, %v500_v11  ;;  %v928_v24 = vsub.f32 %v926_v36, %v927_v44  ;;  %v957_v7 = vld [vmem:[#allocation12 + $0x1d8] sm:$0xff] }
  0xcf   :  { %v1140_v10 = vsub.f32 %v1071_v50, %v1066_v21  ;;  %v919_v13 = vmul.f32 %v918_v56, %v918_v56  ;;  %v821_v8 = vmul.f32 %v820_v30, %v820_v30  ;;  %v322_v22 = vsel %vm1507_vm10, %v2185_v51, 0.0  ;;  %v1171_v50 = vpop.xlane.xlu1 %1170 }
  0xd0   :  { %v635_v20 = vadd.f32 %v634_v6, %v630_v60  ;;  %v910_v0 = vadd.f32 %v909_v49, %v905_v35  ;;  %v502_v40 = vsel %vm1507_vm10, %v501_v29, 0.0  ;;  %v924_v28 = vmul.f32 %v923_v26, %v923_v26 }
  0xd1   :  { %v1141_v14 = vmul.f32 %v1140_v10, %v1140_v10  ;;  %v933_v4 = vsub.f32 %v931_v47, %v932_v15  ;;  %v822_v52 = vsel %vm1732_vm12, %v821_v8, 0.0  ;;  %v929_v55 = vmul.f32 %v928_v24, %v928_v24 }
  0xd2   :  { %v640_v23 = vadd.f32 %v639_v2, %v635_v20  ;;  %v915_v5 = vadd.f32 %v914_v25, %v910_v0  ;;  %v823_v53 = vadd.f32 %v822_v52, %v502_v40  ;;  %v938_v54 = vsub.f32 %v936_v39, %v937_v46 }
  0xd3   :  { %v1142_v42 = vsel %vm2176_vm1, %v1141_v14, 0.0  ;;  %v934_v2 = vmul.f32 %v933_v4, %v933_v4  ;;  %v943_v38 = vsub.f32 %v941_v31, %v942_v58  ;;  %v948_v59 = vsub.f32 %v946_v18, %v947_v32 }
  0xd4   :  { %v642_v33 = vsel %vm1732_vm12, %v640_v23, 0.0  ;;  %v920_v9 = vadd.f32 %v919_v13, %v915_v5  ;;  %v1143_v63 = vadd.f32 %v1142_v42, %v823_v53  ;;  %v939_v43 = vmul.f32 %v938_v54, %v938_v54 }
  0xd5   :  { %v643_v51 = vadd.f32 %v642_v33, %v322_v22  ;;  %v944_v56 = vmul.f32 %v943_v38, %v943_v38  ;;  %v953_v19 = vsub.f32 %v951_v3, %v952_v12  ;;  %v949_v62 = vmul.f32 %v948_v59, %v948_v59  ;;  %v2290_v33 = vld [vmem:[#allocation20_spill] sm:$0xff]  ;;  %v2291_v38 = vld [vmem:[#allocation19_spill] sm:$0xff] }
  0xd6   :  { %v925_v6 = vadd.f32 %v924_v28, %v920_v9  ;;  %1160 = vadd.xlane.f32.xlu0 %v1143_v63  ;;  %v958_v17 = vsub.f32 %v956_v1, %v957_v7  ;;  %v1172_v25 = vrot.slane %v1171_v50, 4  ;;  %vm1196_vm7 = vcmp.eq.s32.totalorder %v2290_v33, 1 }
  0xd7   :  { %v954_v36 = vmul.f32 %v953_v19, %v953_v19  ;;  %vm1193_vm10 = vcmp.eq.s32.totalorder %v2290_v33, 0  ;;  %vm1200_vm8 = vcmp.eq.s32.totalorder %v2290_v33, 2  ;;  %vm1204_vm12 = vcmp.eq.s32.totalorder %v2290_v33, 3 }
  0xd8   :  { %v930_v16 = vadd.f32 %v929_v55, %v925_v6  ;;  %v959_v11 = vmul.f32 %v958_v17, %v958_v17  ;;  %v1173_v20 = vadd.f32 %v1172_v25, %v1171_v50  ;;  %vm1208_vm13 = vcmp.eq.s32.totalorder %v2290_v33, 4 }
  0xd9   :  { %vm1212_vm2 = vcmp.eq.s32.totalorder %v2291_v38, 0 }
  0xda   :  { %v935_v49 = vadd.f32 %v934_v2, %v930_v16  ;;  %v1174_v24 = vrot.slane %v1173_v20, 2 }
  0xdc   :  { %v940_v41 = vadd.f32 %v939_v43, %v935_v49  ;;  %v1175_v0 = vadd.f32 %v1174_v24, %v1173_v20 }
  0xde   :  { %v945_v26 = vadd.f32 %v944_v56, %v940_v41  ;;  %v1176_v40 = vrot.slane %v1175_v0, 1 }
  0xe0   :  { %v950_v44 = vadd.f32 %v949_v62, %v945_v26  ;;  %v1177_v23 = vadd.f32 %v1176_v40, %v1175_v0 }
  0xe2   :  { %v955_v48 = vadd.f32 %v954_v36, %v950_v44 }
  0xe4   :  { %v960_v60 = vadd.f32 %v959_v11, %v955_v48 }
  0xe6   :  { %v962_v34 = vsel %vm2176_vm1, %v960_v60, 0.0 }
  0xe7   :  { %v963_v61 = vadd.f32 %v962_v34, %v643_v51 }
  0xe9   :  { %1181 = vadd.xlane.f32.xlu1 %v963_v61 }
 0x13c   :  { %v1150_v45 = vpop.xlane.xlu0 %1149 }
 0x13d   :  { %v1151_v21 = vrot.slane %v1150_v45, 4 }
 0x13f   :  { %v1152_v27 = vadd.f32 %v1151_v21, %v1150_v45 }
 0x141   :  { %v1153_v57 = vrot.slane %v1152_v27, 2 }
 0x143   :  { %v1154_v35 = vadd.f32 %v1153_v57, %v1152_v27 }
 0x145   :  { %v1155_v29 = vrot.slane %v1154_v35, 1 }
 0x147   :  { %v1156_v30 = vadd.f32 %v1155_v29, %v1154_v35 }
 0x149   :  { %1242 = vpush %v1156_v30  ;;  %v1161_v47 = vpop.xlane.xlu0 %1160 }
 0x14a   :  { %v1162_v15 = vrot.slane %v1161_v47, 4 }
 0x14c   :  { %v1163_v10 = vadd.f32 %v1162_v15, %v1161_v47 }
 0x14e   :  { %v1164_v37 = vrot.slane %v1163_v10, 2 }
 0x150   :  { %v1165_v13 = vadd.f32 %v1164_v37, %v1163_v10 }
 0x152   :  { %v1166_v8 = vrot.slane %v1165_v13, 1 }
 0x154   :  { %v1167_v22 = vadd.f32 %v1166_v8, %v1165_v13 }
 0x156   :  { %1244 = vpush %v1167_v22 }
 0x157   :  { %1246 = vpush %v1177_v23 }
 0x15c   :  { %v1182_v39 = vpop.xlane.xlu1 %1181 }
 0x15d   :  { %v1183_v46 = vrot.slane %v1182_v39, 4 }
 0x15f   :  { %v1184_v14 = vadd.f32 %v1183_v46, %v1182_v39 }
 0x161   :  { %v1185_v5 = vrot.slane %v1184_v14, 2 }
 0x163   :  { %v1186_v28 = vadd.f32 %v1185_v5, %v1184_v14 }
 0x165   :  { %v1187_v4 = vrot.slane %v1186_v28, 1 }
 0x167   :  { %v1188_v52 = vadd.f32 %v1187_v4, %v1186_v28 }
 0x169   :  { %1248 = vpush %v1188_v52 }
 0x17a   :  { %s1243_s2 = spop %1242 }
 0x17b   :  { %s1158_s10 = smul.f32 5.0, %s1243_s2 }
 0x17d   :  { %v1197_v31 = vstv %s1158_s10 }
 0x17e   :  { %v1198_v42 = vsel %vm1196_vm7, %v1197_v31, 0.0 }
 0x187   :  { %s1245_s3 = spop %1244 }
 0x188   :  { %s1247_s9 = spop %1246  ;;  %s1190_s11 = sadd.f32 %s1245_s3, %s1158_s10  ;;  %v1201_v58 = vstv %s1245_s3 }
 0x189   :  { %s1179_s12 = smul.f32 0.5, %s1247_s9  ;;  %v1202_v54 = vsel %vm1200_vm8, %v1201_v58, 0.0 }
 0x18b   :  { %s1191_s13 = sadd.f32 %s1190_s11, %s1179_s12  ;;  %v1205_v9 = vstv %s1179_s12 }
 0x18c   :  { %v1206_v63 = vsel %vm1204_vm12, %v1205_v9, 0.0 }
 0x19a   :  { %s1249_s14 = spop %1248 }
 0x19b   :  { %s1192_s15 = sadd.f32 %s1249_s14, %s1191_s13  ;;  %v1209_v32 = vstv %s1249_s14 }
 0x19c   :  { %v1210_v2 = vsel %vm1208_vm13, %v1209_v32, 0.0 }
 0x19d   :  { %v1194_v53 = vstv %s1192_s15 }
 0x19e   :  { %v1195_v51 = vsel %vm1193_vm10, %v1194_v53, 0.0 }
 0x19f   :  { %v1199_v55 = vadd.f32 %v1198_v42, %v1195_v51 }
 0x1a1   :  { %v1203_v18 = vadd.f32 %v1202_v54, %v1199_v55 }
 0x1a3   :  { %v1207_v6 = vadd.f32 %v1206_v63, %v1203_v18 }
 0x1a5   :  { %v1211_v3 = vadd.f32 %v1210_v2, %v1207_v6 }
 0x1a7   :  { %v1213_v12 = vsel %vm1212_vm2, %v1211_v3, 0.0 }
 0x1a8   :  { %1214 = vst [vmem:[#allocation14] sm:$0xff] %v1213_v12 }
 0x1a9   :  { %1225 = dma.vmem_to_hbm [thread:$0]  %s1221_s17, 128, %s1223_s20, [#allocation8]  }
 0x1aa   :  { %1426 = dma.done.wait [#allocation8], 128  }
 0x1ab   :  { %1427 = vsyncadd [#allocation8], 4294967168 }
 0x1ac   :  { %1230 = vsyncpa [#allocation7], 1 }
 0x1ad   :  { %1231 = vsyncpa [#allocation10], 1 }
 0x1ae   :  { %1232 = vsyncpa [#allocation13], 1 }
 0x1af   :  { %1233 = vsyncpa [#allocation8], 1 }

</bundles_post_ra>
